<compile_context>
chip_gen: v7x
topology: tpu7x:2x2x1
jax: 0.10.0
libtpu: 0.0.40
codegen_flags: <defaults>
</compile_context>

<pallas_src>
import jax
import jax.numpy as jnp
from jax.experimental import pallas as pl
from jax.experimental.pallas import tpu as pltpu


def _mlp_kernel(x_ref,
                a1_ref, b1_ref,
                a2_ref, b2_ref,
                a3_ref, b3_ref,
                a4_ref, b4_ref,
                a5_ref, b5_ref,
                o_ref):
    # x_ref: (8, block_n) bf16  (rows 0..2 = xyz coords, rows 3..7 = zero pad)
    # a{l}_ref: (out, in) bf16 weights;  b{l}_ref: (out, 1) f32 biases.
    # All matmuls: bf16 operands on the MXU, f32 accumulation; bias+ReLU in f32.

    h = jnp.dot(a1_ref[...], x_ref[...], preferred_element_type=jnp.float32)
    h = jnp.maximum(h + b1_ref[...], 0.0)                       # (H, block_n) f32

    h = jnp.dot(a2_ref[...], h.astype(jnp.bfloat16),
                preferred_element_type=jnp.float32)
    h = jnp.maximum(h + b2_ref[...], 0.0)

    h = jnp.dot(a3_ref[...], h.astype(jnp.bfloat16),
                preferred_element_type=jnp.float32)
    h = jnp.maximum(h + b3_ref[...], 0.0)

    h = jnp.dot(a4_ref[...], h.astype(jnp.bfloat16),
                preferred_element_type=jnp.float32)
    h = jnp.maximum(h + b4_ref[...], 0.0)

    out = jnp.dot(a5_ref[...], h.astype(jnp.bfloat16),
                  preferred_element_type=jnp.float32)           # (1, block_n)
    out = jnp.maximum(out + b5_ref[...], 0.0)                   # ReLU on last layer too
    o_ref[...] = out.astype(o_ref.dtype)                        # lane-dense store


def linear_net_forward(x, params, *, block_n=1024):
    """x: (N, 3) float32.  params: A1..A5 (out,in) bf16, b1..b5 (out,1) f32.
    Returns (N, 1) float32, matching LinearNet.forward (ReLU after every layer)."""
    N, in_dim = x.shape
    assert in_dim == 3, "LinearNet expects 3-D input coordinates"
    if block_n > N:
        block_n = N
    assert N % block_n == 0, "batch must be a multiple of block_n"
    H = params["A2"].shape[0]

    # Feature-major, zero-padded (8, N) bf16 input: batch along lanes.
    x_t = jnp.zeros((8, N), jnp.bfloat16).at[:3, :].set(x.T.astype(jnp.bfloat16))

    param_list = [params[k]
                  for pair in ((f"A{l}", f"b{l}") for l in range(1, 6))
                  for k in pair]

    def full_spec(arr):
        # whole (small) parameter array resident in VMEM every grid step
        return pl.BlockSpec(arr.shape, lambda i: (0, 0))

    grid = (N // block_n,)

    flops = 2 * N * (8 * H + 3 * H * H + H) + 2 * N * (4 * H + 1)  # matmuls + bias/ReLU
    bytes_accessed = (x_t.size * x_t.dtype.itemsize + N * 4 +
                      sum(int(p.size) * p.dtype.itemsize for p in param_list))

    out_row = pl.pallas_call(
        _mlp_kernel,
        out_shape=jax.ShapeDtypeStruct((1, N), jnp.float32),
        grid_spec=pltpu.PrefetchScalarGridSpec(
            num_scalar_prefetch=0,
            grid=grid,
            in_specs=[pl.BlockSpec((8, block_n), lambda i: (0, i))] +
                     [full_spec(p) for p in param_list],
            out_specs=pl.BlockSpec((1, block_n), lambda i: (0, i)),
        ),
        compiler_params=pltpu.CompilerParams(
            dimension_semantics=("parallel",),
        ),
        cost_estimate=pl.CostEstimate(
            flops=flops, transcendentals=0, bytes_accessed=bytes_accessed),
    )(x_t, *param_list)

    return out_row.reshape(N, 1)


def init_params(key, hidden_size):
    """PyTorch nn.Linear-style init (uniform +/- 1/sqrt(fan_in)), stored in the
    kernel's layout: A{l} = (out_features, in_features) bf16 (MXU operands),
    b{l} = (out_features, 1) f32.  Layer-1 input is zero-padded from K=3 to K=8."""
    layer_dims = [(hidden_size, 3),
                  (hidden_size, hidden_size),
                  (hidden_size, hidden_size),
                  (hidden_size, hidden_size),
                  (1, hidden_size)]
    params = {}
    for idx, (fan_out, fan_in) in enumerate(layer_dims, start=1):
        key, kw, kb = jax.random.split(key, 3)
        bound = 1.0 / float(fan_in) ** 0.5
        w = jax.random.uniform(kw, (fan_out, fan_in), jnp.float32,
                               minval=-bound, maxval=bound)
        b = jax.random.uniform(kb, (fan_out, 1), jnp.float32,
                               minval=-bound, maxval=bound)
        if idx == 1:  # pad K from 3 -> 8 so the first MXU pass / x DMA is unmasked
            w = jnp.concatenate(
                [w, jnp.zeros((fan_out, 8 - fan_in), jnp.float32)], axis=1)
        params[f"A{idx}"] = w.astype(jnp.bfloat16)
        params[f"b{idx}"] = b
    return params


def reference_forward(x, params):
    """Pure-JAX reference with the same numerics as the kernel (bf16 MXU operands,
    f32 accumulation + bias + ReLU), same semantics as LinearNet.forward."""
    n = x.shape[0]
    h = jnp.zeros((8, n), jnp.float32).at[:3, :].set(x.T).astype(jnp.bfloat16)
    z = None
    for l in range(1, 6):
        z = jnp.dot(params[f"A{l}"], h, preferred_element_type=jnp.float32)
        z = jnp.maximum(z + params[f"b{l}"], 0.0)
        h = z.astype(jnp.bfloat16)
    return z.reshape(n, 1)


if __name__ == "__main__":
    key = jax.random.PRNGKey(0)
    hidden_size = 128   # small, 128-aligned stand-in for the default 500 (pad 500->512 in prod)
    batch = 2048        # 2 grid steps at block_n=1024 -> both v7x TensorCores busy

    kp, kx = jax.random.split(key)
    params = init_params(kp, hidden_size)
    x = jax.random.normal(kx, (batch, 3), jnp.float32)

    out = jax.block_until_ready(linear_net_forward(x, params, block_n=1024))
    ref = reference_forward(x, params)

    assert out.shape == (batch, 1)
    assert jnp.allclose(out, ref, atol=1e-3, rtol=1e-3), "mismatch vs reference"

    print("KERNEL_OK")
</pallas_src>

<mosaic_0001>
module attributes {stable_mosaic.version = 11 : i64} {
  func.func @_mlp_kernel(%arg0: i32, %arg1: memref<8x1024xbf16, #tpu.memory_space<vmem>>, %arg2: memref<128x8xbf16, #tpu.memory_space<vmem>>, %arg3: memref<128x1xf32, #tpu.memory_space<vmem>>, %arg4: memref<128x128xbf16, #tpu.memory_space<vmem>>, %arg5: memref<128x1xf32, #tpu.memory_space<vmem>>, %arg6: memref<128x128xbf16, #tpu.memory_space<vmem>>, %arg7: memref<128x1xf32, #tpu.memory_space<vmem>>, %arg8: memref<128x128xbf16, #tpu.memory_space<vmem>>, %arg9: memref<128x1xf32, #tpu.memory_space<vmem>>, %arg10: memref<1x128xbf16, #tpu.memory_space<vmem>>, %arg11: memref<1x1xf32, #tpu.memory_space<vmem>>, %arg12: memref<1x1024xf32, #tpu.memory_space<vmem>>) attributes {dimension_semantics = [#tpu.dimension_semantics<parallel>], iteration_bounds = array<i64: 2>, scalar_prefetch = 0 : i64, scratch_operands = 0 : i64, tpu.core_type = #tpu.core_type<tc>, window_params = [{transform_indices = @transform_0, window_bounds = array<i64: 8, 1024>}, {pipeline_mode = #tpu.pipeline_mode<synchronous>, transform_indices = @transform_1, window_bounds = array<i64: 128, 8>}, {pipeline_mode = #tpu.pipeline_mode<synchronous>, transform_indices = @transform_2, window_bounds = array<i64: 128, 1>}, {pipeline_mode = #tpu.pipeline_mode<synchronous>, transform_indices = @transform_3, window_bounds = array<i64: 128, 128>}, {pipeline_mode = #tpu.pipeline_mode<synchronous>, transform_indices = @transform_4, window_bounds = array<i64: 128, 1>}, {pipeline_mode = #tpu.pipeline_mode<synchronous>, transform_indices = @transform_5, window_bounds = array<i64: 128, 128>}, {pipeline_mode = #tpu.pipeline_mode<synchronous>, transform_indices = @transform_6, window_bounds = array<i64: 128, 1>}, {pipeline_mode = #tpu.pipeline_mode<synchronous>, transform_indices = @transform_7, window_bounds = array<i64: 128, 128>}, {pipeline_mode = #tpu.pipeline_mode<synchronous>, transform_indices = @transform_8, window_bounds = array<i64: 128, 1>}, {pipeline_mode = #tpu.pipeline_mode<synchronous>, transform_indices = @transform_9, window_bounds = array<i64: 1, 128>}, {pipeline_mode = #tpu.pipeline_mode<synchronous>, transform_indices = @transform_10, window_bounds = array<i64: 1, 1>}, {transform_indices = @transform_11, window_bounds = array<i64: 1, 1024>}]} {
    %c0 = arith.constant 0 : index
    %c0_0 = arith.constant 0 : index
    %0 = vector.load %arg2[%c0, %c0_0] : memref<128x8xbf16, #tpu.memory_space<vmem>>, vector<128x8xbf16>
    %c0_1 = arith.constant 0 : index
    %c0_2 = arith.constant 0 : index
    %1 = vector.load %arg1[%c0_1, %c0_2] : memref<8x1024xbf16, #tpu.memory_space<vmem>>, vector<8x1024xbf16>
    %cst = arith.constant dense<0.000000e+00> : vector<128x1024xf32>
    %2 = tpu.matmul %0, %1, %cst {dimension_numbers = #tpu.dot_dimension_numbers<[1], [0], [0], [1], [0, 0, 1, 1], [], []>} : vector<128x8xbf16>, vector<8x1024xbf16>, vector<128x1024xf32> -> vector<128x1024xf32>
    %c0_3 = arith.constant 0 : index
    %c0_4 = arith.constant 0 : index
    %3 = vector.load %arg3[%c0_3, %c0_4] : memref<128x1xf32, #tpu.memory_space<vmem>>, vector<128x1xf32>
    %4 = vector.broadcast %3 : vector<128x1xf32> to vector<128x1024xf32>
    %5 = arith.addf %2, %4 : vector<128x1024xf32>
    %cst_5 = arith.constant 0.000000e+00 : f32
    %6 = vector.broadcast %cst_5 : f32 to vector<128x1024xf32>
    %7 = arith.maximumf %5, %6 : vector<128x1024xf32>
    %c0_6 = arith.constant 0 : index
    %c0_7 = arith.constant 0 : index
    %8 = vector.load %arg4[%c0_6, %c0_7] : memref<128x128xbf16, #tpu.memory_space<vmem>>, vector<128x128xbf16>
    %9 = arith.truncf %7 : vector<128x1024xf32> to vector<128x1024xbf16>
    %cst_8 = arith.constant dense<0.000000e+00> : vector<128x1024xf32>
    %10 = tpu.matmul %8, %9, %cst_8 {dimension_numbers = #tpu.dot_dimension_numbers<[1], [0], [0], [1], [0, 0, 1, 1], [], []>} : vector<128x128xbf16>, vector<128x1024xbf16>, vector<128x1024xf32> -> vector<128x1024xf32>
    %c0_9 = arith.constant 0 : index
    %c0_10 = arith.constant 0 : index
    %11 = vector.load %arg5[%c0_9, %c0_10] : memref<128x1xf32, #tpu.memory_space<vmem>>, vector<128x1xf32>
    %12 = vector.broadcast %11 : vector<128x1xf32> to vector<128x1024xf32>
    %13 = arith.addf %10, %12 : vector<128x1024xf32>
    %cst_11 = arith.constant 0.000000e+00 : f32
    %14 = vector.broadcast %cst_11 : f32 to vector<128x1024xf32>
    %15 = arith.maximumf %13, %14 : vector<128x1024xf32>
    %c0_12 = arith.constant 0 : index
    %c0_13 = arith.constant 0 : index
    %16 = vector.load %arg6[%c0_12, %c0_13] : memref<128x128xbf16, #tpu.memory_space<vmem>>, vector<128x128xbf16>
    %17 = arith.truncf %15 : vector<128x1024xf32> to vector<128x1024xbf16>
    %cst_14 = arith.constant dense<0.000000e+00> : vector<128x1024xf32>
    %18 = tpu.matmul %16, %17, %cst_14 {dimension_numbers = #tpu.dot_dimension_numbers<[1], [0], [0], [1], [0, 0, 1, 1], [], []>} : vector<128x128xbf16>, vector<128x1024xbf16>, vector<128x1024xf32> -> vector<128x1024xf32>
    %c0_15 = arith.constant 0 : index
    %c0_16 = arith.constant 0 : index
    %19 = vector.load %arg7[%c0_15, %c0_16] : memref<128x1xf32, #tpu.memory_space<vmem>>, vector<128x1xf32>
    %20 = vector.broadcast %19 : vector<128x1xf32> to vector<128x1024xf32>
    %21 = arith.addf %18, %20 : vector<128x1024xf32>
    %cst_17 = arith.constant 0.000000e+00 : f32
    %22 = vector.broadcast %cst_17 : f32 to vector<128x1024xf32>
    %23 = arith.maximumf %21, %22 : vector<128x1024xf32>
    %c0_18 = arith.constant 0 : index
    %c0_19 = arith.constant 0 : index
    %24 = vector.load %arg8[%c0_18, %c0_19] : memref<128x128xbf16, #tpu.memory_space<vmem>>, vector<128x128xbf16>
    %25 = arith.truncf %23 : vector<128x1024xf32> to vector<128x1024xbf16>
    %cst_20 = arith.constant dense<0.000000e+00> : vector<128x1024xf32>
    %26 = tpu.matmul %24, %25, %cst_20 {dimension_numbers = #tpu.dot_dimension_numbers<[1], [0], [0], [1], [0, 0, 1, 1], [], []>} : vector<128x128xbf16>, vector<128x1024xbf16>, vector<128x1024xf32> -> vector<128x1024xf32>
    %c0_21 = arith.constant 0 : index
    %c0_22 = arith.constant 0 : index
    %27 = vector.load %arg9[%c0_21, %c0_22] : memref<128x1xf32, #tpu.memory_space<vmem>>, vector<128x1xf32>
    %28 = vector.broadcast %27 : vector<128x1xf32> to vector<128x1024xf32>
    %29 = arith.addf %26, %28 : vector<128x1024xf32>
    %cst_23 = arith.constant 0.000000e+00 : f32
    %30 = vector.broadcast %cst_23 : f32 to vector<128x1024xf32>
    %31 = arith.maximumf %29, %30 : vector<128x1024xf32>
    %c0_24 = arith.constant 0 : index
    %c0_25 = arith.constant 0 : index
    %32 = vector.load %arg10[%c0_24, %c0_25] : memref<1x128xbf16, #tpu.memory_space<vmem>>, vector<1x128xbf16>
    %33 = arith.truncf %31 : vector<128x1024xf32> to vector<128x1024xbf16>
    %cst_26 = arith.constant dense<0.000000e+00> : vector<1x1024xf32>
    %34 = tpu.matmul %32, %33, %cst_26 {dimension_numbers = #tpu.dot_dimension_numbers<[1], [0], [0], [1], [0, 0, 1, 1], [], []>} : vector<1x128xbf16>, vector<128x1024xbf16>, vector<1x1024xf32> -> vector<1x1024xf32>
    %c0_27 = arith.constant 0 : index
    %c0_28 = arith.constant 0 : index
    %35 = vector.load %arg11[%c0_27, %c0_28] : memref<1x1xf32, #tpu.memory_space<vmem>>, vector<1x1xf32>
    %36 = vector.broadcast %35 : vector<1x1xf32> to vector<1x1024xf32>
    %37 = arith.addf %34, %36 : vector<1x1024xf32>
    %cst_29 = arith.constant 0.000000e+00 : f32
    %38 = vector.broadcast %cst_29 : f32 to vector<1x1024xf32>
    %39 = arith.maximumf %37, %38 : vector<1x1024xf32>
    %c0_30 = arith.constant 0 : index
    %c0_31 = arith.constant 0 : index
    %40 = vector.load %arg12[%c0_30, %c0_31] : memref<1x1024xf32, #tpu.memory_space<vmem>>, vector<1x1024xf32>
    tpu.vector_store %arg12[%c0_30, %c0_31], %39 {strides = array<i32>} : memref<1x1024xf32, #tpu.memory_space<vmem>>, vector<1x1024xf32>,
    return
  }
  func.func @transform_0(%arg0: i32) -> (i32, i32) {
    %c0_i32 = arith.constant 0 : i32
    %c0_i32_0 = arith.constant 0 : i32
    return %c0_i32, %arg0 : i32, i32
  }
  func.func @transform_1(%arg0: i32) -> (i32, i32) {
    %c0_i32 = arith.constant 0 : i32
    %c0_i32_0 = arith.constant 0 : i32
    %c0_i32_1 = arith.constant 0 : i32
    return %c0_i32, %c0_i32_0 : i32, i32
  }
  func.func @transform_2(%arg0: i32) -> (i32, i32) {
    %c0_i32 = arith.constant 0 : i32
    %c0_i32_0 = arith.constant 0 : i32
    %c0_i32_1 = arith.constant 0 : i32
    return %c0_i32, %c0_i32_0 : i32, i32
  }
  func.func @transform_3(%arg0: i32) -> (i32, i32) {
    %c0_i32 = arith.constant 0 : i32
    %c0_i32_0 = arith.constant 0 : i32
    %c0_i32_1 = arith.constant 0 : i32
    return %c0_i32, %c0_i32_0 : i32, i32
  }
  func.func @transform_4(%arg0: i32) -> (i32, i32) {
    %c0_i32 = arith.constant 0 : i32
    %c0_i32_0 = arith.constant 0 : i32
    %c0_i32_1 = arith.constant 0 : i32
    return %c0_i32, %c0_i32_0 : i32, i32
  }
  func.func @transform_5(%arg0: i32) -> (i32, i32) {
    %c0_i32 = arith.constant 0 : i32
    %c0_i32_0 = arith.constant 0 : i32
    %c0_i32_1 = arith.constant 0 : i32
    return %c0_i32, %c0_i32_0 : i32, i32
  }
  func.func @transform_6(%arg0: i32) -> (i32, i32) {
    %c0_i32 = arith.constant 0 : i32
    %c0_i32_0 = arith.constant 0 : i32
    %c0_i32_1 = arith.constant 0 : i32
    return %c0_i32, %c0_i32_0 : i32, i32
  }
  func.func @transform_7(%arg0: i32) -> (i32, i32) {
    %c0_i32 = arith.constant 0 : i32
    %c0_i32_0 = arith.constant 0 : i32
    %c0_i32_1 = arith.constant 0 : i32
    return %c0_i32, %c0_i32_0 : i32, i32
  }
  func.func @transform_8(%arg0: i32) -> (i32, i32) {
    %c0_i32 = arith.constant 0 : i32
    %c0_i32_0 = arith.constant 0 : i32
    %c0_i32_1 = arith.constant 0 : i32
    return %c0_i32, %c0_i32_0 : i32, i32
  }
  func.func @transform_9(%arg0: i32) -> (i32, i32) {
    %c0_i32 = arith.constant 0 : i32
    %c0_i32_0 = arith.constant 0 : i32
    %c0_i32_1 = arith.constant 0 : i32
    return %c0_i32, %c0_i32_0 : i32, i32
  }
  func.func @transform_10(%arg0: i32) -> (i32, i32) {
    %c0_i32 = arith.constant 0 : i32
    %c0_i32_0 = arith.constant 0 : i32
    %c0_i32_1 = arith.constant 0 : i32
    return %c0_i32, %c0_i32_0 : i32, i32
  }
  func.func @transform_11(%arg0: i32) -> (i32, i32) {
    %c0_i32 = arith.constant 0 : i32
    %c0_i32_0 = arith.constant 0 : i32
    return %c0_i32, %arg0 : i32, i32
  }
}

</mosaic_0001>

<bundles_post_ra>
// kernel: tpu_custom_call.1
= control target key start
LH: loop header
LB: loop body
LE: loop exit
PB: predicated region body
PF: predicated region fallthrough
CT: control target
= control target key end

     0   :  { %s5675_s0 = inlined_call_operand.vmem [shape: bf16[8,2048], index: 0, kind: input, shape index: {}]   ;;  %s5676_s1 = inlined_call_operand.vmem [shape: bf16[128,8], index: 1, kind: input, shape index: {}]   ;;  %s5677_s2 = inlined_call_operand.vmem [shape: f32[128,1], index: 2, kind: input, shape index: {}]   ;;  %s5678_s3 = inlined_call_operand.vmem [shape: bf16[128,128], index: 3, kind: input, shape index: {}]   ;;  %s5679_s4 = inlined_call_operand.vmem [shape: f32[128,1], index: 4, kind: input, shape index: {}]   ;;  %s5680_s5 = inlined_call_operand.vmem [shape: bf16[128,128], index: 5, kind: input, shape index: {}]   ;;  %s5681_s6 = inlined_call_operand.vmem [shape: f32[128,1], index: 6, kind: input, shape index: {}]   ;;  %s5682_s7 = inlined_call_operand.vmem [shape: bf16[128,128], index: 7, kind: input, shape index: {}]   ;;  %s5683_s8 = inlined_call_operand.vmem [shape: f32[128,1], index: 8, kind: input, shape index: {}]   ;;  %s5684_s9 = inlined_call_operand.vmem [shape: bf16[1,128], index: 9, kind: input, shape index: {}]   ;;  %s5685_s10 = inlined_call_operand.<no memory space> [shape: f32[1,1], index: 10, kind: input, shape index: {}]   ;;  %s5686_s11 = inlined_call_operand.hbm [shape: f32[1,2048], index: 11, kind: output, shape index: {}]  }
   0x1   :  { %v16_v0 = vstv %s5685_s10 }
   0x2   :  { %17 = vst [vmem:[#allocation2] sm:$0x1] %v16_v0 }
   0x3   :  { %18 = vsyncpa [#allocation4], 0 }
   0x4   :  { %20 = vsyncpa [#allocation4 + $0x1], 0  ;;  %s4291_s19 = smov 0   ;;  %s4293_s20 = smov 0  }
   0x5   :  { %s4295_s21 = smov 0   ;;  %s4297_s22 = smov 0  }
   0x6 LB: > { %s4312_s10 = sadd.s32 4294967295, %s4223_s22   ;;  %s3989_s23 = sadd.s32 4294967294, %s4223_s22   ;;  %s4223_s22 = sphi %s4297_s22, %s5692_s22   ;;  %s4219_s21 = sphi %s4295_s21, %s5691_s21   ;;  %s4215_s20 = sphi %s4293_s20, %s5690_s20   ;;  %s4211_s19 = sphi %s4291_s19, %s5689_s19  }
   0x7   : > { %s4316_s24 = sadd.s32 1, %s4223_s22   ;;  %s269_s25 = sadd.s32 1, %s4219_s21 }
   0x8   : > { %s266_s26 = ssub.s32 %s4223_s22, %s4316_s24  ;;  %p279_p0 = scmp.ne.s32.totalorder %s4219_s21, %s4215_s20 }
   0x9   : > { %p267_p1 = scmp.eq.s32.totalorder %s266_s26, 0  ;;  %p280_p2 = scmp.eq.s32.totalorder %s4312_s10, 1 }
   0xa   : > { %p285_p3 = scmp.ne.s32.totalorder %s4215_s20, %s4211_s19  ;;  %p286_p4 = scmp.eq.s32.totalorder %s3989_s23, 1 }
   0xb   : > { %s4327_s27 = scalar_select %p267_p1, %s4219_s21, %s269_s25  }
   0xc   : > { %p4329_p5 = por %p280_p2, %p279_p0  ;;  %p4333_p6 = por %p286_p4, %p285_p3 }
   0xd   : > { %p3992_p7 = scmp.ge.s32.totalorder %s4223_s22, 1  ;;  %p343_p8 = scmp.lt.s32.totalorder %s4223_s22, 3 }
   0xf   : > { %p344_p9 = pnand %p3992_p7, %p343_p8 }
  0x10   : > { %v413_v1 = vld [vmem:[%s5677_s2 + $0x10] sm:$0xff] (!%p344_p9)  ;;  %v411_v2 = vld [vmem:[%s5677_s2] sm:$0xff] (!%p344_p9)  ;;  %s3994_s15 = sshll.u32 (!%p344_p9), %s4312_s10, 3  ;;  %v4225_v3 = vmov (!%p344_p9), 0   ;;  %v414_v4 = vld [vmem:[%s5677_s2 + $0x18] sm:$0xff] (!%p344_p9)  ;;  %vm592_vm0 = vcmask (!%p344_p9), 1043456  }
  0x11   : > { %347 = sbr.rel (%p344_p9) target bundleno = 1463 (0x5b7), region = 64  ;;  %4120 = vset.pattern.permute.xlu1 (!%p344_p9), %v4225_v3  ;;  %4119 = vset.pattern.permute.xlu0 (!%p344_p9), %v4225_v3  ;;  %p384_p10 = scmp.lt.s32.totalorder (!%p344_p9), %s3994_s15, 15  ;;  %v412_v5 = vld [vmem:[%s5677_s2 + $0x8] sm:$0xff] (!%p344_p9)  ;;  %v415_v7 = vld [vmem:[%s5677_s2 + $0x20] sm:$0xff] (!%p344_p9)  ;;  %v418_v22 = vld [vmem:[%s5677_s2 + $0x38] sm:$0xff] (!%p344_p9)  ;;  %vm567_vm1 = vcmask (!%p344_p9), 64512  }
  0x12   : > { %439 = vperm.xlu1 (!%p344_p9), %4120, %v413_v1   ;;  %429 = vperm.xlu0 (!%p344_p9), %4119, %v411_v2   ;;  %v416_v6 = vld [vmem:[%s5677_s2 + $0x28] sm:$0xff] (!%p344_p9)  ;;  %v417_v23 = vld [vmem:[%s5677_s2 + $0x30] sm:$0xff] (!%p344_p9)  ;;  %v4378_v24 = vld [vmem:[%s5676_s1] sm:$0xff] (!%p344_p9)   ;;  %s380_s12 = sand.u32 (!%p344_p9), 1, %s4215_s20   ;;  %s4077_s14 = sshll.u32 (!%p344_p9), %s4312_s10, 7 }
  0x13   : > { %649 = vmatprep.mubr.bf16.mxu0 (!%p344_p9), %v4225_v3  ;;  %762 = vmatprep.mubr.bf16.mxu1 (!%p344_p9), %v4225_v3  ;;  %v420_v27 = vld [vmem:[%s5677_s2 + $0x48] sm:$0xff] (!%p344_p9)  ;;  %v419_v28 = vld [vmem:[%s5677_s2 + $0x40] sm:$0xff] (!%p344_p9)  ;;  %v422_v29 = vld [vmem:[%s5677_s2 + $0x58] sm:$0xff] (!%p344_p9)  ;;  %s3993_s13 = sshll.u32 (!%p344_p9), %s380_s12, 3  ;;  %s5633_s23 = scalar_lea.hbm (!%p344_p9), %s5686_s11, %s4077_s14 }
  0x14   : > { %v421_v30 = vld [vmem:[%s5677_s2 + $0x50] sm:$0xff] (!%p344_p9)  ;;  %v4405_v31 = vld [vmem:[%s5676_s1 + $0x8] sm:$0xff] (!%p344_p9)   ;;  %v423_v33 = vld [vmem:[%s5677_s2 + $0x60] sm:$0xff] (!%p344_p9)  ;;  %s382_s16 = scalar_lea.vmem (!%p344_p9), [#allocation3], %s3993_s13  ;;  %s4227_s10 = smov (!%p344_p9), [#allocation3]  }
  0x15   : > { %v424_v32 = vld [vmem:[%s5677_s2 + $0x68] sm:$0xff] (!%p344_p9)  ;;  %v426_v34 = vld [vmem:[%s5677_s2 + $0x78] sm:$0xff] (!%p344_p9)  ;;  %v425_v35 = vld [vmem:[%s5677_s2 + $0x70] sm:$0xff] (!%p344_p9)  ;;  %s4165_s30 = sshll.u32 (!%p344_p9), %s4227_s10, 4  ;;  %s4166_s30 = int_to_ptr.vmem [resolvable:$false] %s4165_s30 }
  0x16   : > { %444 = vperm.xlu1 (!%p344_p9), %4120, %v414_v4   ;;  %434 = vperm.xlu0 (!%p344_p9), %4119, %v412_v5   ;;  %v4428_v36 = vld [vmem:[%s5676_s1 + $0x10] sm:$0xff] (!%p344_p9)   ;;  %v1278_v37 = vld [vmem:[%s5679_s4 + $0x8] sm:$0xff] (!%p344_p9)  ;;  %v1277_v38 = vld [vmem:[%s5679_s4] sm:$0xff] (!%p344_p9)  ;;  %s4167_s13 = scalar_lea.vmem (!%p344_p9), %s4166_s30, 256 }
  0x17   : > { %v1280_v39 = vld [vmem:[%s5679_s4 + $0x18] sm:$0xff] (!%p344_p9)  ;;  %v1279_v40 = vld [vmem:[%s5679_s4 + $0x10] sm:$0xff] (!%p344_p9)  ;;  %v1282_v42 = vld [vmem:[%s5679_s4 + $0x28] sm:$0xff] (!%p344_p9) }
  0x18   : > { %s5694_s15 = smov (!%p384_p10, %s3994_s15), 15  ;;  %v4451_v41 = vld [vmem:[%s5676_s1 + $0x18] sm:$0xff]   ;;  %v1281_v43 = vld [vmem:[%s5679_s4 + $0x20] sm:$0xff]  ;;  %v1283_v45 = vld [vmem:[%s5679_s4 + $0x30] sm:$0xff] }
  0x19   : > { %s3995_s25 = sshll.u32 %s5694_s15, 2  ;;  %v1284_v44 = vld [vmem:[%s5679_s4 + $0x38] sm:$0xff]  ;;  %v4474_v46 = vld [vmem:[%s5676_s1 + $0x20] sm:$0xff]   ;;  %v1286_v47 = vld [vmem:[%s5679_s4 + $0x48] sm:$0xff] }
  0x1a   : > { %s387_s17 = scalar_lea.vmem %s5675_s0, %s3995_s25  ;;  %454 = vperm.xlu1 %4120, %v416_v6   ;;  %449 = vperm.xlu0 %4119, %v415_v7   ;;  %v1285_v48 = vld [vmem:[%s5679_s4 + $0x40] sm:$0xff]  ;;  %v1288_v49 = vld [vmem:[%s5679_s4 + $0x58] sm:$0xff]  ;;  %v1287_v50 = vld [vmem:[%s5679_s4 + $0x50] sm:$0xff]  ;;  %s3916_s25 = scalar_lea.sflag [#allocation4], %s380_s12 }
  0x1b   : > { %v407_v8 = vld [vmem:[%s387_s17] sm:$0xff]  ;;  %v408_v9 = vld [vmem:[%s387_s17 + $0x8] sm:$0xff]  ;;  %v409_v10 = vld [vmem:[%s387_s17 + $0x10] sm:$0xff] }
  0x1c   : > { %v4005_v11 = vcombine.high %v407_v8, %v407_v8  ;;  %v4007_v12 = vcombine.high %v408_v9, %v408_v9  ;;  %v4004_v13 = vcombine.low %v407_v8, %v407_v8  ;;  %v4006_v14 = vcombine.low %v408_v9, %v408_v9  ;;  %v410_v15 = vld [vmem:[%s387_s17 + $0x18] sm:$0xff]  ;;  %v4497_v51 = vld [vmem:[%s5676_s1 + $0x28] sm:$0xff]   ;;  %v1289_v53 = vld [vmem:[%s5679_s4 + $0x60] sm:$0xff]  ;;  %s3930_s17 = sshll.u32 %s382_s16, 4  ;;  %s5635_s17 = int_to_ptr.vmem [resolvable:$true] %s3930_s17 }
  0x1d   : > { %v4009_v16 = vcombine.high %v409_v10, %v409_v10  ;;  %v4011_v17 = vcombine.high %v410_v15, %v410_v15  ;;  %v4008_v18 = vcombine.low %v409_v10, %v409_v10  ;;  %v4010_v19 = vcombine.low %v410_v15, %v410_v15  ;;  %v1290_v52 = vld [vmem:[%s5679_s4 + $0x68] sm:$0xff]  ;;  %v1292_v54 = vld [vmem:[%s5679_s4 + $0x78] sm:$0xff]  ;;  %v1291_v55 = vld [vmem:[%s5679_s4 + $0x70] sm:$0xff]  ;;  %s4161_s26 = scalar_lea.vmem %s5635_s17, 128  ;;  %p4168_p0 = scmp.lt.s32.totalorder %s5635_s17, %s4166_s30 }
  0x1e   : > { %v594_v20 = vsel %vm592_vm0, %v4004_v13, 0  ;;  %v600_v21 = vsel %vm592_vm0, %v4006_v14, 0  ;;  %4012 = vmatprep.subr.msk.bf16.mxu0 %vm592_vm0, %v4005_v11  ;;  %4021 = vmatprep.subr.msk.bf16.mxu1 %vm592_vm0, %v4007_v12  ;;  %v4520_v56 = vld [vmem:[%s5676_s1 + $0x30] sm:$0xff]   ;;  %v2082_v57 = vld [vmem:[%s5681_s6 + $0x8] sm:$0xff]  ;;  %v2081_v58 = vld [vmem:[%s5681_s6] sm:$0xff]  ;;  %p4162_p11 = scmp.ne.s32.totalorder %s5635_s17, %s4161_s26  ;;  %p4169_p1 = scmp.lt.s32.totalorder %s4167_s13, %s4161_s26 }
  0x1f   : > { %618 = vmatpush1.bf16.msra.mxu0 %v594_v20  ;;  %731 = vmatpush1.bf16.msra.mxu1 %v600_v21  ;;  %v606_v25 = vsel %vm592_vm0, %v4008_v18, 0  ;;  %v612_v26 = vsel %vm592_vm0, %v4010_v19, 0  ;;  %v2084_v59 = vld [vmem:[%s5681_s6 + $0x18] sm:$0xff]  ;;  %v2083_v60 = vld [vmem:[%s5681_s6 + $0x10] sm:$0xff]  ;;  %v2086_v62 = vld [vmem:[%s5681_s6 + $0x28] sm:$0xff] }
  0x20   : > { %4030 = vmatprep.subr.msk.bf16.mxu0 %vm592_vm0, %v4009_v16  ;;  %4039 = vmatprep.subr.msk.bf16.mxu1 %vm592_vm0, %v4011_v17  ;;  %v4543_v61 = vld [vmem:[%s5676_s1 + $0x38] sm:$0xff]   ;;  %v2085_v63 = vld [vmem:[%s5681_s6 + $0x20] sm:$0xff]  ;;  %v2087_v1 = vld [vmem:[%s5681_s6 + $0x30] sm:$0xff]  ;;  %p4163_p12 = pnand %p4162_p11, %p4329_p5  ;;  %p4170_p2 = por %p4169_p1, %p4168_p0 }
  0x21   : > { %464 = vperm.xlu1 %4120, %v418_v22   ;;  %459 = vperm.xlu0 %4119, %v417_v23   ;;  %v2088_v0 = vld [vmem:[%s5681_s6 + $0x38] sm:$0xff]  ;;  %v2090_v2 = vld [vmem:[%s5681_s6 + $0x48] sm:$0xff]  ;;  %v2089_v4 = vld [vmem:[%s5681_s6 + $0x40] sm:$0xff] }
  0x22   : > { %4013 = vmatmul.mubr.msk.bf16.vlgmr.msra.gmra.mrb[0].mxu0 %vm567_vm1, %v4378_v24  ;;  %4022 = vmatmul.mubr.msk.bf16.vlgmr.msra.gmra.mrb[0].mxu1 %vm567_vm1, %v4378_v24  ;;  %v2092_v5 = vld [vmem:[%s5681_s6 + $0x58] sm:$0xff]  ;;  %v2091_v6 = vld [vmem:[%s5681_s6 + $0x50] sm:$0xff]  ;;  %v2094_v7 = vld [vmem:[%s5681_s6 + $0x68] sm:$0xff]  ;;  %p4164_p13 = pneg %p4163_p12 }
  0x23   : > { %844 = vmatpush1.bf16.msra.mxu0 %v606_v25  ;;  %957 = vmatpush1.bf16.msra.mxu1 %v612_v26  ;;  %v2093_v8 = vld [vmem:[%s5681_s6 + $0x60] sm:$0xff]  ;;  %v2096_v9 = vld [vmem:[%s5681_s6 + $0x78] sm:$0xff]  ;;  %v2095_v10 = vld [vmem:[%s5681_s6 + $0x70] sm:$0xff] }
  0x24   : > { %659 = vmatprep.mubr.bf16.mxu0 %v4225_v3  ;;  %772 = vmatprep.mubr.bf16.mxu1 %v4225_v3  ;;  %v2886_v11 = vld [vmem:[%s5683_s8 + $0x8] sm:$0xff]  ;;  %v2885_v12 = vld [vmem:[%s5683_s8] sm:$0xff]  ;;  %v2888_v13 = vld [vmem:[%s5683_s8 + $0x18] sm:$0xff]  ;;  %p4171_p3 = pnand %p4170_p2, %p4164_p13 }
  0x25   : > { %474 = vperm.xlu1 %4120, %v420_v27   ;;  %469 = vperm.xlu0 %4119, %v419_v28   ;;  %v2887_v14 = vld [vmem:[%s5683_s8 + $0x10] sm:$0xff]  ;;  %v2890_v15 = vld [vmem:[%s5683_s8 + $0x28] sm:$0xff]  ;;  %v2889_v16 = vld [vmem:[%s5683_s8 + $0x20] sm:$0xff] }
  0x26   : > { %v2892_v17 = vld [vmem:[%s5683_s8 + $0x38] sm:$0xff]  ;;  %v2891_v18 = vld [vmem:[%s5683_s8 + $0x30] sm:$0xff]  ;;  %v2894_v19 = vld [vmem:[%s5683_s8 + $0x48] sm:$0xff] }
  0x27   : > { %v2893_v20 = vld [vmem:[%s5683_s8 + $0x40] sm:$0xff]  ;;  %v2896_v21 = vld [vmem:[%s5683_s8 + $0x58] sm:$0xff]  ;;  %v2895_v22 = vld [vmem:[%s5683_s8 + $0x50] sm:$0xff] }
  0x28   : > { %v2898_v23 = vld [vmem:[%s5683_s8 + $0x68] sm:$0xff]  ;;  %v2900_v25 = vld [vmem:[%s5683_s8 + $0x78] sm:$0xff]  ;;  %v2899_v26 = vld [vmem:[%s5683_s8 + $0x70] sm:$0xff] }
  0x29   : > { %484 = vperm.xlu1 %4120, %v422_v29   ;;  %479 = vperm.xlu0 %4119, %v421_v30   ;;  %v3674_v27 = vld [vmem:[#allocation2] sm:$0x1] }
  0x2a   : > { %4014 = vmatmul.mubr.msk.bf16.gmra.mrb[4].mxu0 %vm567_vm1, %v4405_v31  ;;  %4023 = vmatmul.mubr.msk.bf16.gmra.mrb[4].mxu1 %vm567_vm1, %v4405_v31 }
  0x2b   : > { %669 = vmatprep.mubr.bf16.mxu0 %v4225_v3  ;;  %782 = vmatprep.mubr.bf16.mxu1 %v4225_v3 }
  0x2d   : > { %494 = vperm.xlu1 %4120, %v424_v32   ;;  %489 = vperm.xlu0 %4119, %v423_v33  }
  0x31   : > { %504 = vperm.xlu1 %4120, %v426_v34   ;;  %499 = vperm.xlu0 %4119, %v425_v35  }
  0x32   : > { %4015 = vmatmul.mubr.msk.bf16.gmra.mrb[8].mxu0 %vm567_vm1, %v4428_v36  ;;  %4024 = vmatmul.mubr.msk.bf16.gmra.mrb[8].mxu1 %vm567_vm1, %v4428_v36 }
  0x33   : > { %679 = vmatprep.mubr.bf16.mxu0 %v4225_v3  ;;  %792 = vmatprep.mubr.bf16.mxu1 %v4225_v3 }
  0x35   : > { %1300 = vperm.xlu1 %4120, %v1278_v37   ;;  %1295 = vperm.xlu0 %4119, %v1277_v38  }
  0x39   : > { %1310 = vperm.xlu1 %4120, %v1280_v39   ;;  %1305 = vperm.xlu0 %4119, %v1279_v40  }
  0x3a   : > { %4016 = vmatmul.mubr.msk.bf16.gmra.mrb[12].mxu0 %vm567_vm1, %v4451_v41  ;;  %4025 = vmatmul.mubr.msk.bf16.gmra.mrb[12].mxu1 %vm567_vm1, %v4451_v41 }
  0x3b   : > { %689 = vmatprep.mubr.bf16.mxu0 %v4225_v3  ;;  %802 = vmatprep.mubr.bf16.mxu1 %v4225_v3 }
  0x3d   : > { %1320 = vperm.xlu1 %4120, %v1282_v42   ;;  %1315 = vperm.xlu0 %4119, %v1281_v43  }
  0x41   : > { %1330 = vperm.xlu1 %4120, %v1284_v44   ;;  %1325 = vperm.xlu0 %4119, %v1283_v45  }
  0x42   : > { %4017 = vmatmul.mubr.msk.bf16.gmra.mrb[16].mxu0 %vm567_vm1, %v4474_v46  ;;  %4026 = vmatmul.mubr.msk.bf16.gmra.mrb[16].mxu1 %vm567_vm1, %v4474_v46 }
  0x43   : > { %699 = vmatprep.mubr.bf16.mxu0 %v4225_v3  ;;  %812 = vmatprep.mubr.bf16.mxu1 %v4225_v3 }
  0x45   : > { %1340 = vperm.xlu1 %4120, %v1286_v47   ;;  %1335 = vperm.xlu0 %4119, %v1285_v48  }
  0x49   : > { %1350 = vperm.xlu1 %4120, %v1288_v49   ;;  %1345 = vperm.xlu0 %4119, %v1287_v50  }
  0x4a   : > { %4018 = vmatmul.mubr.msk.bf16.gmra.mrb[20].mxu0 %vm567_vm1, %v4497_v51  ;;  %4027 = vmatmul.mubr.msk.bf16.gmra.mrb[20].mxu1 %vm567_vm1, %v4497_v51 }
  0x4b   : > { %709 = vmatprep.mubr.bf16.mxu0 %v4225_v3  ;;  %822 = vmatprep.mubr.bf16.mxu1 %v4225_v3 }
  0x4d   : > { %1360 = vperm.xlu1 %4120, %v1290_v52   ;;  %1355 = vperm.xlu0 %4119, %v1289_v53  }
  0x51   : > { %1370 = vperm.xlu1 %4120, %v1292_v54   ;;  %1365 = vperm.xlu0 %4119, %v1291_v55  }
  0x52   : > { %4019 = vmatmul.mubr.msk.bf16.gmra.mrb[24].mxu0 %vm567_vm1, %v4520_v56  ;;  %4028 = vmatmul.mubr.msk.bf16.gmra.mrb[24].mxu1 %vm567_vm1, %v4520_v56 }
  0x53   : > { %719 = vmatprep.mubr.bf16.mxu0 %v4225_v3  ;;  %832 = vmatprep.mubr.bf16.mxu1 %v4225_v3 }
  0x55   : > { %2104 = vperm.xlu1 %4120, %v2082_v57   ;;  %2099 = vperm.xlu0 %4119, %v2081_v58  }
  0x59   : > { %2114 = vperm.xlu1 %4120, %v2084_v59   ;;  %2109 = vperm.xlu0 %4119, %v2083_v60  }
  0x5a   : > { %4020 = vmatmul.mubr.msk.bf16.gmra.mrb[28].mxu0 %vm567_vm1, %v4543_v61  ;;  %4029 = vmatmul.mubr.msk.bf16.gmra.mrb[28].mxu1 %vm567_vm1, %v4543_v61 }
  0x5b   : > { %875 = vmatprep.mubr.bf16.mxu0 %v4225_v3  ;;  %988 = vmatprep.mubr.bf16.mxu1 %v4225_v3 }
  0x5d   : > { %2124 = vperm.xlu1 %4120, %v2086_v62   ;;  %2119 = vperm.xlu0 %4119, %v2085_v63  }
  0x61   : > { %2134 = vperm.xlu1 %4120, %v2088_v0   ;;  %2129 = vperm.xlu0 %4119, %v2087_v1  }
  0x62   : > { %4031 = vmatmul.mubr.msk.bf16.vlgmr.msra.gmra.mrb[32].mxu0 %vm567_vm1, %v4378_v24  ;;  %4040 = vmatmul.mubr.msk.bf16.vlgmr.msra.gmra.mrb[32].mxu1 %vm567_vm1, %v4378_v24  ;;  %v2897_v24 = vld [vmem:[%s5683_s8 + $0x60] sm:$0xff] }
  0x63   : > { %885 = vmatprep.mubr.bf16.mxu0 %v4225_v3  ;;  %998 = vmatprep.mubr.bf16.mxu1 %v4225_v3 }
  0x65   : > { %2144 = vperm.xlu1 %4120, %v2090_v2   ;;  %2139 = vperm.xlu0 %4119, %v2089_v4  }
  0x69   : > { %2154 = vperm.xlu1 %4120, %v2092_v5   ;;  %2149 = vperm.xlu0 %4119, %v2091_v6  }
  0x6a   : > { %4032 = vmatmul.mubr.msk.bf16.gmra.mrb[36].mxu0 %vm567_vm1, %v4405_v31  ;;  %4041 = vmatmul.mubr.msk.bf16.gmra.mrb[36].mxu1 %vm567_vm1, %v4405_v31 }
  0x6b   : > { %895 = vmatprep.mubr.bf16.mxu0 %v4225_v3  ;;  %1008 = vmatprep.mubr.bf16.mxu1 %v4225_v3 }
  0x6d   : > { %2164 = vperm.xlu1 %4120, %v2094_v7   ;;  %2159 = vperm.xlu0 %4119, %v2093_v8  }
  0x71   : > { %2174 = vperm.xlu1 %4120, %v2096_v9   ;;  %2169 = vperm.xlu0 %4119, %v2095_v10  }
  0x72   : > { %4033 = vmatmul.mubr.msk.bf16.gmra.mrb[40].mxu0 %vm567_vm1, %v4428_v36  ;;  %4042 = vmatmul.mubr.msk.bf16.gmra.mrb[40].mxu1 %vm567_vm1, %v4428_v36 }
  0x73   : > { %905 = vmatprep.mubr.bf16.mxu0 %v4225_v3  ;;  %1018 = vmatprep.mubr.bf16.mxu1 %v4225_v3 }
  0x75   : > { %2908 = vperm.xlu1 %4120, %v2886_v11   ;;  %2903 = vperm.xlu0 %4119, %v2885_v12  }
  0x79   : > { %2918 = vperm.xlu1 %4120, %v2888_v13   ;;  %2913 = vperm.xlu0 %4119, %v2887_v14  }
  0x7a   : > { %4034 = vmatmul.mubr.msk.bf16.gmra.mrb[44].mxu0 %vm567_vm1, %v4451_v41  ;;  %4043 = vmatmul.mubr.msk.bf16.gmra.mrb[44].mxu1 %vm567_vm1, %v4451_v41 }
  0x7b   : > { %915 = vmatprep.mubr.bf16.mxu0 %v4225_v3  ;;  %1028 = vmatprep.mubr.bf16.mxu1 %v4225_v3 }
  0x7d   : > { %2928 = vperm.xlu1 %4120, %v2890_v15   ;;  %2923 = vperm.xlu0 %4119, %v2889_v16  }
  0x81   : > { %2938 = vperm.xlu1 %4120, %v2892_v17   ;;  %2933 = vperm.xlu0 %4119, %v2891_v18  }
  0x82   : > { %4035 = vmatmul.mubr.msk.bf16.gmra.mrb[48].mxu0 %vm567_vm1, %v4474_v46  ;;  %4044 = vmatmul.mubr.msk.bf16.gmra.mrb[48].mxu1 %vm567_vm1, %v4474_v46 }
  0x83   : > { %925 = vmatprep.mubr.bf16.mxu0 %v4225_v3  ;;  %1038 = vmatprep.mubr.bf16.mxu1 %v4225_v3 }
  0x85   : > { %2948 = vperm.xlu1 %4120, %v2894_v19   ;;  %2943 = vperm.xlu0 %4119, %v2893_v20  }
  0x89   : > { %2958 = vperm.xlu1 %4120, %v2896_v21   ;;  %2953 = vperm.xlu0 %4119, %v2895_v22  }
  0x8a   : > { %4036 = vmatmul.mubr.msk.bf16.gmra.mrb[52].mxu0 %vm567_vm1, %v4497_v51  ;;  %4045 = vmatmul.mubr.msk.bf16.gmra.mrb[52].mxu1 %vm567_vm1, %v4497_v51 }
  0x8b   : > { %935 = vmatprep.mubr.bf16.mxu0 %v4225_v3  ;;  %1048 = vmatprep.mubr.bf16.mxu1 %v4225_v3 }
  0x8d   : > { %2968 = vperm.xlu1 %4120, %v2898_v23   ;;  %2963 = vperm.xlu0 %4119, %v2897_v24  }
  0x91   : > { %2978 = vperm.xlu1 %4120, %v2900_v25   ;;  %2973 = vperm.xlu0 %4119, %v2899_v26   ;;  %v4683_v28 = vpop.permute.xlu0 %429  ;;  %v4685_v29 = vpop.permute.xlu1 %439 }
  0x92   : > { %4037 = vmatmul.mubr.msk.bf16.gmra.mrb[56].mxu0 %vm567_vm1, %v4520_v56  ;;  %4046 = vmatmul.mubr.msk.bf16.gmra.mrb[56].mxu1 %vm567_vm1, %v4520_v56 }
  0x93   : > { %945 = vmatprep.mubr.bf16.mxu0 %v4225_v3  ;;  %1058 = vmatprep.mubr.bf16.mxu1 %v4225_v3 }
  0x95   : > { %3677 = vperm.xlu0 %4119, %v3674_v27   ;;  %v4687_v30 = vpop.permute.xlu0 %434  ;;  %v4697_v57 = vpop.permute.xlu1 %444 }
  0x99   : > { %v4707_v25 = vpop.permute.xlu1 %454  ;;  %v4709_v26 = vpop.permute.xlu0 %449 }
  0x9a   : > { %4038 = vmatmul.mubr.msk.bf16.gmra.mrb[60].mxu0 %vm567_vm1, %v4543_v61  ;;  %4047 = vmatmul.mubr.msk.bf16.gmra.mrb[60].mxu1 %vm567_vm1, %v4543_v61 }
  0x9b   : > { %1453 = vmatprep.mubr.bf16.mxu0 %v4225_v3  ;;  %1566 = vmatprep.mubr.bf16.mxu1 %v4225_v3 }
  0xf5   : > { %v651_v31 = vpop.f32.mrb[0].mxu0  ;;  %v764_v32 = vpop.f32.mrb[0].mxu1 }
  0xf6   : > { %v652_v33 = vadd.f32 %v651_v31, %v4683_v28  ;;  %v765_v34 = vadd.f32 %v764_v32, %v4683_v28  ;;  %v653_v35 = vpop.f32.mrb[1].mxu0  ;;  %v766_v36 = vpop.f32.mrb[1].mxu1 }
  0xf7   : > { %v654_v37 = vadd.f32 %v653_v35, %v4683_v28  ;;  %v767_v38 = vadd.f32 %v766_v36, %v4683_v28  ;;  %v655_v39 = vpop.f32.mrb[2].mxu0  ;;  %v768_v40 = vpop.f32.mrb[2].mxu1 }
  0xf8   : > { %v656_v41 = vadd.f32 %v655_v39, %v4687_v30  ;;  %v769_v42 = vadd.f32 %v768_v40, %v4687_v30  ;;  %v657_v43 = vpop.f32.mrb[3].mxu0  ;;  %v770_v44 = vpop.f32.mrb[3].mxu1  ;;  %v1069_v47 = vmax.f32 %v652_v33, 0.0  ;;  %v1071_v48 = vmax.f32 %v765_v34, 0.0 }
  0xf9   : > { %v658_v45 = vadd.f32 %v657_v43, %v4687_v30  ;;  %v771_v46 = vadd.f32 %v770_v44, %v4687_v30  ;;  %v1070_v51 = vmax.f32 %v654_v37, 0.0  ;;  %v1072_v52 = vmax.f32 %v767_v38, 0.0 }
  0xfa   : > { %v1077_v49 = vmax.f32 %v656_v41, 0.0  ;;  %v1079_v50 = vmax.f32 %v769_v42, 0.0 }
  0xfb   : > { %v1078_v53 = vmax.f32 %v658_v45, 0.0  ;;  %v1080_v54 = vmax.f32 %v771_v46, 0.0 }
  0xfc   : > { %v1213_v55 = vpack.c.bf16 %v1077_v49, %v1069_v47  ;;  %v1215_v56 = vpack.c.bf16 %v1079_v50, %v1071_v48 }
  0xfd   : > { %v1214_v58 = vpack.c.bf16 %v1078_v53, %v1070_v51  ;;  %v1216_v59 = vpack.c.bf16 %v1080_v54, %v1072_v52  ;;  %v661_v60 = vpop.f32.mrb[4].mxu0  ;;  %v774_v61 = vpop.f32.mrb[4].mxu1 }
  0xfe   : > { %v662_v62 = vadd.f32 %v661_v60, %v4685_v29  ;;  %v775_v63 = vadd.f32 %v774_v61, %v4685_v29  ;;  %v663_v0 = vpop.f32.mrb[5].mxu0  ;;  %v776_v1 = vpop.f32.mrb[5].mxu1 }
  0xff   : > { %1421 = vmatprep.subr.bf16.mxu0 %v1214_v58  ;;  %1534 = vmatprep.subr.bf16.mxu1 %v1216_v59  ;;  %v664_v2 = vadd.f32 %v663_v0, %v4685_v29  ;;  %v777_v4 = vadd.f32 %v776_v1, %v4685_v29  ;;  %v665_v5 = vpop.f32.mrb[6].mxu0  ;;  %v778_v6 = vpop.f32.mrb[6].mxu1 }
 0x100   : > { %1422 = vmatpush1.bf16.msra.mxu0 %v1213_v55  ;;  %1535 = vmatpush1.bf16.msra.mxu1 %v1215_v56  ;;  %v666_v7 = vadd.f32 %v665_v5, %v4697_v57  ;;  %v779_v8 = vadd.f32 %v778_v6, %v4697_v57  ;;  %v667_v9 = vpop.f32.mrb[7].mxu0  ;;  %v780_v10 = vpop.f32.mrb[7].mxu1  ;;  %v1085_v13 = vmax.f32 %v662_v62, 0.0  ;;  %v1087_v14 = vmax.f32 %v775_v63, 0.0 }
 0x101   : > { %v668_v11 = vadd.f32 %v667_v9, %v4697_v57  ;;  %v781_v12 = vadd.f32 %v780_v10, %v4697_v57  ;;  %v1086_v17 = vmax.f32 %v664_v2, 0.0  ;;  %v1088_v18 = vmax.f32 %v777_v4, 0.0  ;;  %v4719_v59 = vpop.permute.xlu1 %464  ;;  %v4721_v60 = vpop.permute.xlu0 %459 }
 0x102   : > { %v1093_v15 = vmax.f32 %v666_v7, 0.0  ;;  %v1095_v16 = vmax.f32 %v779_v8, 0.0 }
 0x103   : > { %v1094_v19 = vmax.f32 %v668_v11, 0.0  ;;  %v1096_v20 = vmax.f32 %v781_v12, 0.0 }
 0x104   : > { %v1221_v21 = vpack.c.bf16 %v1093_v15, %v1085_v13  ;;  %v1223_v22 = vpack.c.bf16 %v1095_v16, %v1087_v14 }
 0x105   : > { %v671_v23 = vpop.f32.mrb[8].mxu0  ;;  %v784_v24 = vpop.f32.mrb[8].mxu1  ;;  %v1222_v27 = vpack.c.bf16 %v1094_v19, %v1086_v17  ;;  %v1224_v31 = vpack.c.bf16 %v1096_v20, %v1088_v18 }
 0x106   : > { %v672_v32 = vadd.f32 %v671_v23, %v4709_v26  ;;  %v785_v33 = vadd.f32 %v784_v24, %v4709_v26  ;;  %v673_v34 = vpop.f32.mrb[9].mxu0  ;;  %v786_v35 = vpop.f32.mrb[9].mxu1 }
 0x107   : > { %v674_v36 = vadd.f32 %v673_v34, %v4709_v26  ;;  %v787_v37 = vadd.f32 %v786_v35, %v4709_v26  ;;  %v675_v38 = vpop.f32.mrb[10].mxu0  ;;  %v788_v39 = vpop.f32.mrb[10].mxu1  ;;  %1423 = vmatprep.subr.bf16.mxu0 %v1222_v27  ;;  %1536 = vmatprep.subr.bf16.mxu1 %v1224_v31 }
 0x108   : > { %v676_v40 = vadd.f32 %v675_v38, %v4707_v25  ;;  %v789_v41 = vadd.f32 %v788_v39, %v4707_v25  ;;  %v677_v42 = vpop.f32.mrb[11].mxu0  ;;  %v790_v43 = vpop.f32.mrb[11].mxu1  ;;  %1424 = vmatpush1.bf16.msra.mxu0 %v1221_v21  ;;  %1537 = vmatpush1.bf16.msra.mxu1 %v1223_v22  ;;  %v1101_v46 = vmax.f32 %v672_v32, 0.0  ;;  %v1103_v47 = vmax.f32 %v785_v33, 0.0 }
 0x109   : > { %v678_v44 = vadd.f32 %v677_v42, %v4707_v25  ;;  %v791_v45 = vadd.f32 %v790_v43, %v4707_v25  ;;  %v1102_v50 = vmax.f32 %v674_v36, 0.0  ;;  %v1104_v51 = vmax.f32 %v787_v37, 0.0  ;;  %v4731_v18 = vpop.permute.xlu0 %469  ;;  %v4733_v32 = vpop.permute.xlu1 %474 }
 0x10a   : > { %v1109_v48 = vmax.f32 %v676_v40, 0.0  ;;  %v1111_v49 = vmax.f32 %v789_v41, 0.0 }
 0x10b   : > { %v1110_v52 = vmax.f32 %v678_v44, 0.0  ;;  %v1112_v53 = vmax.f32 %v791_v45, 0.0 }
 0x10c   : > { %v1229_v54 = vpack.c.bf16 %v1109_v48, %v1101_v46  ;;  %v1231_v55 = vpack.c.bf16 %v1111_v49, %v1103_v47 }
 0x10d   : > { %v681_v56 = vpop.f32.mrb[12].mxu0  ;;  %v794_v58 = vpop.f32.mrb[12].mxu1  ;;  %v1230_v61 = vpack.c.bf16 %v1110_v52, %v1102_v50  ;;  %v1232_v62 = vpack.c.bf16 %v1112_v53, %v1104_v51 }
 0x10e   : > { %v682_v63 = vadd.f32 %v681_v56, %v4721_v60  ;;  %v795_v0 = vadd.f32 %v794_v58, %v4721_v60  ;;  %v683_v1 = vpop.f32.mrb[13].mxu0  ;;  %v796_v2 = vpop.f32.mrb[13].mxu1 }
 0x10f   : > { %v684_v4 = vadd.f32 %v683_v1, %v4721_v60  ;;  %v797_v5 = vadd.f32 %v796_v2, %v4721_v60  ;;  %v685_v6 = vpop.f32.mrb[14].mxu0  ;;  %v798_v7 = vpop.f32.mrb[14].mxu1  ;;  %1425 = vmatprep.subr.bf16.mxu0 %v1230_v61  ;;  %1538 = vmatprep.subr.bf16.mxu1 %v1232_v62 }
 0x110   : > { %v686_v8 = vadd.f32 %v685_v6, %v4719_v59  ;;  %v799_v9 = vadd.f32 %v798_v7, %v4719_v59  ;;  %v687_v10 = vpop.f32.mrb[15].mxu0  ;;  %v800_v11 = vpop.f32.mrb[15].mxu1  ;;  %1426 = vmatpush1.bf16.msra.mxu0 %v1229_v54  ;;  %1539 = vmatpush1.bf16.msra.mxu1 %v1231_v55  ;;  %v1117_v14 = vmax.f32 %v682_v63, 0.0  ;;  %v1119_v15 = vmax.f32 %v795_v0, 0.0 }
 0x111   : > { %v688_v12 = vadd.f32 %v687_v10, %v4719_v59  ;;  %v801_v13 = vadd.f32 %v800_v11, %v4719_v59  ;;  %v1118_v19 = vmax.f32 %v684_v4, 0.0  ;;  %v1120_v20 = vmax.f32 %v797_v5, 0.0  ;;  %v4743_v55 = vpop.permute.xlu1 %484  ;;  %v4745_v56 = vpop.permute.xlu0 %479 }
 0x112   : > { %v1125_v16 = vmax.f32 %v686_v8, 0.0  ;;  %v1127_v17 = vmax.f32 %v799_v9, 0.0 }
 0x113   : > { %v1126_v21 = vmax.f32 %v688_v12, 0.0  ;;  %v1128_v22 = vmax.f32 %v801_v13, 0.0 }
 0x114   : > { %v1237_v23 = vpack.c.bf16 %v1125_v16, %v1117_v14  ;;  %v1239_v24 = vpack.c.bf16 %v1127_v17, %v1119_v15 }
 0x115   : > { %v691_v27 = vpop.f32.mrb[16].mxu0  ;;  %v804_v31 = vpop.f32.mrb[16].mxu1  ;;  %v1238_v33 = vpack.c.bf16 %v1126_v21, %v1118_v19  ;;  %v1240_v34 = vpack.c.bf16 %v1128_v22, %v1120_v20 }
 0x116   : > { %v692_v35 = vadd.f32 %v691_v27, %v4731_v18  ;;  %v693_v36 = vpop.f32.mrb[17].mxu0  ;;  %v805_v37 = vadd.f32 %v804_v31, %v4731_v18  ;;  %v806_v39 = vpop.f32.mrb[17].mxu1 }
 0x117   : > { %v694_v38 = vadd.f32 %v693_v36, %v4731_v18  ;;  %v695_v40 = vpop.f32.mrb[18].mxu0  ;;  %v807_v41 = vadd.f32 %v806_v39, %v4731_v18  ;;  %v808_v43 = vpop.f32.mrb[18].mxu1  ;;  %1427 = vmatprep.subr.bf16.mxu0 %v1238_v33  ;;  %1540 = vmatprep.subr.bf16.mxu1 %v1240_v34 }
 0x118   : > { %v696_v42 = vadd.f32 %v695_v40, %v4733_v32  ;;  %v697_v44 = vpop.f32.mrb[19].mxu0  ;;  %v809_v45 = vadd.f32 %v808_v43, %v4733_v32  ;;  %v810_v47 = vpop.f32.mrb[19].mxu1  ;;  %1428 = vmatpush1.bf16.msra.mxu0 %v1237_v23  ;;  %1541 = vmatpush1.bf16.msra.mxu1 %v1239_v24  ;;  %v1133_v48 = vmax.f32 %v692_v35, 0.0  ;;  %v1135_v51 = vmax.f32 %v805_v37, 0.0 }
 0x119   : > { %v698_v46 = vadd.f32 %v697_v44, %v4733_v32  ;;  %v811_v50 = vadd.f32 %v810_v47, %v4733_v32  ;;  %v1134_v52 = vmax.f32 %v694_v38, 0.0  ;;  %v1136_v58 = vmax.f32 %v807_v41, 0.0  ;;  %v4755_v34 = vpop.permute.xlu1 %494  ;;  %v4757_v35 = vpop.permute.xlu0 %489 }
 0x11a   : > { %v1141_v49 = vmax.f32 %v696_v42, 0.0  ;;  %v1143_v53 = vmax.f32 %v809_v45, 0.0 }
 0x11b   : > { %v1142_v54 = vmax.f32 %v698_v46, 0.0  ;;  %v1144_v62 = vmax.f32 %v811_v50, 0.0 }
 0x11c   : > { %v1245_v61 = vpack.c.bf16 %v1141_v49, %v1133_v48  ;;  %v1247_v63 = vpack.c.bf16 %v1143_v53, %v1135_v51 }
 0x11d   : > { %v1246_v0 = vpack.c.bf16 %v1142_v54, %v1134_v52  ;;  %v701_v1 = vpop.f32.mrb[20].mxu0  ;;  %v814_v2 = vpop.f32.mrb[20].mxu1  ;;  %v1248_v4 = vpack.c.bf16 %v1144_v62, %v1136_v58 }
 0x11e   : > { %v702_v5 = vadd.f32 %v701_v1, %v4745_v56  ;;  %v815_v6 = vadd.f32 %v814_v2, %v4745_v56  ;;  %v703_v7 = vpop.f32.mrb[21].mxu0  ;;  %v816_v8 = vpop.f32.mrb[21].mxu1 }
 0x11f   : > { %v704_v9 = vadd.f32 %v703_v7, %v4745_v56  ;;  %v817_v10 = vadd.f32 %v816_v8, %v4745_v56  ;;  %v705_v11 = vpop.f32.mrb[22].mxu0  ;;  %v818_v12 = vpop.f32.mrb[22].mxu1  ;;  %1429 = vmatprep.subr.bf16.mxu0 %v1246_v0  ;;  %1542 = vmatprep.subr.bf16.mxu1 %v1248_v4 }
 0x120   : > { %v706_v13 = vadd.f32 %v705_v11, %v4743_v55  ;;  %v819_v14 = vadd.f32 %v818_v12, %v4743_v55  ;;  %v707_v15 = vpop.f32.mrb[23].mxu0  ;;  %v820_v16 = vpop.f32.mrb[23].mxu1  ;;  %1430 = vmatpush1.bf16.msra.mxu0 %v1245_v61  ;;  %1543 = vmatpush1.bf16.msra.mxu1 %v1247_v63  ;;  %v1149_v20 = vmax.f32 %v702_v5, 0.0  ;;  %v1151_v21 = vmax.f32 %v815_v6, 0.0 }
 0x121   : > { %v708_v17 = vadd.f32 %v707_v15, %v4743_v55  ;;  %v821_v19 = vadd.f32 %v820_v16, %v4743_v55  ;;  %v1150_v24 = vmax.f32 %v704_v9, 0.0  ;;  %v1152_v27 = vmax.f32 %v817_v10, 0.0  ;;  %v4767_v6 = vpop.permute.xlu1 %504  ;;  %v4769_v7 = vpop.permute.xlu0 %499 }
 0x122   : > { %v1157_v22 = vmax.f32 %v706_v13, 0.0  ;;  %v1159_v23 = vmax.f32 %v819_v14, 0.0 }
 0x123   : > { %v1158_v31 = vmax.f32 %v708_v17, 0.0  ;;  %v1160_v33 = vmax.f32 %v821_v19, 0.0 }
 0x124   : > { %v1253_v36 = vpack.c.bf16 %v1157_v22, %v1149_v20  ;;  %v1255_v37 = vpack.c.bf16 %v1159_v23, %v1151_v21 }
 0x125   : > { %v1254_v38 = vpack.c.bf16 %v1158_v31, %v1150_v24  ;;  %v1256_v39 = vpack.c.bf16 %v1160_v33, %v1152_v27  ;;  %v711_v40 = vpop.f32.mrb[24].mxu0  ;;  %v824_v41 = vpop.f32.mrb[24].mxu1 }
 0x126   : > { %v712_v42 = vadd.f32 %v711_v40, %v4757_v35  ;;  %v825_v43 = vadd.f32 %v824_v41, %v4757_v35  ;;  %v713_v44 = vpop.f32.mrb[25].mxu0  ;;  %v826_v45 = vpop.f32.mrb[25].mxu1 }
 0x127   : > { %v714_v46 = vadd.f32 %v713_v44, %v4757_v35  ;;  %v827_v47 = vadd.f32 %v826_v45, %v4757_v35  ;;  %v715_v48 = vpop.f32.mrb[26].mxu0  ;;  %v828_v49 = vpop.f32.mrb[26].mxu1  ;;  %1431 = vmatprep.subr.bf16.mxu0 %v1254_v38  ;;  %1544 = vmatprep.subr.bf16.mxu1 %v1256_v39 }
 0x128   : > { %v716_v50 = vadd.f32 %v715_v48, %v4755_v34  ;;  %v829_v51 = vadd.f32 %v828_v49, %v4755_v34  ;;  %v717_v52 = vpop.f32.mrb[27].mxu0  ;;  %v830_v53 = vpop.f32.mrb[27].mxu1  ;;  %1432 = vmatpush1.bf16.msra.mxu0 %v1253_v36  ;;  %1545 = vmatpush1.bf16.msra.mxu1 %v1255_v37  ;;  %v1165_v61 = vmax.f32 %v712_v42, 0.0  ;;  %v1167_v62 = vmax.f32 %v825_v43, 0.0 }
 0x129   : > { %v718_v54 = vadd.f32 %v717_v52, %v4755_v34  ;;  %v831_v58 = vadd.f32 %v830_v53, %v4755_v34  ;;  %v1166_v1 = vmax.f32 %v714_v46, 0.0  ;;  %v1168_v2 = vmax.f32 %v827_v47, 0.0 }
 0x12a   : > { %v1173_v63 = vmax.f32 %v716_v50, 0.0  ;;  %v1175_v0 = vmax.f32 %v829_v51, 0.0 }
 0x12b   : > { %v1174_v4 = vmax.f32 %v718_v54, 0.0  ;;  %v1176_v5 = vmax.f32 %v831_v58, 0.0 }
 0x12c   : > { %v1261_v8 = vpack.c.bf16 %v1173_v63, %v1165_v61  ;;  %v1263_v9 = vpack.c.bf16 %v1175_v0, %v1167_v62  ;;  %v4786_v0 = vld [vmem:[%s5678_s3] sm:$0xff]  }
 0x12d   : > { %v1262_v10 = vpack.c.bf16 %v1174_v4, %v1166_v1  ;;  %v1264_v11 = vpack.c.bf16 %v1176_v5, %v1168_v2  ;;  %v721_v12 = vpop.f32.mrb[28].mxu0  ;;  %v834_v13 = vpop.f32.mrb[28].mxu1 }
 0x12e   : > { %v722_v14 = vadd.f32 %v721_v12, %v4769_v7  ;;  %v835_v15 = vadd.f32 %v834_v13, %v4769_v7  ;;  %v723_v16 = vpop.f32.mrb[29].mxu0  ;;  %v836_v17 = vpop.f32.mrb[29].mxu1 }
 0x12f   : > { %v724_v19 = vadd.f32 %v723_v16, %v4769_v7  ;;  %v837_v20 = vadd.f32 %v836_v17, %v4769_v7  ;;  %v725_v21 = vpop.f32.mrb[30].mxu0  ;;  %v838_v22 = vpop.f32.mrb[30].mxu1  ;;  %1433 = vmatprep.subr.bf16.mxu0 %v1262_v10  ;;  %1546 = vmatprep.subr.bf16.mxu1 %v1264_v11 }
 0x130   : > { %v726_v23 = vadd.f32 %v725_v21, %v4767_v6  ;;  %v839_v24 = vadd.f32 %v838_v22, %v4767_v6  ;;  %v727_v27 = vpop.f32.mrb[31].mxu0  ;;  %v840_v31 = vpop.f32.mrb[31].mxu1  ;;  %1434 = vmatpush1.bf16.msra.mxu0 %v1261_v8  ;;  %1547 = vmatpush1.bf16.msra.mxu1 %v1263_v9  ;;  %v1181_v37 = vmax.f32 %v722_v14, 0.0  ;;  %v1183_v38 = vmax.f32 %v835_v15, 0.0 }
 0x131   : > { %v728_v33 = vadd.f32 %v727_v27, %v4767_v6  ;;  %v841_v36 = vadd.f32 %v840_v31, %v4767_v6  ;;  %v1182_v41 = vmax.f32 %v724_v19, 0.0  ;;  %v1184_v42 = vmax.f32 %v837_v20, 0.0 }
 0x132   : > { %v1189_v39 = vmax.f32 %v726_v23, 0.0  ;;  %v1191_v40 = vmax.f32 %v839_v24, 0.0 }
 0x133   : > { %v1190_v43 = vmax.f32 %v728_v33, 0.0  ;;  %v1192_v44 = vmax.f32 %v841_v36, 0.0 }
 0x134   : > { %v1269_v45 = vpack.c.bf16 %v1189_v39, %v1181_v37  ;;  %v1271_v46 = vpack.c.bf16 %v1191_v40, %v1183_v38  ;;  %v4803_v39 = vld [vmem:[%s5678_s3 + $0x8] sm:$0xff]  }
 0x135   : > { %v1270_v47 = vpack.c.bf16 %v1190_v43, %v1182_v41  ;;  %v1272_v48 = vpack.c.bf16 %v1192_v44, %v1184_v42  ;;  %v877_v49 = vpop.f32.mrb[32].mxu0  ;;  %v990_v50 = vpop.f32.mrb[32].mxu1 }
 0x136   : > { %v878_v51 = vadd.f32 %v877_v49, %v4683_v28  ;;  %v991_v52 = vadd.f32 %v990_v50, %v4683_v28  ;;  %v879_v53 = vpop.f32.mrb[33].mxu0  ;;  %v992_v54 = vpop.f32.mrb[33].mxu1 }
 0x137   : > { %v880_v58 = vadd.f32 %v879_v53, %v4683_v28  ;;  %v993_v61 = vadd.f32 %v992_v54, %v4683_v28  ;;  %v881_v62 = vpop.f32.mrb[34].mxu0  ;;  %v994_v63 = vpop.f32.mrb[34].mxu1  ;;  %1435 = vmatprep.subr.bf16.mxu0 %v1270_v47  ;;  %1548 = vmatprep.subr.bf16.mxu1 %v1272_v48 }
 0x138   : > { %v882_v1 = vadd.f32 %v881_v62, %v4687_v30  ;;  %v995_v2 = vadd.f32 %v994_v63, %v4687_v30  ;;  %v883_v4 = vpop.f32.mrb[35].mxu0  ;;  %v996_v5 = vpop.f32.mrb[35].mxu1  ;;  %1436 = vmatpush1.bf16.msra.mxu0 %v1269_v45  ;;  %1549 = vmatpush1.bf16.msra.mxu1 %v1271_v46  ;;  %v1073_v9 = vmax.f32 %v878_v51, 0.0  ;;  %v1075_v10 = vmax.f32 %v991_v52, 0.0 }
 0x139   : > { %v884_v8 = vadd.f32 %v883_v4, %v4687_v30  ;;  %v997_v28 = vadd.f32 %v996_v5, %v4687_v30  ;;  %v1074_v13 = vmax.f32 %v880_v58, 0.0  ;;  %v1076_v14 = vmax.f32 %v993_v61, 0.0 }
 0x13a   : > { %v1081_v11 = vmax.f32 %v882_v1, 0.0  ;;  %v1083_v12 = vmax.f32 %v995_v2, 0.0 }
 0x13b   : > { %v1082_v15 = vmax.f32 %v884_v8, 0.0  ;;  %v1084_v16 = vmax.f32 %v997_v28, 0.0  ;;  %1454 = vmatmul.mubr.bf16.vlgmr.msra.gmra.mrb[64].mxu0 %v4786_v0  ;;  %1567 = vmatmul.mubr.bf16.vlgmr.msra.gmra.mrb[64].mxu1 %v4786_v0 }
 0x13c   : > { %v1217_v17 = vpack.c.bf16 %v1081_v11, %v1073_v9  ;;  %v1219_v19 = vpack.c.bf16 %v1083_v12, %v1075_v10  ;;  %1463 = vmatprep.mubr.bf16.mxu0 %v4225_v3  ;;  %1576 = vmatprep.mubr.bf16.mxu1 %v4225_v3  ;;  %v4820_v10 = vld [vmem:[%s5678_s3 + $0x10] sm:$0xff]  }
 0x13d   : > { %v1218_v20 = vpack.c.bf16 %v1082_v15, %v1074_v13  ;;  %v1220_v30 = vpack.c.bf16 %v1084_v16, %v1076_v14  ;;  %v887_v21 = vpop.f32.mrb[36].mxu0  ;;  %v1000_v22 = vpop.f32.mrb[36].mxu1 }
 0x13e   : > { %v888_v23 = vadd.f32 %v887_v21, %v4685_v29  ;;  %v1001_v24 = vadd.f32 %v1000_v22, %v4685_v29  ;;  %v889_v27 = vpop.f32.mrb[37].mxu0  ;;  %v1002_v31 = vpop.f32.mrb[37].mxu1 }
 0x13f   : > { %v890_v33 = vadd.f32 %v889_v27, %v4685_v29  ;;  %v1003_v36 = vadd.f32 %v1002_v31, %v4685_v29  ;;  %v891_v37 = vpop.f32.mrb[38].mxu0  ;;  %v1004_v38 = vpop.f32.mrb[38].mxu1  ;;  %1647 = vmatprep.subr.bf16.mxu0 %v1218_v20  ;;  %1760 = vmatprep.subr.bf16.mxu1 %v1220_v30 }
 0x140   : > { %v892_v40 = vadd.f32 %v891_v37, %v4697_v57  ;;  %v1005_v41 = vadd.f32 %v1004_v38, %v4697_v57  ;;  %v893_v42 = vpop.f32.mrb[39].mxu0  ;;  %v1006_v43 = vpop.f32.mrb[39].mxu1  ;;  %1648 = vmatpush1.bf16.msra.mxu0 %v1217_v17  ;;  %1761 = vmatpush1.bf16.msra.mxu1 %v1219_v19  ;;  %v1089_v45 = vmax.f32 %v888_v23, 0.0  ;;  %v1091_v46 = vmax.f32 %v1001_v24, 0.0 }
 0x141   : > { %v894_v44 = vadd.f32 %v893_v42, %v4697_v57  ;;  %v1007_v29 = vadd.f32 %v1006_v43, %v4697_v57  ;;  %v1090_v49 = vmax.f32 %v890_v33, 0.0  ;;  %v1092_v50 = vmax.f32 %v1003_v36, 0.0 }
 0x142   : > { %v1097_v47 = vmax.f32 %v892_v40, 0.0  ;;  %v1099_v48 = vmax.f32 %v1005_v41, 0.0 }
 0x143   : > { %v1098_v51 = vmax.f32 %v894_v44, 0.0  ;;  %v1100_v52 = vmax.f32 %v1007_v29, 0.0  ;;  %1464 = vmatmul.mubr.bf16.gmra.mrb[68].mxu0 %v4803_v39  ;;  %1577 = vmatmul.mubr.bf16.gmra.mrb[68].mxu1 %v4803_v39 }
 0x144   : > { %v1225_v53 = vpack.c.bf16 %v1097_v47, %v1089_v45  ;;  %v1227_v54 = vpack.c.bf16 %v1099_v48, %v1091_v46  ;;  %1473 = vmatprep.mubr.bf16.mxu0 %v4225_v3  ;;  %1586 = vmatprep.mubr.bf16.mxu1 %v4225_v3  ;;  %v4837_v45 = vld [vmem:[%s5678_s3 + $0x18] sm:$0xff]  }
 0x145   : > { %v1226_v58 = vpack.c.bf16 %v1098_v51, %v1090_v49  ;;  %v1228_v57 = vpack.c.bf16 %v1100_v52, %v1092_v50  ;;  %v897_v61 = vpop.f32.mrb[40].mxu0  ;;  %v1010_v62 = vpop.f32.mrb[40].mxu1 }
 0x146   : > { %v898_v63 = vadd.f32 %v897_v61, %v4709_v26  ;;  %v1011_v1 = vadd.f32 %v1010_v62, %v4709_v26  ;;  %v899_v2 = vpop.f32.mrb[41].mxu0  ;;  %v1012_v4 = vpop.f32.mrb[41].mxu1 }
 0x147   : > { %v900_v5 = vadd.f32 %v899_v2, %v4709_v26  ;;  %v1013_v8 = vadd.f32 %v1012_v4, %v4709_v26  ;;  %v901_v28 = vpop.f32.mrb[42].mxu0  ;;  %v1014_v9 = vpop.f32.mrb[42].mxu1  ;;  %1649 = vmatprep.subr.bf16.mxu0 %v1226_v58  ;;  %1762 = vmatprep.subr.bf16.mxu1 %v1228_v57 }
 0x148   : > { %v902_v11 = vadd.f32 %v901_v28, %v4707_v25  ;;  %v1015_v12 = vadd.f32 %v1014_v9, %v4707_v25  ;;  %v903_v13 = vpop.f32.mrb[43].mxu0  ;;  %v1016_v14 = vpop.f32.mrb[43].mxu1  ;;  %1650 = vmatpush1.bf16.msra.mxu0 %v1225_v53  ;;  %1763 = vmatpush1.bf16.msra.mxu1 %v1227_v54  ;;  %v1105_v16 = vmax.f32 %v898_v63, 0.0  ;;  %v1107_v17 = vmax.f32 %v1011_v1, 0.0 }
 0x149   : > { %v904_v15 = vadd.f32 %v903_v13, %v4707_v25  ;;  %v1017_v26 = vadd.f32 %v1016_v14, %v4707_v25  ;;  %v1106_v30 = vmax.f32 %v900_v5, 0.0  ;;  %v1108_v21 = vmax.f32 %v1013_v8, 0.0 }
 0x14a   : > { %v1113_v19 = vmax.f32 %v902_v11, 0.0  ;;  %v1115_v20 = vmax.f32 %v1015_v12, 0.0 }
 0x14b   : > { %v1114_v22 = vmax.f32 %v904_v15, 0.0  ;;  %v1116_v23 = vmax.f32 %v1017_v26, 0.0  ;;  %1474 = vmatmul.mubr.bf16.gmra.mrb[72].mxu0 %v4820_v10  ;;  %1587 = vmatmul.mubr.bf16.gmra.mrb[72].mxu1 %v4820_v10  ;;  %v4854_v26 = vld [vmem:[%s5678_s3 + $0x20] sm:$0xff]  }
 0x14c   : > { %v1233_v24 = vpack.c.bf16 %v1113_v19, %v1105_v16  ;;  %v1235_v27 = vpack.c.bf16 %v1115_v20, %v1107_v17  ;;  %1483 = vmatprep.mubr.bf16.mxu0 %v4225_v3  ;;  %1596 = vmatprep.mubr.bf16.mxu1 %v4225_v3 }
 0x14d   : > { %v1234_v31 = vpack.c.bf16 %v1114_v22, %v1106_v30  ;;  %v1236_v25 = vpack.c.bf16 %v1116_v23, %v1108_v21  ;;  %v907_v33 = vpop.f32.mrb[44].mxu0  ;;  %v1020_v36 = vpop.f32.mrb[44].mxu1 }
 0x14e   : > { %v908_v37 = vadd.f32 %v907_v33, %v4721_v60  ;;  %v1021_v38 = vadd.f32 %v1020_v36, %v4721_v60  ;;  %v909_v40 = vpop.f32.mrb[45].mxu0  ;;  %v1022_v41 = vpop.f32.mrb[45].mxu1 }
 0x14f   : > { %v910_v42 = vadd.f32 %v909_v40, %v4721_v60  ;;  %v1023_v43 = vadd.f32 %v1022_v41, %v4721_v60  ;;  %v911_v44 = vpop.f32.mrb[46].mxu0  ;;  %v1024_v29 = vpop.f32.mrb[46].mxu1  ;;  %1651 = vmatprep.subr.bf16.mxu0 %v1234_v31  ;;  %1764 = vmatprep.subr.bf16.mxu1 %v1236_v25 }
 0x150   : > { %v912_v46 = vadd.f32 %v911_v44, %v4719_v59  ;;  %v1025_v47 = vadd.f32 %v1024_v29, %v4719_v59  ;;  %v913_v48 = vpop.f32.mrb[47].mxu0  ;;  %v1026_v49 = vpop.f32.mrb[47].mxu1  ;;  %1652 = vmatpush1.bf16.msra.mxu0 %v1233_v24  ;;  %1765 = vmatpush1.bf16.msra.mxu1 %v1235_v27  ;;  %v1121_v51 = vmax.f32 %v908_v37, 0.0  ;;  %v1123_v52 = vmax.f32 %v1021_v38, 0.0 }
 0x151   : > { %v914_v50 = vadd.f32 %v913_v48, %v4719_v59  ;;  %v1027_v60 = vadd.f32 %v1026_v49, %v4719_v59  ;;  %v1122_v58 = vmax.f32 %v910_v42, 0.0  ;;  %v1124_v57 = vmax.f32 %v1023_v43, 0.0 }
 0x152   : > { %v1129_v53 = vmax.f32 %v912_v46, 0.0  ;;  %v1131_v54 = vmax.f32 %v1025_v47, 0.0 }
 0x153   : > { %v1130_v61 = vmax.f32 %v914_v50, 0.0  ;;  %v1132_v62 = vmax.f32 %v1027_v60, 0.0  ;;  %1484 = vmatmul.mubr.bf16.gmra.mrb[76].mxu0 %v4837_v45  ;;  %1597 = vmatmul.mubr.bf16.gmra.mrb[76].mxu1 %v4837_v45  ;;  %v4871_v50 = vld [vmem:[%s5678_s3 + $0x28] sm:$0xff]  }
 0x154   : > { %v1241_v63 = vpack.c.bf16 %v1129_v53, %v1121_v51  ;;  %v1243_v1 = vpack.c.bf16 %v1131_v54, %v1123_v52  ;;  %1493 = vmatprep.mubr.bf16.mxu0 %v4225_v3  ;;  %1606 = vmatprep.mubr.bf16.mxu1 %v4225_v3 }
 0x155   : > { %v1242_v2 = vpack.c.bf16 %v1130_v61, %v1122_v58  ;;  %v1244_v59 = vpack.c.bf16 %v1132_v62, %v1124_v57  ;;  %v917_v4 = vpop.f32.mrb[48].mxu0  ;;  %v1030_v5 = vpop.f32.mrb[48].mxu1 }
 0x156   : > { %v918_v8 = vadd.f32 %v917_v4, %v4731_v18  ;;  %v1031_v28 = vadd.f32 %v1030_v5, %v4731_v18  ;;  %v919_v9 = vpop.f32.mrb[49].mxu0  ;;  %v1032_v11 = vpop.f32.mrb[49].mxu1 }
 0x157   : > { %v920_v12 = vadd.f32 %v919_v9, %v4731_v18  ;;  %v1033_v13 = vadd.f32 %v1032_v11, %v4731_v18  ;;  %v921_v14 = vpop.f32.mrb[50].mxu0  ;;  %v1034_v15 = vpop.f32.mrb[50].mxu1  ;;  %1653 = vmatprep.subr.bf16.mxu0 %v1242_v2  ;;  %1766 = vmatprep.subr.bf16.mxu1 %v1244_v59 }
 0x158   : > { %v922_v16 = vadd.f32 %v921_v14, %v4733_v32  ;;  %v1035_v17 = vadd.f32 %v1034_v15, %v4733_v32  ;;  %v923_v19 = vpop.f32.mrb[51].mxu0  ;;  %v1036_v20 = vpop.f32.mrb[51].mxu1  ;;  %1654 = vmatpush1.bf16.msra.mxu0 %v1241_v63  ;;  %1767 = vmatpush1.bf16.msra.mxu1 %v1243_v1  ;;  %v1137_v21 = vmax.f32 %v918_v8, 0.0  ;;  %v1139_v22 = vmax.f32 %v1031_v28, 0.0 }
 0x159   : > { %v924_v30 = vadd.f32 %v923_v19, %v4733_v32  ;;  %v1037_v18 = vadd.f32 %v1036_v20, %v4733_v32  ;;  %v1138_v27 = vmax.f32 %v920_v12, 0.0  ;;  %v1140_v31 = vmax.f32 %v1033_v13, 0.0  ;;  %v4888_v20 = vld [vmem:[%s5678_s3 + $0x30] sm:$0xff]  }
 0x15a   : > { %v1145_v23 = vmax.f32 %v922_v16, 0.0  ;;  %v1147_v24 = vmax.f32 %v1035_v17, 0.0 }
 0x15b   : > { %v1146_v25 = vmax.f32 %v924_v30, 0.0  ;;  %v1148_v33 = vmax.f32 %v1037_v18, 0.0  ;;  %1494 = vmatmul.mubr.bf16.gmra.mrb[80].mxu0 %v4854_v26  ;;  %1607 = vmatmul.mubr.bf16.gmra.mrb[80].mxu1 %v4854_v26 }
 0x15c   : > { %v1249_v36 = vpack.c.bf16 %v1145_v23, %v1137_v21  ;;  %v1251_v37 = vpack.c.bf16 %v1147_v24, %v1139_v22  ;;  %1503 = vmatprep.mubr.bf16.mxu0 %v4225_v3  ;;  %1616 = vmatprep.mubr.bf16.mxu1 %v4225_v3 }
 0x15d   : > { %v1250_v38 = vpack.c.bf16 %v1146_v25, %v1138_v27  ;;  %v1252_v32 = vpack.c.bf16 %v1148_v33, %v1140_v31  ;;  %v927_v40 = vpop.f32.mrb[52].mxu0  ;;  %v1040_v41 = vpop.f32.mrb[52].mxu1 }
 0x15e   : > { %v928_v42 = vadd.f32 %v927_v40, %v4745_v56  ;;  %v1041_v43 = vadd.f32 %v1040_v41, %v4745_v56  ;;  %v929_v44 = vpop.f32.mrb[53].mxu0  ;;  %v1042_v29 = vpop.f32.mrb[53].mxu1 }
 0x15f   : > { %v930_v46 = vadd.f32 %v929_v44, %v4745_v56  ;;  %v1043_v47 = vadd.f32 %v1042_v29, %v4745_v56  ;;  %v931_v48 = vpop.f32.mrb[54].mxu0  ;;  %v1044_v49 = vpop.f32.mrb[54].mxu1  ;;  %1655 = vmatprep.subr.bf16.mxu0 %v1250_v38  ;;  %1768 = vmatprep.subr.bf16.mxu1 %v1252_v32 }
 0x160   : > { %v932_v60 = vadd.f32 %v931_v48, %v4743_v55  ;;  %v1045_v51 = vadd.f32 %v1044_v49, %v4743_v55  ;;  %v933_v52 = vpop.f32.mrb[55].mxu0  ;;  %v1046_v53 = vpop.f32.mrb[55].mxu1  ;;  %1656 = vmatpush1.bf16.msra.mxu0 %v1249_v36  ;;  %1769 = vmatpush1.bf16.msra.mxu1 %v1251_v37  ;;  %v1153_v58 = vmax.f32 %v928_v42, 0.0  ;;  %v1155_v57 = vmax.f32 %v1041_v43, 0.0 }
 0x161   : > { %v934_v54 = vadd.f32 %v933_v52, %v4743_v55  ;;  %v1047_v56 = vadd.f32 %v1046_v53, %v4743_v55  ;;  %v1154_v63 = vmax.f32 %v930_v46, 0.0  ;;  %v1156_v1 = vmax.f32 %v1043_v47, 0.0  ;;  %v4144_v52 = vld [vmem:[%s5678_s3 + $0x38] sm:$0xff]  }
 0x162   : > { %v1161_v61 = vmax.f32 %v932_v60, 0.0  ;;  %v1163_v62 = vmax.f32 %v1045_v51, 0.0 }
 0x163   : > { %v1162_v2 = vmax.f32 %v934_v54, 0.0  ;;  %v1164_v59 = vmax.f32 %v1047_v56, 0.0  ;;  %1504 = vmatmul.mubr.bf16.gmra.mrb[84].mxu0 %v4871_v50  ;;  %1617 = vmatmul.mubr.bf16.gmra.mrb[84].mxu1 %v4871_v50 }
 0x164   : > { %v1257_v4 = vpack.c.bf16 %v1161_v61, %v1153_v58  ;;  %v1259_v5 = vpack.c.bf16 %v1163_v62, %v1155_v57  ;;  %1513 = vmatprep.mubr.bf16.mxu0 %v4225_v3  ;;  %1626 = vmatprep.mubr.bf16.mxu1 %v4225_v3 }
 0x165   : > { %v1258_v8 = vpack.c.bf16 %v1162_v2, %v1154_v63  ;;  %v1260_v55 = vpack.c.bf16 %v1164_v59, %v1156_v1  ;;  %v937_v28 = vpop.f32.mrb[56].mxu0  ;;  %v1050_v9 = vpop.f32.mrb[56].mxu1 }
 0x166   : > { %v938_v11 = vadd.f32 %v937_v28, %v4757_v35  ;;  %v1051_v12 = vadd.f32 %v1050_v9, %v4757_v35  ;;  %v939_v13 = vpop.f32.mrb[57].mxu0  ;;  %v1052_v14 = vpop.f32.mrb[57].mxu1 }
 0x167   : > { %v940_v15 = vadd.f32 %v939_v13, %v4757_v35  ;;  %v1053_v16 = vadd.f32 %v1052_v14, %v4757_v35  ;;  %v941_v17 = vpop.f32.mrb[58].mxu0  ;;  %v1054_v19 = vpop.f32.mrb[58].mxu1  ;;  %1657 = vmatprep.subr.bf16.mxu0 %v1258_v8  ;;  %1770 = vmatprep.subr.bf16.mxu1 %v1260_v55 }
 0x168   : > { %v942_v30 = vadd.f32 %v941_v17, %v4755_v34  ;;  %v1055_v18 = vadd.f32 %v1054_v19, %v4755_v34  ;;  %v943_v21 = vpop.f32.mrb[59].mxu0  ;;  %v1056_v22 = vpop.f32.mrb[59].mxu1  ;;  %1658 = vmatpush1.bf16.msra.mxu0 %v1257_v4  ;;  %1771 = vmatpush1.bf16.msra.mxu1 %v1259_v5  ;;  %v1169_v24 = vmax.f32 %v938_v11, 0.0  ;;  %v1171_v27 = vmax.f32 %v1051_v12, 0.0 }
 0x169   : > { %v944_v23 = vadd.f32 %v943_v21, %v4755_v34  ;;  %v1057_v35 = vadd.f32 %v1056_v22, %v4755_v34  ;;  %v1170_v33 = vmax.f32 %v940_v15, 0.0  ;;  %v1172_v36 = vmax.f32 %v1053_v16, 0.0 }
 0x16a   : > { %v1177_v31 = vmax.f32 %v942_v30, 0.0  ;;  %v1179_v25 = vmax.f32 %v1055_v18, 0.0 }
 0x16b   : > { %v1178_v37 = vmax.f32 %v944_v23, 0.0  ;;  %v1180_v38 = vmax.f32 %v1057_v35, 0.0  ;;  %1514 = vmatmul.mubr.bf16.gmra.mrb[88].mxu0 %v4888_v20  ;;  %1627 = vmatmul.mubr.bf16.gmra.mrb[88].mxu1 %v4888_v20 }
 0x16c   : > { %v1265_v32 = vpack.c.bf16 %v1177_v31, %v1169_v24  ;;  %v1267_v40 = vpack.c.bf16 %v1179_v25, %v1171_v27  ;;  %1523 = vmatprep.mubr.bf16.mxu0 %v4225_v3  ;;  %1636 = vmatprep.mubr.bf16.mxu1 %v4225_v3 }
 0x16d   : > { %v1266_v41 = vpack.c.bf16 %v1178_v37, %v1170_v33  ;;  %v1268_v34 = vpack.c.bf16 %v1180_v38, %v1172_v36  ;;  %v947_v42 = vpop.f32.mrb[60].mxu0  ;;  %v1060_v43 = vpop.f32.mrb[60].mxu1 }
 0x16e   : > { %v948_v44 = vadd.f32 %v947_v42, %v4769_v7  ;;  %v1061_v29 = vadd.f32 %v1060_v43, %v4769_v7  ;;  %v949_v46 = vpop.f32.mrb[61].mxu0  ;;  %v1062_v47 = vpop.f32.mrb[61].mxu1 }
 0x16f   : > { %v950_v48 = vadd.f32 %v949_v46, %v4769_v7  ;;  %v1063_v49 = vadd.f32 %v1062_v47, %v4769_v7  ;;  %v951_v60 = vpop.f32.mrb[62].mxu0  ;;  %v1064_v51 = vpop.f32.mrb[62].mxu1  ;;  %1659 = vmatprep.subr.bf16.mxu0 %v1266_v41  ;;  %1772 = vmatprep.subr.bf16.mxu1 %v1268_v34 }
 0x170   : > { %v952_v53 = vadd.f32 %v951_v60, %v4767_v6  ;;  %v1065_v54 = vadd.f32 %v1064_v51, %v4767_v6  ;;  %v953_v56 = vpop.f32.mrb[63].mxu0  ;;  %v1066_v58 = vpop.f32.mrb[63].mxu1  ;;  %1660 = vmatpush1.bf16.msra.mxu0 %v1265_v32  ;;  %1773 = vmatpush1.bf16.msra.mxu1 %v1267_v40  ;;  %v1185_v61 = vmax.f32 %v948_v44, 0.0  ;;  %v1187_v62 = vmax.f32 %v1061_v29, 0.0 }
 0x171   : > { %v954_v57 = vadd.f32 %v953_v56, %v4767_v6  ;;  %v1067_v7 = vadd.f32 %v1066_v58, %v4767_v6  ;;  %v1186_v2 = vmax.f32 %v950_v48, 0.0  ;;  %v1188_v59 = vmax.f32 %v1063_v49, 0.0  ;;  %v4941_v6 = vpop.permute.xlu1 %1300 }
 0x172   : > { %v1193_v63 = vmax.f32 %v952_v53, 0.0  ;;  %v1195_v1 = vmax.f32 %v1065_v54, 0.0 }
 0x173   : > { %v1194_v4 = vmax.f32 %v954_v57, 0.0  ;;  %v1196_v5 = vmax.f32 %v1067_v7, 0.0  ;;  %1524 = vmatmul.mubr.bf16.gmra.mrb[92].mxu0 %v4144_v52  ;;  %1637 = vmatmul.mubr.bf16.gmra.mrb[92].mxu1 %v4144_v52 }
 0x174   : > { %v1273_v8 = vpack.c.bf16 %v1193_v63, %v1185_v61  ;;  %v1275_v55 = vpack.c.bf16 %v1195_v1, %v1187_v62  ;;  %1679 = vmatprep.mubr.bf16.mxu0 %v4225_v3  ;;  %1792 = vmatprep.mubr.bf16.mxu1 %v4225_v3 }
 0x175   : > { %v1274_v28 = vpack.c.bf16 %v1194_v4, %v1186_v2  ;;  %v1276_v9 = vpack.c.bf16 %v1196_v5, %v1188_v59  ;;  %v4953_v33 = vpop.permute.xlu1 %1310 }
 0x177   : > { %1661 = vmatprep.subr.bf16.mxu0 %v1274_v28  ;;  %1774 = vmatprep.subr.bf16.mxu1 %v1276_v9 }
 0x178   : > { %1662 = vmatpush1.bf16.msra.mxu0 %v1273_v8  ;;  %1775 = vmatpush1.bf16.msra.mxu1 %v1275_v55 }
 0x179   : > { %v4965_v59 = vpop.permute.xlu1 %1320 }
 0x17b   : > { %1680 = vmatmul.mubr.bf16.vlgmr.msra.gmra.mrb[96].mxu0 %v4786_v0  ;;  %1793 = vmatmul.mubr.bf16.vlgmr.msra.gmra.mrb[96].mxu1 %v4786_v0  ;;  %v4943_v0 = vpop.permute.xlu0 %1295 }
 0x17c   : > { %1689 = vmatprep.mubr.bf16.mxu0 %v4225_v3  ;;  %1802 = vmatprep.mubr.bf16.mxu1 %v4225_v3 }
 0x17f   : > { %v4955_v36 = vpop.permute.xlu0 %1305 }
 0x183   : > { %1690 = vmatmul.mubr.bf16.gmra.mrb[100].mxu0 %v4803_v39  ;;  %1803 = vmatmul.mubr.bf16.gmra.mrb[100].mxu1 %v4803_v39  ;;  %v4967_v4 = vpop.permute.xlu0 %1315 }
 0x184   : > { %1699 = vmatprep.mubr.bf16.mxu0 %v4225_v3  ;;  %1812 = vmatprep.mubr.bf16.mxu1 %v4225_v3 }
 0x18b   : > { %1700 = vmatmul.mubr.bf16.gmra.mrb[104].mxu0 %v4820_v10  ;;  %1813 = vmatmul.mubr.bf16.gmra.mrb[104].mxu1 %v4820_v10 }
 0x18c   : > { %1709 = vmatprep.mubr.bf16.mxu0 %v4225_v3  ;;  %1822 = vmatprep.mubr.bf16.mxu1 %v4225_v3 }
 0x193   : > { %1710 = vmatmul.mubr.bf16.gmra.mrb[108].mxu0 %v4837_v45  ;;  %1823 = vmatmul.mubr.bf16.gmra.mrb[108].mxu1 %v4837_v45 }
 0x194   : > { %1719 = vmatprep.mubr.bf16.mxu0 %v4225_v3  ;;  %1832 = vmatprep.mubr.bf16.mxu1 %v4225_v3 }
 0x19b   : > { %1720 = vmatmul.mubr.bf16.gmra.mrb[112].mxu0 %v4854_v26  ;;  %1833 = vmatmul.mubr.bf16.gmra.mrb[112].mxu1 %v4854_v26 }
 0x19c   : > { %1729 = vmatprep.mubr.bf16.mxu0 %v4225_v3  ;;  %1842 = vmatprep.mubr.bf16.mxu1 %v4225_v3 }
 0x1a3   : > { %1730 = vmatmul.mubr.bf16.gmra.mrb[116].mxu0 %v4871_v50  ;;  %1843 = vmatmul.mubr.bf16.gmra.mrb[116].mxu1 %v4871_v50 }
 0x1a4   : > { %1739 = vmatprep.mubr.bf16.mxu0 %v4225_v3  ;;  %1852 = vmatprep.mubr.bf16.mxu1 %v4225_v3 }
 0x1ab   : > { %1740 = vmatmul.mubr.bf16.gmra.mrb[120].mxu0 %v4888_v20  ;;  %1853 = vmatmul.mubr.bf16.gmra.mrb[120].mxu1 %v4888_v20 }
 0x1ac   : > { %1749 = vmatprep.mubr.bf16.mxu0 %v4225_v3  ;;  %1862 = vmatprep.mubr.bf16.mxu1 %v4225_v3 }
 0x1b3   : > { %1750 = vmatmul.mubr.bf16.gmra.mrb[124].mxu0 %v4144_v52  ;;  %1863 = vmatmul.mubr.bf16.gmra.mrb[124].mxu1 %v4144_v52 }
 0x1b4   : > { %2257 = vmatprep.mubr.bf16.mxu0 %v4225_v3  ;;  %2370 = vmatprep.mubr.bf16.mxu1 %v4225_v3 }
 0x20e   : > { %v1455_v39 = vpop.f32.mrb[64].mxu0  ;;  %v1568_v10 = vpop.f32.mrb[64].mxu1 }
 0x20f   : > { %v1456_v45 = vadd.f32 %v1455_v39, %v4943_v0  ;;  %v1569_v26 = vadd.f32 %v1568_v10, %v4943_v0  ;;  %v1457_v50 = vpop.f32.mrb[65].mxu0  ;;  %v1570_v11 = vpop.f32.mrb[65].mxu1 }
 0x210   : > { %v1458_v12 = vadd.f32 %v1457_v50, %v4943_v0  ;;  %v1571_v13 = vadd.f32 %v1570_v11, %v4943_v0  ;;  %v1459_v14 = vpop.f32.mrb[66].mxu0  ;;  %v1572_v15 = vpop.f32.mrb[66].mxu1 }
 0x211   : > { %v1460_v16 = vadd.f32 %v1459_v14, %v4941_v6  ;;  %v1573_v17 = vadd.f32 %v1572_v15, %v4941_v6  ;;  %v1461_v19 = vpop.f32.mrb[67].mxu0  ;;  %v1574_v20 = vpop.f32.mrb[67].mxu1  ;;  %v1873_v21 = vmax.f32 %v1456_v45, 0.0  ;;  %v1875_v22 = vmax.f32 %v1569_v26, 0.0 }
 0x212   : > { %v1462_v30 = vadd.f32 %v1461_v19, %v4941_v6  ;;  %v1575_v18 = vadd.f32 %v1574_v20, %v4941_v6  ;;  %v1874_v24 = vmax.f32 %v1458_v12, 0.0  ;;  %v1876_v27 = vmax.f32 %v1571_v13, 0.0 }
 0x213   : > { %v1881_v23 = vmax.f32 %v1460_v16, 0.0  ;;  %v1883_v35 = vmax.f32 %v1573_v17, 0.0 }
 0x214   : > { %v1882_v31 = vmax.f32 %v1462_v30, 0.0  ;;  %v1884_v25 = vmax.f32 %v1575_v18, 0.0 }
 0x215   : > { %v2017_v37 = vpack.c.bf16 %v1881_v23, %v1873_v21  ;;  %v2019_v38 = vpack.c.bf16 %v1883_v35, %v1875_v22 }
 0x216   : > { %v2018_v32 = vpack.c.bf16 %v1882_v31, %v1874_v24  ;;  %v2020_v40 = vpack.c.bf16 %v1884_v25, %v1876_v27  ;;  %v1465_v41 = vpop.f32.mrb[68].mxu0  ;;  %v1578_v34 = vpop.f32.mrb[68].mxu1 }
 0x217   : > { %v1466_v42 = vadd.f32 %v1465_v41, %v4955_v36  ;;  %v1579_v43 = vadd.f32 %v1578_v34, %v4955_v36  ;;  %v1467_v44 = vpop.f32.mrb[69].mxu0  ;;  %v1580_v29 = vpop.f32.mrb[69].mxu1 }
 0x218   : > { %v1468_v46 = vadd.f32 %v1467_v44, %v4955_v36  ;;  %v1581_v47 = vadd.f32 %v1580_v29, %v4955_v36  ;;  %v1469_v48 = vpop.f32.mrb[70].mxu0  ;;  %v1582_v49 = vpop.f32.mrb[70].mxu1  ;;  %2225 = vmatprep.subr.bf16.mxu0 %v2018_v32  ;;  %2338 = vmatprep.subr.bf16.mxu1 %v2020_v40 }
 0x219   : > { %v1470_v60 = vadd.f32 %v1469_v48, %v4953_v33  ;;  %v1583_v51 = vadd.f32 %v1582_v49, %v4953_v33  ;;  %v1471_v52 = vpop.f32.mrb[71].mxu0  ;;  %v1584_v53 = vpop.f32.mrb[71].mxu1  ;;  %2226 = vmatpush1.bf16.msra.mxu0 %v2017_v37  ;;  %2339 = vmatpush1.bf16.msra.mxu1 %v2019_v38  ;;  %v1889_v58 = vmax.f32 %v1466_v42, 0.0  ;;  %v1891_v57 = vmax.f32 %v1579_v43, 0.0 }
 0x21a   : > { %v1472_v54 = vadd.f32 %v1471_v52, %v4953_v33  ;;  %v1585_v56 = vadd.f32 %v1584_v53, %v4953_v33  ;;  %v1890_v62 = vmax.f32 %v1468_v46, 0.0  ;;  %v1892_v63 = vmax.f32 %v1581_v47, 0.0  ;;  %v4977_v25 = vpop.permute.xlu1 %1330  ;;  %v4979_v37 = vpop.permute.xlu0 %1325 }
 0x21b   : > { %v1897_v7 = vmax.f32 %v1470_v60, 0.0  ;;  %v1899_v61 = vmax.f32 %v1583_v51, 0.0 }
 0x21c   : > { %v1898_v1 = vmax.f32 %v1472_v54, 0.0  ;;  %v1900_v2 = vmax.f32 %v1585_v56, 0.0 }
 0x21d   : > { %v2025_v5 = vpack.c.bf16 %v1897_v7, %v1889_v58  ;;  %v2027_v8 = vpack.c.bf16 %v1899_v61, %v1891_v57 }
 0x21e   : > { %v2026_v55 = vpack.c.bf16 %v1898_v1, %v1890_v62  ;;  %v2028_v28 = vpack.c.bf16 %v1900_v2, %v1892_v63  ;;  %v1475_v9 = vpop.f32.mrb[72].mxu0  ;;  %v1588_v39 = vpop.f32.mrb[72].mxu1 }
 0x21f   : > { %v1476_v10 = vadd.f32 %v1475_v9, %v4967_v4  ;;  %v1589_v45 = vadd.f32 %v1588_v39, %v4967_v4  ;;  %v1477_v26 = vpop.f32.mrb[73].mxu0  ;;  %v1590_v50 = vpop.f32.mrb[73].mxu1 }
 0x220   : > { %v1478_v11 = vadd.f32 %v1477_v26, %v4967_v4  ;;  %v1591_v12 = vadd.f32 %v1590_v50, %v4967_v4  ;;  %v1479_v13 = vpop.f32.mrb[74].mxu0  ;;  %v1592_v14 = vpop.f32.mrb[74].mxu1  ;;  %2227 = vmatprep.subr.bf16.mxu0 %v2026_v55  ;;  %2340 = vmatprep.subr.bf16.mxu1 %v2028_v28 }
 0x221   : > { %v1480_v15 = vadd.f32 %v1479_v13, %v4965_v59  ;;  %v1593_v16 = vadd.f32 %v1592_v14, %v4965_v59  ;;  %v1481_v17 = vpop.f32.mrb[75].mxu0  ;;  %v1594_v19 = vpop.f32.mrb[75].mxu1  ;;  %2228 = vmatpush1.bf16.msra.mxu0 %v2025_v5  ;;  %2341 = vmatpush1.bf16.msra.mxu1 %v2027_v8  ;;  %v1905_v18 = vmax.f32 %v1476_v10, 0.0  ;;  %v1907_v21 = vmax.f32 %v1589_v45, 0.0 }
 0x222   : > { %v1482_v20 = vadd.f32 %v1481_v17, %v4965_v59  ;;  %v1595_v30 = vadd.f32 %v1594_v19, %v4965_v59  ;;  %v1906_v35 = vmax.f32 %v1478_v11, 0.0  ;;  %v1908_v24 = vmax.f32 %v1591_v12, 0.0  ;;  %v4989_v8 = vpop.permute.xlu1 %1340  ;;  %v4991_v55 = vpop.permute.xlu0 %1335 }
 0x223   : > { %v1913_v22 = vmax.f32 %v1480_v15, 0.0  ;;  %v1915_v23 = vmax.f32 %v1593_v16, 0.0 }
 0x224   : > { %v1914_v27 = vmax.f32 %v1482_v20, 0.0  ;;  %v1916_v31 = vmax.f32 %v1595_v30, 0.0 }
 0x225   : > { %v2033_v38 = vpack.c.bf16 %v1913_v22, %v1905_v18  ;;  %v2035_v32 = vpack.c.bf16 %v1915_v23, %v1907_v21 }
 0x226   : > { %v2034_v40 = vpack.c.bf16 %v1914_v27, %v1906_v35  ;;  %v2036_v41 = vpack.c.bf16 %v1916_v31, %v1908_v24  ;;  %v1485_v34 = vpop.f32.mrb[76].mxu0  ;;  %v1598_v42 = vpop.f32.mrb[76].mxu1 }
 0x227   : > { %v1486_v43 = vadd.f32 %v1485_v34, %v4979_v37  ;;  %v1599_v44 = vadd.f32 %v1598_v42, %v4979_v37  ;;  %v1487_v29 = vpop.f32.mrb[77].mxu0  ;;  %v1600_v46 = vpop.f32.mrb[77].mxu1 }
 0x228   : > { %v1488_v47 = vadd.f32 %v1487_v29, %v4979_v37  ;;  %v1601_v48 = vadd.f32 %v1600_v46, %v4979_v37  ;;  %v1489_v49 = vpop.f32.mrb[78].mxu0  ;;  %v1602_v60 = vpop.f32.mrb[78].mxu1  ;;  %2229 = vmatprep.subr.bf16.mxu0 %v2034_v40  ;;  %2342 = vmatprep.subr.bf16.mxu1 %v2036_v41 }
 0x229   : > { %v1490_v51 = vadd.f32 %v1489_v49, %v4977_v25  ;;  %v1603_v52 = vadd.f32 %v1602_v60, %v4977_v25  ;;  %v1491_v53 = vpop.f32.mrb[79].mxu0  ;;  %v1604_v54 = vpop.f32.mrb[79].mxu1  ;;  %2230 = vmatpush1.bf16.msra.mxu0 %v2033_v38  ;;  %2343 = vmatpush1.bf16.msra.mxu1 %v2035_v32  ;;  %v1921_v57 = vmax.f32 %v1486_v43, 0.0  ;;  %v1923_v7 = vmax.f32 %v1599_v44, 0.0 }
 0x22a   : > { %v1492_v56 = vadd.f32 %v1491_v53, %v4977_v25  ;;  %v1605_v58 = vadd.f32 %v1604_v54, %v4977_v25  ;;  %v1922_v63 = vmax.f32 %v1488_v47, 0.0  ;;  %v1924_v1 = vmax.f32 %v1601_v48, 0.0  ;;  %v5001_v41 = vpop.permute.xlu1 %1350  ;;  %v5003_v34 = vpop.permute.xlu0 %1345 }
 0x22b   : > { %v1929_v61 = vmax.f32 %v1490_v51, 0.0  ;;  %v1931_v62 = vmax.f32 %v1603_v52, 0.0 }
 0x22c   : > { %v1930_v2 = vmax.f32 %v1492_v56, 0.0  ;;  %v1932_v5 = vmax.f32 %v1605_v58, 0.0 }
 0x22d   : > { %v2041_v28 = vpack.c.bf16 %v1929_v61, %v1921_v57  ;;  %v2043_v9 = vpack.c.bf16 %v1931_v62, %v1923_v7 }
 0x22e   : > { %v2042_v39 = vpack.c.bf16 %v1930_v2, %v1922_v63  ;;  %v2044_v10 = vpack.c.bf16 %v1932_v5, %v1924_v1  ;;  %v1495_v45 = vpop.f32.mrb[80].mxu0  ;;  %v1608_v26 = vpop.f32.mrb[80].mxu1 }
 0x22f   : > { %v1496_v50 = vadd.f32 %v1495_v45, %v4991_v55  ;;  %v1609_v11 = vadd.f32 %v1608_v26, %v4991_v55  ;;  %v1497_v12 = vpop.f32.mrb[81].mxu0  ;;  %v1610_v13 = vpop.f32.mrb[81].mxu1 }
 0x230   : > { %v1498_v14 = vadd.f32 %v1497_v12, %v4991_v55  ;;  %v1611_v15 = vadd.f32 %v1610_v13, %v4991_v55  ;;  %v1499_v16 = vpop.f32.mrb[82].mxu0  ;;  %v1612_v17 = vpop.f32.mrb[82].mxu1  ;;  %2231 = vmatprep.subr.bf16.mxu0 %v2042_v39  ;;  %2344 = vmatprep.subr.bf16.mxu1 %v2044_v10 }
 0x231   : > { %v1500_v19 = vadd.f32 %v1499_v16, %v4989_v8  ;;  %v1613_v20 = vadd.f32 %v1612_v17, %v4989_v8  ;;  %v1501_v30 = vpop.f32.mrb[83].mxu0  ;;  %v1614_v18 = vpop.f32.mrb[83].mxu1  ;;  %2232 = vmatpush1.bf16.msra.mxu0 %v2041_v28  ;;  %2345 = vmatpush1.bf16.msra.mxu1 %v2043_v9  ;;  %v1937_v23 = vmax.f32 %v1496_v50, 0.0  ;;  %v1939_v35 = vmax.f32 %v1609_v11, 0.0 }
 0x232   : > { %v1502_v21 = vadd.f32 %v1501_v30, %v4989_v8  ;;  %v1615_v22 = vadd.f32 %v1614_v18, %v4989_v8  ;;  %v1938_v31 = vmax.f32 %v1498_v14, 0.0  ;;  %v1940_v38 = vmax.f32 %v1611_v15, 0.0  ;;  %v5013_v26 = vpop.permute.xlu1 %1360  ;;  %v5015_v50 = vpop.permute.xlu0 %1355 }
 0x233   : > { %v1945_v24 = vmax.f32 %v1500_v19, 0.0  ;;  %v1947_v27 = vmax.f32 %v1613_v20, 0.0 }
 0x234   : > { %v1946_v32 = vmax.f32 %v1502_v21, 0.0  ;;  %v1948_v40 = vmax.f32 %v1615_v22, 0.0 }
 0x235   : > { %v2049_v42 = vpack.c.bf16 %v1945_v24, %v1937_v23  ;;  %v2051_v43 = vpack.c.bf16 %v1947_v27, %v1939_v35 }
 0x236   : > { %v2050_v44 = vpack.c.bf16 %v1946_v32, %v1938_v31  ;;  %v2052_v29 = vpack.c.bf16 %v1948_v40, %v1940_v38  ;;  %v1505_v46 = vpop.f32.mrb[84].mxu0  ;;  %v1618_v47 = vpop.f32.mrb[84].mxu1 }
 0x237   : > { %v1506_v48 = vadd.f32 %v1505_v46, %v5003_v34  ;;  %v1619_v49 = vadd.f32 %v1618_v47, %v5003_v34  ;;  %v1507_v60 = vpop.f32.mrb[85].mxu0  ;;  %v1620_v51 = vpop.f32.mrb[85].mxu1 }
 0x238   : > { %v1508_v52 = vadd.f32 %v1507_v60, %v5003_v34  ;;  %v1621_v53 = vadd.f32 %v1620_v51, %v5003_v34  ;;  %v1509_v54 = vpop.f32.mrb[86].mxu0  ;;  %v1622_v56 = vpop.f32.mrb[86].mxu1  ;;  %2233 = vmatprep.subr.bf16.mxu0 %v2050_v44  ;;  %2346 = vmatprep.subr.bf16.mxu1 %v2052_v29 }
 0x239   : > { %v1510_v58 = vadd.f32 %v1509_v54, %v5001_v41  ;;  %v1623_v57 = vadd.f32 %v1622_v56, %v5001_v41  ;;  %v1511_v7 = vpop.f32.mrb[87].mxu0  ;;  %v1624_v61 = vpop.f32.mrb[87].mxu1  ;;  %2234 = vmatpush1.bf16.msra.mxu0 %v2049_v42  ;;  %2347 = vmatpush1.bf16.msra.mxu1 %v2051_v43  ;;  %v1953_v1 = vmax.f32 %v1506_v48, 0.0  ;;  %v1955_v2 = vmax.f32 %v1619_v49, 0.0 }
 0x23a   : > { %v1512_v62 = vadd.f32 %v1511_v7, %v5001_v41  ;;  %v1625_v63 = vadd.f32 %v1624_v61, %v5001_v41  ;;  %v1954_v9 = vmax.f32 %v1508_v52, 0.0  ;;  %v1956_v39 = vmax.f32 %v1621_v53, 0.0  ;;  %v5025_v49 = vpop.permute.xlu1 %1370  ;;  %v5027_v60 = vpop.permute.xlu0 %1365 }
 0x23b   : > { %v1961_v5 = vmax.f32 %v1510_v58, 0.0  ;;  %v1963_v28 = vmax.f32 %v1623_v57, 0.0 }
 0x23c   : > { %v1962_v10 = vmax.f32 %v1512_v62, 0.0  ;;  %v1964_v45 = vmax.f32 %v1625_v63, 0.0 }
 0x23d   : > { %v2057_v11 = vpack.c.bf16 %v1961_v5, %v1953_v1  ;;  %v2059_v12 = vpack.c.bf16 %v1963_v28, %v1955_v2 }
 0x23e   : > { %v2058_v13 = vpack.c.bf16 %v1962_v10, %v1954_v9  ;;  %v2060_v14 = vpack.c.bf16 %v1964_v45, %v1956_v39  ;;  %v1515_v15 = vpop.f32.mrb[88].mxu0  ;;  %v1628_v16 = vpop.f32.mrb[88].mxu1 }
 0x23f   : > { %v1516_v17 = vadd.f32 %v1515_v15, %v5015_v50  ;;  %v1629_v19 = vadd.f32 %v1628_v16, %v5015_v50  ;;  %v1517_v20 = vpop.f32.mrb[89].mxu0  ;;  %v1630_v30 = vpop.f32.mrb[89].mxu1 }
 0x240   : > { %v1518_v18 = vadd.f32 %v1517_v20, %v5015_v50  ;;  %v1631_v21 = vadd.f32 %v1630_v30, %v5015_v50  ;;  %v1519_v22 = vpop.f32.mrb[90].mxu0  ;;  %v1632_v23 = vpop.f32.mrb[90].mxu1  ;;  %2235 = vmatprep.subr.bf16.mxu0 %v2058_v13  ;;  %2348 = vmatprep.subr.bf16.mxu1 %v2060_v14 }
 0x241   : > { %v1520_v35 = vadd.f32 %v1519_v22, %v5013_v26  ;;  %v1633_v24 = vadd.f32 %v1632_v23, %v5013_v26  ;;  %v1521_v27 = vpop.f32.mrb[91].mxu0  ;;  %v1634_v31 = vpop.f32.mrb[91].mxu1  ;;  %2236 = vmatpush1.bf16.msra.mxu0 %v2057_v11  ;;  %2349 = vmatpush1.bf16.msra.mxu1 %v2059_v12  ;;  %v1969_v40 = vmax.f32 %v1516_v17, 0.0  ;;  %v1971_v42 = vmax.f32 %v1629_v19, 0.0 }
 0x242   : > { %v1522_v38 = vadd.f32 %v1521_v27, %v5013_v26  ;;  %v1635_v32 = vadd.f32 %v1634_v31, %v5013_v26  ;;  %v1970_v29 = vmax.f32 %v1518_v18, 0.0  ;;  %v1972_v46 = vmax.f32 %v1631_v21, 0.0 }
 0x243   : > { %v1977_v43 = vmax.f32 %v1520_v35, 0.0  ;;  %v1979_v44 = vmax.f32 %v1633_v24, 0.0 }
 0x244   : > { %v1978_v47 = vmax.f32 %v1522_v38, 0.0  ;;  %v1980_v48 = vmax.f32 %v1635_v32, 0.0 }
 0x245   : > { %v2065_v51 = vpack.c.bf16 %v1977_v43, %v1969_v40  ;;  %v2067_v52 = vpack.c.bf16 %v1979_v44, %v1971_v42  ;;  %v5044_v44 = vld [vmem:[%s5680_s5] sm:$0xff]  }
 0x246   : > { %v2066_v53 = vpack.c.bf16 %v1978_v47, %v1970_v29  ;;  %v2068_v54 = vpack.c.bf16 %v1980_v48, %v1972_v46  ;;  %v1525_v56 = vpop.f32.mrb[92].mxu0  ;;  %v1638_v58 = vpop.f32.mrb[92].mxu1 }
 0x247   : > { %v1526_v57 = vadd.f32 %v1525_v56, %v5027_v60  ;;  %v1639_v7 = vadd.f32 %v1638_v58, %v5027_v60  ;;  %v1527_v61 = vpop.f32.mrb[93].mxu0  ;;  %v1640_v62 = vpop.f32.mrb[93].mxu1 }
 0x248   : > { %v1528_v63 = vadd.f32 %v1527_v61, %v5027_v60  ;;  %v1641_v1 = vadd.f32 %v1640_v62, %v5027_v60  ;;  %v1529_v2 = vpop.f32.mrb[94].mxu0  ;;  %v1642_v5 = vpop.f32.mrb[94].mxu1  ;;  %2237 = vmatprep.subr.bf16.mxu0 %v2066_v53  ;;  %2350 = vmatprep.subr.bf16.mxu1 %v2068_v54 }
 0x249   : > { %v1530_v28 = vadd.f32 %v1529_v2, %v5025_v49  ;;  %v1643_v9 = vadd.f32 %v1642_v5, %v5025_v49  ;;  %v1531_v39 = vpop.f32.mrb[95].mxu0  ;;  %v1644_v10 = vpop.f32.mrb[95].mxu1  ;;  %2238 = vmatpush1.bf16.msra.mxu0 %v2065_v51  ;;  %2351 = vmatpush1.bf16.msra.mxu1 %v2067_v52  ;;  %v1985_v12 = vmax.f32 %v1526_v57, 0.0  ;;  %v1987_v13 = vmax.f32 %v1639_v7, 0.0 }
 0x24a   : > { %v1532_v45 = vadd.f32 %v1531_v39, %v5025_v49  ;;  %v1645_v11 = vadd.f32 %v1644_v10, %v5025_v49  ;;  %v1986_v16 = vmax.f32 %v1528_v63, 0.0  ;;  %v1988_v17 = vmax.f32 %v1641_v1, 0.0 }
 0x24b   : > { %v1993_v14 = vmax.f32 %v1530_v28, 0.0  ;;  %v1995_v15 = vmax.f32 %v1643_v9, 0.0 }
 0x24c   : > { %v1994_v19 = vmax.f32 %v1532_v45, 0.0  ;;  %v1996_v20 = vmax.f32 %v1645_v11, 0.0 }
 0x24d   : > { %v2073_v30 = vpack.c.bf16 %v1993_v14, %v1985_v12  ;;  %v2075_v18 = vpack.c.bf16 %v1995_v15, %v1987_v13  ;;  %v5061_v14 = vld [vmem:[%s5680_s5 + $0x8] sm:$0xff]  }
 0x24e   : > { %v2074_v21 = vpack.c.bf16 %v1994_v19, %v1986_v16  ;;  %v2076_v22 = vpack.c.bf16 %v1996_v20, %v1988_v17  ;;  %v1681_v23 = vpop.f32.mrb[96].mxu0  ;;  %v1794_v35 = vpop.f32.mrb[96].mxu1 }
 0x24f   : > { %v1682_v24 = vadd.f32 %v1681_v23, %v4943_v0  ;;  %v1795_v27 = vadd.f32 %v1794_v35, %v4943_v0  ;;  %v1683_v31 = vpop.f32.mrb[97].mxu0  ;;  %v1796_v38 = vpop.f32.mrb[97].mxu1 }
 0x250   : > { %v1684_v32 = vadd.f32 %v1683_v31, %v4943_v0  ;;  %v1797_v40 = vadd.f32 %v1796_v38, %v4943_v0  ;;  %v1685_v42 = vpop.f32.mrb[98].mxu0  ;;  %v1798_v43 = vpop.f32.mrb[98].mxu1  ;;  %2239 = vmatprep.subr.bf16.mxu0 %v2074_v21  ;;  %2352 = vmatprep.subr.bf16.mxu1 %v2076_v22 }
 0x251   : > { %v1686_v29 = vadd.f32 %v1685_v42, %v4941_v6  ;;  %v1799_v46 = vadd.f32 %v1798_v43, %v4941_v6  ;;  %v1687_v47 = vpop.f32.mrb[99].mxu0  ;;  %v1800_v48 = vpop.f32.mrb[99].mxu1  ;;  %2240 = vmatpush1.bf16.msra.mxu0 %v2073_v30  ;;  %2353 = vmatpush1.bf16.msra.mxu1 %v2075_v18  ;;  %v1877_v52 = vmax.f32 %v1682_v24, 0.0  ;;  %v1879_v53 = vmax.f32 %v1795_v27, 0.0 }
 0x252   : > { %v1688_v51 = vadd.f32 %v1687_v47, %v4941_v6  ;;  %v1801_v0 = vadd.f32 %v1800_v48, %v4941_v6  ;;  %v1878_v58 = vmax.f32 %v1684_v32, 0.0  ;;  %v1880_v57 = vmax.f32 %v1797_v40, 0.0 }
 0x253   : > { %v1885_v54 = vmax.f32 %v1686_v29, 0.0  ;;  %v1887_v56 = vmax.f32 %v1799_v46, 0.0 }
 0x254   : > { %v1886_v7 = vmax.f32 %v1688_v51, 0.0  ;;  %v1888_v61 = vmax.f32 %v1801_v0, 0.0  ;;  %2258 = vmatmul.mubr.bf16.vlgmr.msra.gmra.mrb[128].mxu0 %v5044_v44  ;;  %2371 = vmatmul.mubr.bf16.vlgmr.msra.gmra.mrb[128].mxu1 %v5044_v44 }
 0x255   : > { %v2021_v62 = vpack.c.bf16 %v1885_v54, %v1877_v52  ;;  %v2023_v63 = vpack.c.bf16 %v1887_v56, %v1879_v53  ;;  %2267 = vmatprep.mubr.bf16.mxu0 %v4225_v3  ;;  %2380 = vmatprep.mubr.bf16.mxu1 %v4225_v3  ;;  %v5078_v53 = vld [vmem:[%s5680_s5 + $0x10] sm:$0xff]  }
 0x256   : > { %v2022_v1 = vpack.c.bf16 %v1886_v7, %v1878_v58  ;;  %v2024_v6 = vpack.c.bf16 %v1888_v61, %v1880_v57  ;;  %v1691_v2 = vpop.f32.mrb[100].mxu0  ;;  %v1804_v5 = vpop.f32.mrb[100].mxu1 }
 0x257   : > { %v1692_v28 = vadd.f32 %v1691_v2, %v4955_v36  ;;  %v1805_v9 = vadd.f32 %v1804_v5, %v4955_v36  ;;  %v1693_v39 = vpop.f32.mrb[101].mxu0  ;;  %v1806_v10 = vpop.f32.mrb[101].mxu1 }
 0x258   : > { %v1694_v45 = vadd.f32 %v1693_v39, %v4955_v36  ;;  %v1807_v11 = vadd.f32 %v1806_v10, %v4955_v36  ;;  %v1695_v12 = vpop.f32.mrb[102].mxu0  ;;  %v1808_v13 = vpop.f32.mrb[102].mxu1  ;;  %2451 = vmatprep.subr.bf16.mxu0 %v2022_v1  ;;  %2564 = vmatprep.subr.bf16.mxu1 %v2024_v6 }
 0x259   : > { %v1696_v15 = vadd.f32 %v1695_v12, %v4953_v33  ;;  %v1809_v16 = vadd.f32 %v1808_v13, %v4953_v33  ;;  %v1697_v17 = vpop.f32.mrb[103].mxu0  ;;  %v1810_v19 = vpop.f32.mrb[103].mxu1  ;;  %2452 = vmatpush1.bf16.msra.mxu0 %v2021_v62  ;;  %2565 = vmatpush1.bf16.msra.mxu1 %v2023_v63  ;;  %v1893_v30 = vmax.f32 %v1692_v28, 0.0  ;;  %v1895_v18 = vmax.f32 %v1805_v9, 0.0 }
 0x25a   : > { %v1698_v20 = vadd.f32 %v1697_v17, %v4953_v33  ;;  %v1811_v36 = vadd.f32 %v1810_v19, %v4953_v33  ;;  %v1894_v23 = vmax.f32 %v1694_v45, 0.0  ;;  %v1896_v35 = vmax.f32 %v1807_v11, 0.0 }
 0x25b   : > { %v1901_v21 = vmax.f32 %v1696_v15, 0.0  ;;  %v1903_v22 = vmax.f32 %v1809_v16, 0.0 }
 0x25c   : > { %v1902_v24 = vmax.f32 %v1698_v20, 0.0  ;;  %v1904_v27 = vmax.f32 %v1811_v36, 0.0  ;;  %2268 = vmatmul.mubr.bf16.gmra.mrb[132].mxu0 %v5061_v14  ;;  %2381 = vmatmul.mubr.bf16.gmra.mrb[132].mxu1 %v5061_v14 }
 0x25d   : > { %v2029_v31 = vpack.c.bf16 %v1901_v21, %v1893_v30  ;;  %v2031_v38 = vpack.c.bf16 %v1903_v22, %v1895_v18  ;;  %2277 = vmatprep.mubr.bf16.mxu0 %v4225_v3  ;;  %2390 = vmatprep.mubr.bf16.mxu1 %v4225_v3  ;;  %v5095_v30 = vld [vmem:[%s5680_s5 + $0x18] sm:$0xff]  }
 0x25e   : > { %v2030_v32 = vpack.c.bf16 %v1902_v24, %v1894_v23  ;;  %v2032_v33 = vpack.c.bf16 %v1904_v27, %v1896_v35  ;;  %v1701_v40 = vpop.f32.mrb[104].mxu0  ;;  %v1814_v42 = vpop.f32.mrb[104].mxu1 }
 0x25f   : > { %v1702_v43 = vadd.f32 %v1701_v40, %v4967_v4  ;;  %v1815_v29 = vadd.f32 %v1814_v42, %v4967_v4  ;;  %v1703_v46 = vpop.f32.mrb[105].mxu0  ;;  %v1816_v47 = vpop.f32.mrb[105].mxu1 }
 0x260   : > { %v1704_v48 = vadd.f32 %v1703_v46, %v4967_v4  ;;  %v1817_v51 = vadd.f32 %v1816_v47, %v4967_v4  ;;  %v1705_v0 = vpop.f32.mrb[106].mxu0  ;;  %v1818_v52 = vpop.f32.mrb[106].mxu1  ;;  %2453 = vmatprep.subr.bf16.mxu0 %v2030_v32  ;;  %2566 = vmatprep.subr.bf16.mxu1 %v2032_v33 }
 0x261   : > { %v1706_v54 = vadd.f32 %v1705_v0, %v4965_v59  ;;  %v1819_v56 = vadd.f32 %v1818_v52, %v4965_v59  ;;  %v1707_v58 = vpop.f32.mrb[107].mxu0  ;;  %v1820_v57 = vpop.f32.mrb[107].mxu1  ;;  %2454 = vmatpush1.bf16.msra.mxu0 %v2029_v31  ;;  %2567 = vmatpush1.bf16.msra.mxu1 %v2031_v38  ;;  %v1909_v61 = vmax.f32 %v1702_v43, 0.0  ;;  %v1911_v62 = vmax.f32 %v1815_v29, 0.0 }
 0x262   : > { %v1708_v7 = vadd.f32 %v1707_v58, %v4965_v59  ;;  %v1821_v4 = vadd.f32 %v1820_v57, %v4965_v59  ;;  %v1910_v6 = vmax.f32 %v1704_v48, 0.0  ;;  %v1912_v2 = vmax.f32 %v1817_v51, 0.0 }
 0x263   : > { %v1917_v63 = vmax.f32 %v1706_v54, 0.0  ;;  %v1919_v1 = vmax.f32 %v1819_v56, 0.0 }
 0x264   : > { %v1918_v5 = vmax.f32 %v1708_v7, 0.0  ;;  %v1920_v28 = vmax.f32 %v1821_v4, 0.0  ;;  %2278 = vmatmul.mubr.bf16.gmra.mrb[136].mxu0 %v5078_v53  ;;  %2391 = vmatmul.mubr.bf16.gmra.mrb[136].mxu1 %v5078_v53  ;;  %v5112_v4 = vld [vmem:[%s5680_s5 + $0x20] sm:$0xff]  }
 0x265   : > { %v2037_v9 = vpack.c.bf16 %v1917_v63, %v1909_v61  ;;  %v2039_v39 = vpack.c.bf16 %v1919_v1, %v1911_v62  ;;  %2287 = vmatprep.mubr.bf16.mxu0 %v4225_v3  ;;  %2400 = vmatprep.mubr.bf16.mxu1 %v4225_v3 }
 0x266   : > { %v2038_v10 = vpack.c.bf16 %v1918_v5, %v1910_v6  ;;  %v2040_v59 = vpack.c.bf16 %v1920_v28, %v1912_v2  ;;  %v1711_v45 = vpop.f32.mrb[108].mxu0  ;;  %v1824_v11 = vpop.f32.mrb[108].mxu1 }
 0x267   : > { %v1712_v12 = vadd.f32 %v1711_v45, %v4979_v37  ;;  %v1825_v13 = vadd.f32 %v1824_v11, %v4979_v37  ;;  %v1713_v15 = vpop.f32.mrb[109].mxu0  ;;  %v1826_v16 = vpop.f32.mrb[109].mxu1 }
 0x268   : > { %v1714_v17 = vadd.f32 %v1713_v15, %v4979_v37  ;;  %v1827_v19 = vadd.f32 %v1826_v16, %v4979_v37  ;;  %v1715_v20 = vpop.f32.mrb[110].mxu0  ;;  %v1828_v36 = vpop.f32.mrb[110].mxu1  ;;  %2455 = vmatprep.subr.bf16.mxu0 %v2038_v10  ;;  %2568 = vmatprep.subr.bf16.mxu1 %v2040_v59 }
 0x269   : > { %v1716_v18 = vadd.f32 %v1715_v20, %v4977_v25  ;;  %v1829_v21 = vadd.f32 %v1828_v36, %v4977_v25  ;;  %v1717_v22 = vpop.f32.mrb[111].mxu0  ;;  %v1830_v23 = vpop.f32.mrb[111].mxu1  ;;  %2456 = vmatpush1.bf16.msra.mxu0 %v2037_v9  ;;  %2569 = vmatpush1.bf16.msra.mxu1 %v2039_v39  ;;  %v1925_v24 = vmax.f32 %v1712_v12, 0.0  ;;  %v1927_v27 = vmax.f32 %v1825_v13, 0.0 }
 0x26a   : > { %v1718_v35 = vadd.f32 %v1717_v22, %v4977_v25  ;;  %v1831_v37 = vadd.f32 %v1830_v23, %v4977_v25  ;;  %v1926_v32 = vmax.f32 %v1714_v17, 0.0  ;;  %v1928_v33 = vmax.f32 %v1827_v19, 0.0 }
 0x26b   : > { %v1933_v31 = vmax.f32 %v1716_v18, 0.0  ;;  %v1935_v38 = vmax.f32 %v1829_v21, 0.0 }
 0x26c   : > { %v1934_v40 = vmax.f32 %v1718_v35, 0.0  ;;  %v1936_v42 = vmax.f32 %v1831_v37, 0.0  ;;  %2288 = vmatmul.mubr.bf16.gmra.mrb[140].mxu0 %v5095_v30  ;;  %2401 = vmatmul.mubr.bf16.gmra.mrb[140].mxu1 %v5095_v30  ;;  %v5129_v35 = vld [vmem:[%s5680_s5 + $0x28] sm:$0xff]  }
 0x26d   : > { %v2045_v43 = vpack.c.bf16 %v1933_v31, %v1925_v24  ;;  %v2047_v29 = vpack.c.bf16 %v1935_v38, %v1927_v27  ;;  %2297 = vmatprep.mubr.bf16.mxu0 %v4225_v3  ;;  %2410 = vmatprep.mubr.bf16.mxu1 %v4225_v3 }
 0x26e   : > { %v2046_v46 = vpack.c.bf16 %v1934_v40, %v1926_v32  ;;  %v2048_v25 = vpack.c.bf16 %v1936_v42, %v1928_v33  ;;  %v1721_v47 = vpop.f32.mrb[112].mxu0  ;;  %v1834_v48 = vpop.f32.mrb[112].mxu1 }
 0x26f   : > { %v1722_v51 = vadd.f32 %v1721_v47, %v4991_v55  ;;  %v1835_v0 = vadd.f32 %v1834_v48, %v4991_v55  ;;  %v1723_v52 = vpop.f32.mrb[113].mxu0  ;;  %v1836_v54 = vpop.f32.mrb[113].mxu1 }
 0x270   : > { %v1724_v56 = vadd.f32 %v1723_v52, %v4991_v55  ;;  %v1837_v58 = vadd.f32 %v1836_v54, %v4991_v55  ;;  %v1725_v57 = vpop.f32.mrb[114].mxu0  ;;  %v1838_v7 = vpop.f32.mrb[114].mxu1  ;;  %2457 = vmatprep.subr.bf16.mxu0 %v2046_v46  ;;  %2570 = vmatprep.subr.bf16.mxu1 %v2048_v25 }
 0x271   : > { %v1726_v61 = vadd.f32 %v1725_v57, %v4989_v8  ;;  %v1839_v62 = vadd.f32 %v1838_v7, %v4989_v8  ;;  %v1727_v63 = vpop.f32.mrb[115].mxu0  ;;  %v1840_v1 = vpop.f32.mrb[115].mxu1  ;;  %2458 = vmatpush1.bf16.msra.mxu0 %v2045_v43  ;;  %2571 = vmatpush1.bf16.msra.mxu1 %v2047_v29  ;;  %v1941_v2 = vmax.f32 %v1722_v51, 0.0  ;;  %v1943_v5 = vmax.f32 %v1835_v0, 0.0 }
 0x272   : > { %v1728_v6 = vadd.f32 %v1727_v63, %v4989_v8  ;;  %v1841_v55 = vadd.f32 %v1840_v1, %v4989_v8  ;;  %v1942_v39 = vmax.f32 %v1724_v56, 0.0  ;;  %v1944_v10 = vmax.f32 %v1837_v58, 0.0  ;;  %v5146_v1 = vld [vmem:[%s5680_s5 + $0x30] sm:$0xff]  }
 0x273   : > { %v1949_v28 = vmax.f32 %v1726_v61, 0.0  ;;  %v1951_v9 = vmax.f32 %v1839_v62, 0.0 }
 0x274   : > { %v1950_v59 = vmax.f32 %v1728_v6, 0.0  ;;  %v1952_v45 = vmax.f32 %v1841_v55, 0.0  ;;  %2298 = vmatmul.mubr.bf16.gmra.mrb[144].mxu0 %v5112_v4  ;;  %2411 = vmatmul.mubr.bf16.gmra.mrb[144].mxu1 %v5112_v4 }
 0x275   : > { %v2053_v11 = vpack.c.bf16 %v1949_v28, %v1941_v2  ;;  %v2055_v12 = vpack.c.bf16 %v1951_v9, %v1943_v5  ;;  %2307 = vmatprep.mubr.bf16.mxu0 %v4225_v3  ;;  %2420 = vmatprep.mubr.bf16.mxu1 %v4225_v3 }
 0x276   : > { %v2054_v13 = vpack.c.bf16 %v1950_v59, %v1942_v39  ;;  %v2056_v8 = vpack.c.bf16 %v1952_v45, %v1944_v10  ;;  %v1731_v15 = vpop.f32.mrb[116].mxu0  ;;  %v1844_v16 = vpop.f32.mrb[116].mxu1 }
 0x277   : > { %v1732_v17 = vadd.f32 %v1731_v15, %v5003_v34  ;;  %v1845_v19 = vadd.f32 %v1844_v16, %v5003_v34  ;;  %v1733_v20 = vpop.f32.mrb[117].mxu0  ;;  %v1846_v36 = vpop.f32.mrb[117].mxu1 }
 0x278   : > { %v1734_v18 = vadd.f32 %v1733_v20, %v5003_v34  ;;  %v1847_v21 = vadd.f32 %v1846_v36, %v5003_v34  ;;  %v1735_v22 = vpop.f32.mrb[118].mxu0  ;;  %v1848_v23 = vpop.f32.mrb[118].mxu1  ;;  %2459 = vmatprep.subr.bf16.mxu0 %v2054_v13  ;;  %2572 = vmatprep.subr.bf16.mxu1 %v2056_v8 }
 0x279   : > { %v1736_v37 = vadd.f32 %v1735_v22, %v5001_v41  ;;  %v1849_v24 = vadd.f32 %v1848_v23, %v5001_v41  ;;  %v1737_v27 = vpop.f32.mrb[119].mxu0  ;;  %v1850_v31 = vpop.f32.mrb[119].mxu1  ;;  %2460 = vmatpush1.bf16.msra.mxu0 %v2053_v11  ;;  %2573 = vmatpush1.bf16.msra.mxu1 %v2055_v12  ;;  %v1957_v32 = vmax.f32 %v1732_v17, 0.0  ;;  %v1959_v33 = vmax.f32 %v1845_v19, 0.0 }
 0x27a   : > { %v1738_v38 = vadd.f32 %v1737_v27, %v5001_v41  ;;  %v1851_v34 = vadd.f32 %v1850_v31, %v5001_v41  ;;  %v1958_v43 = vmax.f32 %v1734_v18, 0.0  ;;  %v1960_v29 = vmax.f32 %v1847_v21, 0.0  ;;  %v4152_v27 = vld [vmem:[%s5680_s5 + $0x38] sm:$0xff]  }
 0x27b   : > { %v1965_v40 = vmax.f32 %v1736_v37, 0.0  ;;  %v1967_v42 = vmax.f32 %v1849_v24, 0.0 }
 0x27c   : > { %v1966_v46 = vmax.f32 %v1738_v38, 0.0  ;;  %v1968_v25 = vmax.f32 %v1851_v34, 0.0  ;;  %2308 = vmatmul.mubr.bf16.gmra.mrb[148].mxu0 %v5129_v35  ;;  %2421 = vmatmul.mubr.bf16.gmra.mrb[148].mxu1 %v5129_v35 }
 0x27d   : > { %v2061_v47 = vpack.c.bf16 %v1965_v40, %v1957_v32  ;;  %v2063_v48 = vpack.c.bf16 %v1967_v42, %v1959_v33  ;;  %2317 = vmatprep.mubr.bf16.mxu0 %v4225_v3  ;;  %2430 = vmatprep.mubr.bf16.mxu1 %v4225_v3 }
 0x27e   : > { %v2062_v51 = vpack.c.bf16 %v1966_v46, %v1958_v43  ;;  %v2064_v41 = vpack.c.bf16 %v1968_v25, %v1960_v29  ;;  %v1741_v0 = vpop.f32.mrb[120].mxu0  ;;  %v1854_v52 = vpop.f32.mrb[120].mxu1 }
 0x27f   : > { %v1742_v54 = vadd.f32 %v1741_v0, %v5015_v50  ;;  %v1855_v56 = vadd.f32 %v1854_v52, %v5015_v50  ;;  %v1743_v58 = vpop.f32.mrb[121].mxu0  ;;  %v1856_v57 = vpop.f32.mrb[121].mxu1 }
 0x280   : > { %v1744_v7 = vadd.f32 %v1743_v58, %v5015_v50  ;;  %v1857_v61 = vadd.f32 %v1856_v57, %v5015_v50  ;;  %v1745_v62 = vpop.f32.mrb[122].mxu0  ;;  %v1858_v63 = vpop.f32.mrb[122].mxu1  ;;  %2461 = vmatprep.subr.bf16.mxu0 %v2062_v51  ;;  %2574 = vmatprep.subr.bf16.mxu1 %v2064_v41 }
 0x281   : > { %v1746_v6 = vadd.f32 %v1745_v62, %v5013_v26  ;;  %v1859_v55 = vadd.f32 %v1858_v63, %v5013_v26  ;;  %v1747_v2 = vpop.f32.mrb[123].mxu0  ;;  %v1860_v5 = vpop.f32.mrb[123].mxu1  ;;  %2462 = vmatpush1.bf16.msra.mxu0 %v2061_v47  ;;  %2575 = vmatpush1.bf16.msra.mxu1 %v2063_v48  ;;  %v1973_v9 = vmax.f32 %v1742_v54, 0.0  ;;  %v1975_v39 = vmax.f32 %v1855_v56, 0.0 }
 0x282   : > { %v1748_v28 = vadd.f32 %v1747_v2, %v5013_v26  ;;  %v1861_v50 = vadd.f32 %v1860_v5, %v5013_v26  ;;  %v1974_v45 = vmax.f32 %v1744_v7, 0.0  ;;  %v1976_v11 = vmax.f32 %v1857_v61, 0.0 }
 0x283   : > { %v1981_v10 = vmax.f32 %v1746_v6, 0.0  ;;  %v1983_v59 = vmax.f32 %v1859_v55, 0.0 }
 0x284   : > { %v1982_v12 = vmax.f32 %v1748_v28, 0.0  ;;  %v1984_v13 = vmax.f32 %v1861_v50, 0.0  ;;  %2318 = vmatmul.mubr.bf16.gmra.mrb[152].mxu0 %v5146_v1  ;;  %2431 = vmatmul.mubr.bf16.gmra.mrb[152].mxu1 %v5146_v1 }
 0x285   : > { %v2069_v8 = vpack.c.bf16 %v1981_v10, %v1973_v9  ;;  %v2071_v15 = vpack.c.bf16 %v1983_v59, %v1975_v39  ;;  %2327 = vmatprep.mubr.bf16.mxu0 %v4225_v3  ;;  %2440 = vmatprep.mubr.bf16.mxu1 %v4225_v3 }
 0x286   : > { %v2070_v16 = vpack.c.bf16 %v1982_v12, %v1974_v45  ;;  %v2072_v26 = vpack.c.bf16 %v1984_v13, %v1976_v11  ;;  %v1751_v17 = vpop.f32.mrb[124].mxu0  ;;  %v1864_v19 = vpop.f32.mrb[124].mxu1 }
 0x287   : > { %v1752_v20 = vadd.f32 %v1751_v17, %v5027_v60  ;;  %v1865_v36 = vadd.f32 %v1864_v19, %v5027_v60  ;;  %v1753_v18 = vpop.f32.mrb[125].mxu0  ;;  %v1866_v21 = vpop.f32.mrb[125].mxu1 }
 0x288   : > { %v1754_v22 = vadd.f32 %v1753_v18, %v5027_v60  ;;  %v1867_v23 = vadd.f32 %v1866_v21, %v5027_v60  ;;  %v1755_v37 = vpop.f32.mrb[126].mxu0  ;;  %v1868_v24 = vpop.f32.mrb[126].mxu1  ;;  %2463 = vmatprep.subr.bf16.mxu0 %v2070_v16  ;;  %2576 = vmatprep.subr.bf16.mxu1 %v2072_v26 }
 0x289   : > { %v1756_v31 = vadd.f32 %v1755_v37, %v5025_v49  ;;  %v1869_v38 = vadd.f32 %v1868_v24, %v5025_v49  ;;  %v1757_v34 = vpop.f32.mrb[127].mxu0  ;;  %v1870_v32 = vpop.f32.mrb[127].mxu1  ;;  %2464 = vmatpush1.bf16.msra.mxu0 %v2069_v8  ;;  %2577 = vmatpush1.bf16.msra.mxu1 %v2071_v15  ;;  %v1989_v40 = vmax.f32 %v1752_v20, 0.0  ;;  %v1991_v42 = vmax.f32 %v1865_v36, 0.0 }
 0x28a   : > { %v1758_v33 = vadd.f32 %v1757_v34, %v5025_v49  ;;  %v1871_v60 = vadd.f32 %v1870_v32, %v5025_v49  ;;  %v1990_v46 = vmax.f32 %v1754_v22, 0.0  ;;  %v1992_v25 = vmax.f32 %v1867_v23, 0.0  ;;  %v5199_v49 = vpop.permute.xlu1 %2104 }
 0x28b   : > { %v1997_v43 = vmax.f32 %v1756_v31, 0.0  ;;  %v1999_v29 = vmax.f32 %v1869_v38, 0.0 }
 0x28c   : > { %v1998_v47 = vmax.f32 %v1758_v33, 0.0  ;;  %v2000_v48 = vmax.f32 %v1871_v60, 0.0  ;;  %2328 = vmatmul.mubr.bf16.gmra.mrb[156].mxu0 %v4152_v27  ;;  %2441 = vmatmul.mubr.bf16.gmra.mrb[156].mxu1 %v4152_v27 }
 0x28d   : > { %v2077_v51 = vpack.c.bf16 %v1997_v43, %v1989_v40  ;;  %v2079_v41 = vpack.c.bf16 %v1999_v29, %v1991_v42  ;;  %2483 = vmatprep.mubr.bf16.mxu0 %v4225_v3  ;;  %2596 = vmatprep.mubr.bf16.mxu1 %v4225_v3 }
 0x28e   : > { %v2078_v0 = vpack.c.bf16 %v1998_v47, %v1990_v46  ;;  %v2080_v52 = vpack.c.bf16 %v2000_v48, %v1992_v25  ;;  %v5211_v45 = vpop.permute.xlu1 %2114 }
 0x290   : > { %2465 = vmatprep.subr.bf16.mxu0 %v2078_v0  ;;  %2578 = vmatprep.subr.bf16.mxu1 %v2080_v52 }
 0x291   : > { %2466 = vmatpush1.bf16.msra.mxu0 %v2077_v51  ;;  %2579 = vmatpush1.bf16.msra.mxu1 %v2079_v41 }
 0x292   : > { %v5223_v25 = vpop.permute.xlu1 %2124 }
 0x294   : > { %2484 = vmatmul.mubr.bf16.vlgmr.msra.gmra.mrb[160].mxu0 %v5044_v44  ;;  %2597 = vmatmul.mubr.bf16.vlgmr.msra.gmra.mrb[160].mxu1 %v5044_v44  ;;  %v5201_v44 = vpop.permute.xlu0 %2099 }
 0x295   : > { %2493 = vmatprep.mubr.bf16.mxu0 %v4225_v3  ;;  %2606 = vmatprep.mubr.bf16.mxu1 %v4225_v3 }
 0x298   : > { %v5213_v11 = vpop.permute.xlu0 %2109 }
 0x29c   : > { %2494 = vmatmul.mubr.bf16.gmra.mrb[164].mxu0 %v5061_v14  ;;  %2607 = vmatmul.mubr.bf16.gmra.mrb[164].mxu1 %v5061_v14  ;;  %v5225_v47 = vpop.permute.xlu0 %2119 }
 0x29d   : > { %2503 = vmatprep.mubr.bf16.mxu0 %v4225_v3  ;;  %2616 = vmatprep.mubr.bf16.mxu1 %v4225_v3 }
 0x2a4   : > { %2504 = vmatmul.mubr.bf16.gmra.mrb[168].mxu0 %v5078_v53  ;;  %2617 = vmatmul.mubr.bf16.gmra.mrb[168].mxu1 %v5078_v53 }
 0x2a5   : > { %2513 = vmatprep.mubr.bf16.mxu0 %v4225_v3  ;;  %2626 = vmatprep.mubr.bf16.mxu1 %v4225_v3 }
 0x2ac   : > { %2514 = vmatmul.mubr.bf16.gmra.mrb[172].mxu0 %v5095_v30  ;;  %2627 = vmatmul.mubr.bf16.gmra.mrb[172].mxu1 %v5095_v30 }
 0x2ad   : > { %2523 = vmatprep.mubr.bf16.mxu0 %v4225_v3  ;;  %2636 = vmatprep.mubr.bf16.mxu1 %v4225_v3 }
 0x2b4   : > { %2524 = vmatmul.mubr.bf16.gmra.mrb[176].mxu0 %v5112_v4  ;;  %2637 = vmatmul.mubr.bf16.gmra.mrb[176].mxu1 %v5112_v4 }
 0x2b5   : > { %2533 = vmatprep.mubr.bf16.mxu0 %v4225_v3  ;;  %2646 = vmatprep.mubr.bf16.mxu1 %v4225_v3 }
 0x2bc   : > { %2534 = vmatmul.mubr.bf16.gmra.mrb[180].mxu0 %v5129_v35  ;;  %2647 = vmatmul.mubr.bf16.gmra.mrb[180].mxu1 %v5129_v35 }
 0x2bd   : > { %2543 = vmatprep.mubr.bf16.mxu0 %v4225_v3  ;;  %2656 = vmatprep.mubr.bf16.mxu1 %v4225_v3 }
 0x2c4   : > { %2544 = vmatmul.mubr.bf16.gmra.mrb[184].mxu0 %v5146_v1  ;;  %2657 = vmatmul.mubr.bf16.gmra.mrb[184].mxu1 %v5146_v1 }
 0x2c5   : > { %2553 = vmatprep.mubr.bf16.mxu0 %v4225_v3  ;;  %2666 = vmatprep.mubr.bf16.mxu1 %v4225_v3 }
 0x2cc   : > { %2554 = vmatmul.mubr.bf16.gmra.mrb[188].mxu0 %v4152_v27  ;;  %2667 = vmatmul.mubr.bf16.gmra.mrb[188].mxu1 %v4152_v27 }
 0x2cd   : > { %3061 = vmatprep.mubr.bf16.mxu0 %v4225_v3  ;;  %3174 = vmatprep.mubr.bf16.mxu1 %v4225_v3 }
 0x327   : > { %v2259_v14 = vpop.f32.mrb[128].mxu0  ;;  %v2372_v53 = vpop.f32.mrb[128].mxu1 }
 0x328   : > { %v2260_v30 = vadd.f32 %v2259_v14, %v5201_v44  ;;  %v2373_v4 = vadd.f32 %v2372_v53, %v5201_v44  ;;  %v2261_v35 = vpop.f32.mrb[129].mxu0  ;;  %v2374_v54 = vpop.f32.mrb[129].mxu1 }
 0x329   : > { %v2262_v56 = vadd.f32 %v2261_v35, %v5201_v44  ;;  %v2375_v58 = vadd.f32 %v2374_v54, %v5201_v44  ;;  %v2263_v57 = vpop.f32.mrb[130].mxu0  ;;  %v2376_v7 = vpop.f32.mrb[130].mxu1 }
 0x32a   : > { %v2264_v61 = vadd.f32 %v2263_v57, %v5199_v49  ;;  %v2377_v62 = vadd.f32 %v2376_v7, %v5199_v49  ;;  %v2265_v63 = vpop.f32.mrb[131].mxu0  ;;  %v2378_v1 = vpop.f32.mrb[131].mxu1  ;;  %v2677_v2 = vmax.f32 %v2260_v30, 0.0  ;;  %v2679_v5 = vmax.f32 %v2373_v4, 0.0 }
 0x32b   : > { %v2266_v6 = vadd.f32 %v2265_v63, %v5199_v49  ;;  %v2379_v55 = vadd.f32 %v2378_v1, %v5199_v49  ;;  %v2678_v9 = vmax.f32 %v2262_v56, 0.0  ;;  %v2680_v39 = vmax.f32 %v2375_v58, 0.0 }
 0x32c   : > { %v2685_v28 = vmax.f32 %v2264_v61, 0.0  ;;  %v2687_v50 = vmax.f32 %v2377_v62, 0.0 }
 0x32d   : > { %v2686_v10 = vmax.f32 %v2266_v6, 0.0  ;;  %v2688_v59 = vmax.f32 %v2379_v55, 0.0 }
 0x32e   : > { %v2821_v12 = vpack.c.bf16 %v2685_v28, %v2677_v2  ;;  %v2823_v13 = vpack.c.bf16 %v2687_v50, %v2679_v5 }
 0x32f   : > { %v2822_v8 = vpack.c.bf16 %v2686_v10, %v2678_v9  ;;  %v2824_v15 = vpack.c.bf16 %v2688_v59, %v2680_v39  ;;  %v2269_v16 = vpop.f32.mrb[132].mxu0  ;;  %v2382_v26 = vpop.f32.mrb[132].mxu1 }
 0x330   : > { %v2270_v17 = vadd.f32 %v2269_v16, %v5213_v11  ;;  %v2383_v19 = vadd.f32 %v2382_v26, %v5213_v11  ;;  %v2271_v20 = vpop.f32.mrb[133].mxu0  ;;  %v2384_v36 = vpop.f32.mrb[133].mxu1 }
 0x331   : > { %v2272_v18 = vadd.f32 %v2271_v20, %v5213_v11  ;;  %v2385_v21 = vadd.f32 %v2384_v36, %v5213_v11  ;;  %v2273_v22 = vpop.f32.mrb[134].mxu0  ;;  %v2386_v23 = vpop.f32.mrb[134].mxu1  ;;  %3029 = vmatprep.subr.bf16.mxu0 %v2822_v8  ;;  %3142 = vmatprep.subr.bf16.mxu1 %v2824_v15 }
 0x332   : > { %v2274_v37 = vadd.f32 %v2273_v22, %v5211_v45  ;;  %v2387_v24 = vadd.f32 %v2386_v23, %v5211_v45  ;;  %v2275_v27 = vpop.f32.mrb[135].mxu0  ;;  %v2388_v31 = vpop.f32.mrb[135].mxu1  ;;  %3030 = vmatpush1.bf16.msra.mxu0 %v2821_v12  ;;  %3143 = vmatpush1.bf16.msra.mxu1 %v2823_v13  ;;  %v2693_v32 = vmax.f32 %v2270_v17, 0.0  ;;  %v2695_v33 = vmax.f32 %v2383_v19, 0.0 }
 0x333   : > { %v2276_v38 = vadd.f32 %v2275_v27, %v5211_v45  ;;  %v2389_v34 = vadd.f32 %v2388_v31, %v5211_v45  ;;  %v2694_v42 = vmax.f32 %v2272_v18, 0.0  ;;  %v2696_v43 = vmax.f32 %v2385_v21, 0.0  ;;  %v5235_v59 = vpop.permute.xlu1 %2134  ;;  %v5237_v12 = vpop.permute.xlu0 %2129 }
 0x334   : > { %v2701_v60 = vmax.f32 %v2274_v37, 0.0  ;;  %v2703_v40 = vmax.f32 %v2387_v24, 0.0 }
 0x335   : > { %v2702_v29 = vmax.f32 %v2276_v38, 0.0  ;;  %v2704_v46 = vmax.f32 %v2389_v34, 0.0 }
 0x336   : > { %v2829_v48 = vpack.c.bf16 %v2701_v60, %v2693_v32  ;;  %v2831_v51 = vpack.c.bf16 %v2703_v40, %v2695_v33 }
 0x337   : > { %v2830_v41 = vpack.c.bf16 %v2702_v29, %v2694_v42  ;;  %v2832_v0 = vpack.c.bf16 %v2704_v46, %v2696_v43  ;;  %v2279_v52 = vpop.f32.mrb[136].mxu0  ;;  %v2392_v14 = vpop.f32.mrb[136].mxu1 }
 0x338   : > { %v2280_v53 = vadd.f32 %v2279_v52, %v5225_v47  ;;  %v2393_v30 = vadd.f32 %v2392_v14, %v5225_v47  ;;  %v2281_v4 = vpop.f32.mrb[137].mxu0  ;;  %v2394_v35 = vpop.f32.mrb[137].mxu1 }
 0x339   : > { %v2282_v54 = vadd.f32 %v2281_v4, %v5225_v47  ;;  %v2395_v56 = vadd.f32 %v2394_v35, %v5225_v47  ;;  %v2283_v58 = vpop.f32.mrb[138].mxu0  ;;  %v2396_v57 = vpop.f32.mrb[138].mxu1  ;;  %3031 = vmatprep.subr.bf16.mxu0 %v2830_v41  ;;  %3144 = vmatprep.subr.bf16.mxu1 %v2832_v0 }
 0x33a   : > { %v2284_v7 = vadd.f32 %v2283_v58, %v5223_v25  ;;  %v2397_v61 = vadd.f32 %v2396_v57, %v5223_v25  ;;  %v2285_v62 = vpop.f32.mrb[139].mxu0  ;;  %v2398_v63 = vpop.f32.mrb[139].mxu1  ;;  %3032 = vmatpush1.bf16.msra.mxu0 %v2829_v48  ;;  %3145 = vmatpush1.bf16.msra.mxu1 %v2831_v51  ;;  %v2709_v55 = vmax.f32 %v2280_v53, 0.0  ;;  %v2711_v2 = vmax.f32 %v2393_v30, 0.0 }
 0x33b   : > { %v2286_v1 = vadd.f32 %v2285_v62, %v5223_v25  ;;  %v2399_v6 = vadd.f32 %v2398_v63, %v5223_v25  ;;  %v2710_v50 = vmax.f32 %v2282_v54, 0.0  ;;  %v2712_v9 = vmax.f32 %v2395_v56, 0.0  ;;  %v5247_v51 = vpop.permute.xlu1 %2144  ;;  %v5249_v41 = vpop.permute.xlu0 %2139 }
 0x33c   : > { %v2717_v5 = vmax.f32 %v2284_v7, 0.0  ;;  %v2719_v28 = vmax.f32 %v2397_v61, 0.0 }
 0x33d   : > { %v2718_v39 = vmax.f32 %v2286_v1, 0.0  ;;  %v2720_v10 = vmax.f32 %v2399_v6, 0.0 }
 0x33e   : > { %v2837_v13 = vpack.c.bf16 %v2717_v5, %v2709_v55  ;;  %v2839_v8 = vpack.c.bf16 %v2719_v28, %v2711_v2 }
 0x33f   : > { %v2838_v15 = vpack.c.bf16 %v2718_v39, %v2710_v50  ;;  %v2840_v16 = vpack.c.bf16 %v2720_v10, %v2712_v9  ;;  %v2289_v26 = vpop.f32.mrb[140].mxu0  ;;  %v2402_v17 = vpop.f32.mrb[140].mxu1 }
 0x340   : > { %v2290_v19 = vadd.f32 %v2289_v26, %v5237_v12  ;;  %v2403_v20 = vadd.f32 %v2402_v17, %v5237_v12  ;;  %v2291_v36 = vpop.f32.mrb[141].mxu0  ;;  %v2404_v18 = vpop.f32.mrb[141].mxu1 }
 0x341   : > { %v2292_v21 = vadd.f32 %v2291_v36, %v5237_v12  ;;  %v2405_v22 = vadd.f32 %v2404_v18, %v5237_v12  ;;  %v2293_v23 = vpop.f32.mrb[142].mxu0  ;;  %v2406_v37 = vpop.f32.mrb[142].mxu1  ;;  %3033 = vmatprep.subr.bf16.mxu0 %v2838_v15  ;;  %3146 = vmatprep.subr.bf16.mxu1 %v2840_v16 }
 0x342   : > { %v2294_v24 = vadd.f32 %v2293_v23, %v5235_v59  ;;  %v2407_v27 = vadd.f32 %v2406_v37, %v5235_v59  ;;  %v2295_v31 = vpop.f32.mrb[143].mxu0  ;;  %v2408_v38 = vpop.f32.mrb[143].mxu1  ;;  %3034 = vmatpush1.bf16.msra.mxu0 %v2837_v13  ;;  %3147 = vmatpush1.bf16.msra.mxu1 %v2839_v8  ;;  %v2725_v33 = vmax.f32 %v2290_v19, 0.0  ;;  %v2727_v60 = vmax.f32 %v2403_v20, 0.0 }
 0x343   : > { %v2296_v34 = vadd.f32 %v2295_v31, %v5235_v59  ;;  %v2409_v32 = vadd.f32 %v2408_v38, %v5235_v59  ;;  %v2726_v43 = vmax.f32 %v2292_v21, 0.0  ;;  %v2728_v29 = vmax.f32 %v2405_v22, 0.0  ;;  %v5259_v16 = vpop.permute.xlu1 %2154  ;;  %v5261_v26 = vpop.permute.xlu0 %2149 }
 0x344   : > { %v2733_v40 = vmax.f32 %v2294_v24, 0.0  ;;  %v2735_v42 = vmax.f32 %v2407_v27, 0.0 }
 0x345   : > { %v2734_v46 = vmax.f32 %v2296_v34, 0.0  ;;  %v2736_v48 = vmax.f32 %v2409_v32, 0.0 }
 0x346   : > { %v2845_v0 = vpack.c.bf16 %v2733_v40, %v2725_v33  ;;  %v2847_v52 = vpack.c.bf16 %v2735_v42, %v2727_v60 }
 0x347   : > { %v2846_v14 = vpack.c.bf16 %v2734_v46, %v2726_v43  ;;  %v2848_v53 = vpack.c.bf16 %v2736_v48, %v2728_v29  ;;  %v2299_v30 = vpop.f32.mrb[144].mxu0  ;;  %v2412_v4 = vpop.f32.mrb[144].mxu1 }
 0x348   : > { %v2300_v35 = vadd.f32 %v2299_v30, %v5249_v41  ;;  %v2413_v54 = vadd.f32 %v2412_v4, %v5249_v41  ;;  %v2301_v56 = vpop.f32.mrb[145].mxu0  ;;  %v2414_v58 = vpop.f32.mrb[145].mxu1 }
 0x349   : > { %v2302_v57 = vadd.f32 %v2301_v56, %v5249_v41  ;;  %v2415_v7 = vadd.f32 %v2414_v58, %v5249_v41  ;;  %v2303_v61 = vpop.f32.mrb[146].mxu0  ;;  %v2416_v62 = vpop.f32.mrb[146].mxu1  ;;  %3035 = vmatprep.subr.bf16.mxu0 %v2846_v14  ;;  %3148 = vmatprep.subr.bf16.mxu1 %v2848_v53 }
 0x34a   : > { %v2304_v63 = vadd.f32 %v2303_v61, %v5247_v51  ;;  %v2417_v1 = vadd.f32 %v2416_v62, %v5247_v51  ;;  %v2305_v6 = vpop.f32.mrb[147].mxu0  ;;  %v2418_v55 = vpop.f32.mrb[147].mxu1  ;;  %3036 = vmatpush1.bf16.msra.mxu0 %v2845_v0  ;;  %3149 = vmatpush1.bf16.msra.mxu1 %v2847_v52  ;;  %v2741_v28 = vmax.f32 %v2300_v35, 0.0  ;;  %v2743_v50 = vmax.f32 %v2413_v54, 0.0 }
 0x34b   : > { %v2306_v2 = vadd.f32 %v2305_v6, %v5247_v51  ;;  %v2419_v5 = vadd.f32 %v2418_v55, %v5247_v51  ;;  %v2742_v10 = vmax.f32 %v2302_v57, 0.0  ;;  %v2744_v13 = vmax.f32 %v2415_v7, 0.0  ;;  %v5271_v4 = vpop.permute.xlu1 %2164  ;;  %v5273_v35 = vpop.permute.xlu0 %2159 }
 0x34c   : > { %v2749_v9 = vmax.f32 %v2304_v63, 0.0  ;;  %v2751_v39 = vmax.f32 %v2417_v1, 0.0 }
 0x34d   : > { %v2750_v8 = vmax.f32 %v2306_v2, 0.0  ;;  %v2752_v15 = vmax.f32 %v2419_v5, 0.0 }
 0x34e   : > { %v2853_v17 = vpack.c.bf16 %v2749_v9, %v2741_v28  ;;  %v2855_v19 = vpack.c.bf16 %v2751_v39, %v2743_v50 }
 0x34f   : > { %v2854_v20 = vpack.c.bf16 %v2750_v8, %v2742_v10  ;;  %v2856_v36 = vpack.c.bf16 %v2752_v15, %v2744_v13  ;;  %v2309_v18 = vpop.f32.mrb[148].mxu0  ;;  %v2422_v21 = vpop.f32.mrb[148].mxu1 }
 0x350   : > { %v2310_v22 = vadd.f32 %v2309_v18, %v5261_v26  ;;  %v2423_v23 = vadd.f32 %v2422_v21, %v5261_v26  ;;  %v2311_v37 = vpop.f32.mrb[149].mxu0  ;;  %v2424_v24 = vpop.f32.mrb[149].mxu1 }
 0x351   : > { %v2312_v27 = vadd.f32 %v2311_v37, %v5261_v26  ;;  %v2425_v31 = vadd.f32 %v2424_v24, %v5261_v26  ;;  %v2313_v38 = vpop.f32.mrb[150].mxu0  ;;  %v2426_v34 = vpop.f32.mrb[150].mxu1  ;;  %3037 = vmatprep.subr.bf16.mxu0 %v2854_v20  ;;  %3150 = vmatprep.subr.bf16.mxu1 %v2856_v36 }
 0x352   : > { %v2314_v32 = vadd.f32 %v2313_v38, %v5259_v16  ;;  %v2427_v33 = vadd.f32 %v2426_v34, %v5259_v16  ;;  %v2315_v60 = vpop.f32.mrb[151].mxu0  ;;  %v2428_v40 = vpop.f32.mrb[151].mxu1  ;;  %3038 = vmatpush1.bf16.msra.mxu0 %v2853_v17  ;;  %3151 = vmatpush1.bf16.msra.mxu1 %v2855_v19  ;;  %v2757_v29 = vmax.f32 %v2310_v22, 0.0  ;;  %v2759_v46 = vmax.f32 %v2423_v23, 0.0 }
 0x353   : > { %v2316_v42 = vadd.f32 %v2315_v60, %v5259_v16  ;;  %v2429_v43 = vadd.f32 %v2428_v40, %v5259_v16  ;;  %v2758_v52 = vmax.f32 %v2312_v27, 0.0  ;;  %v2760_v14 = vmax.f32 %v2425_v31, 0.0  ;;  %v5283_v23 = vpop.permute.xlu1 %2174  ;;  %v5285_v37 = vpop.permute.xlu0 %2169 }
 0x354   : > { %v2765_v48 = vmax.f32 %v2314_v32, 0.0  ;;  %v2767_v0 = vmax.f32 %v2427_v33, 0.0 }
 0x355   : > { %v2766_v53 = vmax.f32 %v2316_v42, 0.0  ;;  %v2768_v30 = vmax.f32 %v2429_v43, 0.0 }
 0x356   : > { %v2861_v54 = vpack.c.bf16 %v2765_v48, %v2757_v29  ;;  %v2863_v56 = vpack.c.bf16 %v2767_v0, %v2759_v46 }
 0x357   : > { %v2862_v58 = vpack.c.bf16 %v2766_v53, %v2758_v52  ;;  %v2864_v57 = vpack.c.bf16 %v2768_v30, %v2760_v14  ;;  %v2319_v7 = vpop.f32.mrb[152].mxu0  ;;  %v2432_v61 = vpop.f32.mrb[152].mxu1 }
 0x358   : > { %v2320_v62 = vadd.f32 %v2319_v7, %v5273_v35  ;;  %v2433_v63 = vadd.f32 %v2432_v61, %v5273_v35  ;;  %v2321_v1 = vpop.f32.mrb[153].mxu0  ;;  %v2434_v6 = vpop.f32.mrb[153].mxu1 }
 0x359   : > { %v2322_v55 = vadd.f32 %v2321_v1, %v5273_v35  ;;  %v2435_v2 = vadd.f32 %v2434_v6, %v5273_v35  ;;  %v2323_v5 = vpop.f32.mrb[154].mxu0  ;;  %v2436_v28 = vpop.f32.mrb[154].mxu1  ;;  %3039 = vmatprep.subr.bf16.mxu0 %v2862_v58  ;;  %3152 = vmatprep.subr.bf16.mxu1 %v2864_v57 }
 0x35a   : > { %v2324_v50 = vadd.f32 %v2323_v5, %v5271_v4  ;;  %v2437_v9 = vadd.f32 %v2436_v28, %v5271_v4  ;;  %v2325_v39 = vpop.f32.mrb[155].mxu0  ;;  %v2438_v10 = vpop.f32.mrb[155].mxu1  ;;  %3040 = vmatpush1.bf16.msra.mxu0 %v2861_v54  ;;  %3153 = vmatpush1.bf16.msra.mxu1 %v2863_v56  ;;  %v2773_v15 = vmax.f32 %v2320_v62, 0.0  ;;  %v2775_v17 = vmax.f32 %v2433_v63, 0.0 }
 0x35b   : > { %v2326_v13 = vadd.f32 %v2325_v39, %v5271_v4  ;;  %v2439_v8 = vadd.f32 %v2438_v10, %v5271_v4  ;;  %v2774_v36 = vmax.f32 %v2322_v55, 0.0  ;;  %v2776_v18 = vmax.f32 %v2435_v2, 0.0 }
 0x35c   : > { %v2781_v19 = vmax.f32 %v2324_v50, 0.0  ;;  %v2783_v20 = vmax.f32 %v2437_v9, 0.0 }
 0x35d   : > { %v2782_v21 = vmax.f32 %v2326_v13, 0.0  ;;  %v2784_v22 = vmax.f32 %v2439_v8, 0.0 }
 0x35e   : > { %v2869_v24 = vpack.c.bf16 %v2781_v19, %v2773_v15  ;;  %v2871_v27 = vpack.c.bf16 %v2783_v20, %v2775_v17  ;;  %v5302_v20 = vld [vmem:[%s5682_s7] sm:$0xff]  }
 0x35f   : > { %v2870_v31 = vpack.c.bf16 %v2782_v21, %v2774_v36  ;;  %v2872_v38 = vpack.c.bf16 %v2784_v22, %v2776_v18  ;;  %v2329_v34 = vpop.f32.mrb[156].mxu0  ;;  %v2442_v32 = vpop.f32.mrb[156].mxu1 }
 0x360   : > { %v2330_v33 = vadd.f32 %v2329_v34, %v5285_v37  ;;  %v2443_v60 = vadd.f32 %v2442_v32, %v5285_v37  ;;  %v2331_v40 = vpop.f32.mrb[157].mxu0  ;;  %v2444_v42 = vpop.f32.mrb[157].mxu1 }
 0x361   : > { %v2332_v43 = vadd.f32 %v2331_v40, %v5285_v37  ;;  %v2445_v29 = vadd.f32 %v2444_v42, %v5285_v37  ;;  %v2333_v46 = vpop.f32.mrb[158].mxu0  ;;  %v2446_v48 = vpop.f32.mrb[158].mxu1  ;;  %3041 = vmatprep.subr.bf16.mxu0 %v2870_v31  ;;  %3154 = vmatprep.subr.bf16.mxu1 %v2872_v38 }
 0x362   : > { %v2334_v0 = vadd.f32 %v2333_v46, %v5283_v23  ;;  %v2447_v52 = vadd.f32 %v2446_v48, %v5283_v23  ;;  %v2335_v14 = vpop.f32.mrb[159].mxu0  ;;  %v2448_v53 = vpop.f32.mrb[159].mxu1  ;;  %3042 = vmatpush1.bf16.msra.mxu0 %v2869_v24  ;;  %3155 = vmatpush1.bf16.msra.mxu1 %v2871_v27  ;;  %v2789_v56 = vmax.f32 %v2330_v33, 0.0  ;;  %v2791_v58 = vmax.f32 %v2443_v60, 0.0 }
 0x363   : > { %v2336_v30 = vadd.f32 %v2335_v14, %v5283_v23  ;;  %v2449_v54 = vadd.f32 %v2448_v53, %v5283_v23  ;;  %v2790_v61 = vmax.f32 %v2332_v43, 0.0  ;;  %v2792_v62 = vmax.f32 %v2445_v29, 0.0 }
 0x364   : > { %v2797_v57 = vmax.f32 %v2334_v0, 0.0  ;;  %v2799_v7 = vmax.f32 %v2447_v52, 0.0 }
 0x365   : > { %v2798_v63 = vmax.f32 %v2336_v30, 0.0  ;;  %v2800_v1 = vmax.f32 %v2449_v54, 0.0 }
 0x366   : > { %v2877_v6 = vpack.c.bf16 %v2797_v57, %v2789_v56  ;;  %v2879_v55 = vpack.c.bf16 %v2799_v7, %v2791_v58  ;;  %v5319_v57 = vld [vmem:[%s5682_s7 + $0x8] sm:$0xff]  }
 0x367   : > { %v2878_v2 = vpack.c.bf16 %v2798_v63, %v2790_v61  ;;  %v2880_v5 = vpack.c.bf16 %v2800_v1, %v2792_v62  ;;  %v2485_v28 = vpop.f32.mrb[160].mxu0  ;;  %v2598_v50 = vpop.f32.mrb[160].mxu1 }
 0x368   : > { %v2486_v9 = vadd.f32 %v2485_v28, %v5201_v44  ;;  %v2599_v39 = vadd.f32 %v2598_v50, %v5201_v44  ;;  %v2487_v10 = vpop.f32.mrb[161].mxu0  ;;  %v2600_v13 = vpop.f32.mrb[161].mxu1 }
 0x369   : > { %v2488_v8 = vadd.f32 %v2487_v10, %v5201_v44  ;;  %v2601_v15 = vadd.f32 %v2600_v13, %v5201_v44  ;;  %v2489_v17 = vpop.f32.mrb[162].mxu0  ;;  %v2602_v19 = vpop.f32.mrb[162].mxu1  ;;  %3043 = vmatprep.subr.bf16.mxu0 %v2878_v2  ;;  %3156 = vmatprep.subr.bf16.mxu1 %v2880_v5 }
 0x36a   : > { %v2490_v36 = vadd.f32 %v2489_v17, %v5199_v49  ;;  %v2603_v18 = vadd.f32 %v2602_v19, %v5199_v49  ;;  %v2491_v21 = vpop.f32.mrb[163].mxu0  ;;  %v2604_v22 = vpop.f32.mrb[163].mxu1  ;;  %3044 = vmatpush1.bf16.msra.mxu0 %v2877_v6  ;;  %3157 = vmatpush1.bf16.msra.mxu1 %v2879_v55  ;;  %v2681_v27 = vmax.f32 %v2486_v9, 0.0  ;;  %v2683_v31 = vmax.f32 %v2599_v39, 0.0 }
 0x36b   : > { %v2492_v24 = vadd.f32 %v2491_v21, %v5199_v49  ;;  %v2605_v44 = vadd.f32 %v2604_v22, %v5199_v49  ;;  %v2682_v32 = vmax.f32 %v2488_v8, 0.0  ;;  %v2684_v33 = vmax.f32 %v2601_v15, 0.0 }
 0x36c   : > { %v2689_v38 = vmax.f32 %v2490_v36, 0.0  ;;  %v2691_v34 = vmax.f32 %v2603_v18, 0.0 }
 0x36d   : > { %v2690_v60 = vmax.f32 %v2492_v24, 0.0  ;;  %v2692_v40 = vmax.f32 %v2605_v44, 0.0  ;;  %3062 = vmatmul.mubr.bf16.vlgmr.msra.gmra.mrb[192].mxu0 %v5302_v20  ;;  %3175 = vmatmul.mubr.bf16.vlgmr.msra.gmra.mrb[192].mxu1 %v5302_v20 }
 0x36e   : > { %v2825_v42 = vpack.c.bf16 %v2689_v38, %v2681_v27  ;;  %v2827_v43 = vpack.c.bf16 %v2691_v34, %v2683_v31  ;;  %3071 = vmatprep.mubr.bf16.mxu0 %v4225_v3  ;;  %3184 = vmatprep.mubr.bf16.mxu1 %v4225_v3  ;;  %v5336_v31 = vld [vmem:[%s5682_s7 + $0x10] sm:$0xff]  }
 0x36f   : > { %v2826_v29 = vpack.c.bf16 %v2690_v60, %v2682_v32  ;;  %v2828_v49 = vpack.c.bf16 %v2692_v40, %v2684_v33  ;;  %v2495_v46 = vpop.f32.mrb[164].mxu0  ;;  %v2608_v48 = vpop.f32.mrb[164].mxu1 }
 0x370   : > { %v2496_v0 = vadd.f32 %v2495_v46, %v5213_v11  ;;  %v2609_v52 = vadd.f32 %v2608_v48, %v5213_v11  ;;  %v2497_v14 = vpop.f32.mrb[165].mxu0  ;;  %v2610_v53 = vpop.f32.mrb[165].mxu1 }
 0x371   : > { %v2498_v30 = vadd.f32 %v2497_v14, %v5213_v11  ;;  %v2611_v54 = vadd.f32 %v2610_v53, %v5213_v11  ;;  %v2499_v56 = vpop.f32.mrb[166].mxu0  ;;  %v2612_v58 = vpop.f32.mrb[166].mxu1  ;;  %3255 = vmatprep.subr.bf16.mxu0 %v2826_v29  ;;  %3368 = vmatprep.subr.bf16.mxu1 %v2828_v49 }
 0x372   : > { %v2500_v7 = vadd.f32 %v2499_v56, %v5211_v45  ;;  %v2613_v61 = vadd.f32 %v2612_v58, %v5211_v45  ;;  %v2501_v62 = vpop.f32.mrb[167].mxu0  ;;  %v2614_v63 = vpop.f32.mrb[167].mxu1  ;;  %3256 = vmatpush1.bf16.msra.mxu0 %v2825_v42  ;;  %3369 = vmatpush1.bf16.msra.mxu1 %v2827_v43  ;;  %v2697_v6 = vmax.f32 %v2496_v0, 0.0  ;;  %v2699_v55 = vmax.f32 %v2609_v52, 0.0 }
 0x373   : > { %v2502_v1 = vadd.f32 %v2501_v62, %v5211_v45  ;;  %v2615_v11 = vadd.f32 %v2614_v63, %v5211_v45  ;;  %v2698_v28 = vmax.f32 %v2498_v30, 0.0  ;;  %v2700_v50 = vmax.f32 %v2611_v54, 0.0 }
 0x374   : > { %v2705_v2 = vmax.f32 %v2500_v7, 0.0  ;;  %v2707_v5 = vmax.f32 %v2613_v61, 0.0 }
 0x375   : > { %v2706_v9 = vmax.f32 %v2502_v1, 0.0  ;;  %v2708_v39 = vmax.f32 %v2615_v11, 0.0  ;;  %3072 = vmatmul.mubr.bf16.gmra.mrb[196].mxu0 %v5319_v57  ;;  %3185 = vmatmul.mubr.bf16.gmra.mrb[196].mxu1 %v5319_v57 }
 0x376   : > { %v2833_v10 = vpack.c.bf16 %v2705_v2, %v2697_v6  ;;  %v2835_v13 = vpack.c.bf16 %v2707_v5, %v2699_v55  ;;  %3081 = vmatprep.mubr.bf16.mxu0 %v4225_v3  ;;  %3194 = vmatprep.mubr.bf16.mxu1 %v4225_v3  ;;  %v5353_v6 = vld [vmem:[%s5682_s7 + $0x18] sm:$0xff]  }
 0x377   : > { %v2834_v8 = vpack.c.bf16 %v2706_v9, %v2698_v28  ;;  %v2836_v45 = vpack.c.bf16 %v2708_v39, %v2700_v50  ;;  %v2505_v15 = vpop.f32.mrb[168].mxu0  ;;  %v2618_v17 = vpop.f32.mrb[168].mxu1 }
 0x378   : > { %v2506_v19 = vadd.f32 %v2505_v15, %v5225_v47  ;;  %v2619_v36 = vadd.f32 %v2618_v17, %v5225_v47  ;;  %v2507_v18 = vpop.f32.mrb[169].mxu0  ;;  %v2620_v21 = vpop.f32.mrb[169].mxu1 }
 0x379   : > { %v2508_v22 = vadd.f32 %v2507_v18, %v5225_v47  ;;  %v2621_v24 = vadd.f32 %v2620_v21, %v5225_v47  ;;  %v2509_v44 = vpop.f32.mrb[170].mxu0  ;;  %v2622_v27 = vpop.f32.mrb[170].mxu1  ;;  %3257 = vmatprep.subr.bf16.mxu0 %v2834_v8  ;;  %3370 = vmatprep.subr.bf16.mxu1 %v2836_v45 }
 0x37a   : > { %v2510_v38 = vadd.f32 %v2509_v44, %v5223_v25  ;;  %v2623_v34 = vadd.f32 %v2622_v27, %v5223_v25  ;;  %v2511_v32 = vpop.f32.mrb[171].mxu0  ;;  %v2624_v33 = vpop.f32.mrb[171].mxu1  ;;  %3258 = vmatpush1.bf16.msra.mxu0 %v2833_v10  ;;  %3371 = vmatpush1.bf16.msra.mxu1 %v2835_v13  ;;  %v2713_v40 = vmax.f32 %v2506_v19, 0.0  ;;  %v2715_v42 = vmax.f32 %v2619_v36, 0.0 }
 0x37b   : > { %v2512_v60 = vadd.f32 %v2511_v32, %v5223_v25  ;;  %v2625_v47 = vadd.f32 %v2624_v33, %v5223_v25  ;;  %v2714_v49 = vmax.f32 %v2508_v22, 0.0  ;;  %v2716_v46 = vmax.f32 %v2621_v24, 0.0 }
 0x37c   : > { %v2721_v43 = vmax.f32 %v2510_v38, 0.0  ;;  %v2723_v29 = vmax.f32 %v2623_v34, 0.0 }
 0x37d   : > { %v2722_v48 = vmax.f32 %v2512_v60, 0.0  ;;  %v2724_v0 = vmax.f32 %v2625_v47, 0.0  ;;  %3082 = vmatmul.mubr.bf16.gmra.mrb[200].mxu0 %v5336_v31  ;;  %3195 = vmatmul.mubr.bf16.gmra.mrb[200].mxu1 %v5336_v31  ;;  %v5370_v47 = vld [vmem:[%s5682_s7 + $0x20] sm:$0xff]  }
 0x37e   : > { %v2841_v52 = vpack.c.bf16 %v2721_v43, %v2713_v40  ;;  %v2843_v14 = vpack.c.bf16 %v2723_v29, %v2715_v42  ;;  %3091 = vmatprep.mubr.bf16.mxu0 %v4225_v3  ;;  %3204 = vmatprep.mubr.bf16.mxu1 %v4225_v3 }
 0x37f   : > { %v2842_v53 = vpack.c.bf16 %v2722_v48, %v2714_v49  ;;  %v2844_v25 = vpack.c.bf16 %v2724_v0, %v2716_v46  ;;  %v2515_v30 = vpop.f32.mrb[172].mxu0  ;;  %v2628_v54 = vpop.f32.mrb[172].mxu1 }
 0x380   : > { %v2516_v56 = vadd.f32 %v2515_v30, %v5237_v12  ;;  %v2629_v58 = vadd.f32 %v2628_v54, %v5237_v12  ;;  %v2517_v7 = vpop.f32.mrb[173].mxu0  ;;  %v2630_v61 = vpop.f32.mrb[173].mxu1 }
 0x381   : > { %v2518_v62 = vadd.f32 %v2517_v7, %v5237_v12  ;;  %v2631_v63 = vadd.f32 %v2630_v61, %v5237_v12  ;;  %v2519_v1 = vpop.f32.mrb[174].mxu0  ;;  %v2632_v11 = vpop.f32.mrb[174].mxu1  ;;  %3259 = vmatprep.subr.bf16.mxu0 %v2842_v53  ;;  %3372 = vmatprep.subr.bf16.mxu1 %v2844_v25 }
 0x382   : > { %v2520_v55 = vadd.f32 %v2519_v1, %v5235_v59  ;;  %v2633_v2 = vadd.f32 %v2632_v11, %v5235_v59  ;;  %v2521_v5 = vpop.f32.mrb[175].mxu0  ;;  %v2634_v28 = vpop.f32.mrb[175].mxu1  ;;  %3260 = vmatpush1.bf16.msra.mxu0 %v2841_v52  ;;  %3373 = vmatpush1.bf16.msra.mxu1 %v2843_v14  ;;  %v2729_v9 = vmax.f32 %v2516_v56, 0.0  ;;  %v2731_v39 = vmax.f32 %v2629_v58, 0.0 }
 0x383   : > { %v2522_v50 = vadd.f32 %v2521_v5, %v5235_v59  ;;  %v2635_v12 = vadd.f32 %v2634_v28, %v5235_v59  ;;  %v2730_v8 = vmax.f32 %v2518_v62, 0.0  ;;  %v2732_v45 = vmax.f32 %v2631_v63, 0.0 }
 0x384   : > { %v2737_v10 = vmax.f32 %v2520_v55, 0.0  ;;  %v2739_v13 = vmax.f32 %v2633_v2, 0.0 }
 0x385   : > { %v2738_v15 = vmax.f32 %v2522_v50, 0.0  ;;  %v2740_v17 = vmax.f32 %v2635_v12, 0.0  ;;  %3092 = vmatmul.mubr.bf16.gmra.mrb[204].mxu0 %v5353_v6  ;;  %3205 = vmatmul.mubr.bf16.gmra.mrb[204].mxu1 %v5353_v6  ;;  %v5387_v50 = vld [vmem:[%s5682_s7 + $0x28] sm:$0xff]  }
 0x386   : > { %v2849_v19 = vpack.c.bf16 %v2737_v10, %v2729_v9  ;;  %v2851_v36 = vpack.c.bf16 %v2739_v13, %v2731_v39  ;;  %3101 = vmatprep.mubr.bf16.mxu0 %v4225_v3  ;;  %3214 = vmatprep.mubr.bf16.mxu1 %v4225_v3 }
 0x387   : > { %v2850_v18 = vpack.c.bf16 %v2738_v15, %v2730_v8  ;;  %v2852_v59 = vpack.c.bf16 %v2740_v17, %v2732_v45  ;;  %v2525_v21 = vpop.f32.mrb[176].mxu0  ;;  %v2638_v22 = vpop.f32.mrb[176].mxu1 }
 0x388   : > { %v2526_v24 = vadd.f32 %v2525_v21, %v5249_v41  ;;  %v2639_v44 = vadd.f32 %v2638_v22, %v5249_v41  ;;  %v2527_v27 = vpop.f32.mrb[177].mxu0  ;;  %v2640_v38 = vpop.f32.mrb[177].mxu1 }
 0x389   : > { %v2528_v34 = vadd.f32 %v2527_v27, %v5249_v41  ;;  %v2641_v32 = vadd.f32 %v2640_v38, %v5249_v41  ;;  %v2529_v33 = vpop.f32.mrb[178].mxu0  ;;  %v2642_v60 = vpop.f32.mrb[178].mxu1  ;;  %3261 = vmatprep.subr.bf16.mxu0 %v2850_v18  ;;  %3374 = vmatprep.subr.bf16.mxu1 %v2852_v59 }
 0x38a   : > { %v2530_v40 = vadd.f32 %v2529_v33, %v5247_v51  ;;  %v2643_v42 = vadd.f32 %v2642_v60, %v5247_v51  ;;  %v2531_v43 = vpop.f32.mrb[179].mxu0  ;;  %v2644_v29 = vpop.f32.mrb[179].mxu1  ;;  %3262 = vmatpush1.bf16.msra.mxu0 %v2849_v19  ;;  %3375 = vmatpush1.bf16.msra.mxu1 %v2851_v36  ;;  %v2745_v46 = vmax.f32 %v2526_v24, 0.0  ;;  %v2747_v48 = vmax.f32 %v2639_v44, 0.0 }
 0x38b   : > { %v2532_v49 = vadd.f32 %v2531_v43, %v5247_v51  ;;  %v2645_v41 = vadd.f32 %v2644_v29, %v5247_v51  ;;  %v2746_v14 = vmax.f32 %v2528_v34, 0.0  ;;  %v2748_v53 = vmax.f32 %v2641_v32, 0.0  ;;  %v5404_v29 = vld [vmem:[%s5682_s7 + $0x30] sm:$0xff]  }
 0x38c   : > { %v2753_v0 = vmax.f32 %v2530_v40, 0.0  ;;  %v2755_v52 = vmax.f32 %v2643_v42, 0.0 }
 0x38d   : > { %v2754_v25 = vmax.f32 %v2532_v49, 0.0  ;;  %v2756_v30 = vmax.f32 %v2645_v41, 0.0  ;;  %3102 = vmatmul.mubr.bf16.gmra.mrb[208].mxu0 %v5370_v47  ;;  %3215 = vmatmul.mubr.bf16.gmra.mrb[208].mxu1 %v5370_v47 }
 0x38e   : > { %v2857_v54 = vpack.c.bf16 %v2753_v0, %v2745_v46  ;;  %v2859_v56 = vpack.c.bf16 %v2755_v52, %v2747_v48  ;;  %3111 = vmatprep.mubr.bf16.mxu0 %v4225_v3  ;;  %3224 = vmatprep.mubr.bf16.mxu1 %v4225_v3 }
 0x38f   : > { %v2858_v58 = vpack.c.bf16 %v2754_v25, %v2746_v14  ;;  %v2860_v51 = vpack.c.bf16 %v2756_v30, %v2748_v53  ;;  %v2535_v7 = vpop.f32.mrb[180].mxu0  ;;  %v2648_v61 = vpop.f32.mrb[180].mxu1 }
 0x390   : > { %v2536_v62 = vadd.f32 %v2535_v7, %v5261_v26  ;;  %v2649_v63 = vadd.f32 %v2648_v61, %v5261_v26  ;;  %v2537_v1 = vpop.f32.mrb[181].mxu0  ;;  %v2650_v11 = vpop.f32.mrb[181].mxu1 }
 0x391   : > { %v2538_v55 = vadd.f32 %v2537_v1, %v5261_v26  ;;  %v2651_v2 = vadd.f32 %v2650_v11, %v5261_v26  ;;  %v2539_v5 = vpop.f32.mrb[182].mxu0  ;;  %v2652_v28 = vpop.f32.mrb[182].mxu1  ;;  %3263 = vmatprep.subr.bf16.mxu0 %v2858_v58  ;;  %3376 = vmatprep.subr.bf16.mxu1 %v2860_v51 }
 0x392   : > { %v2540_v12 = vadd.f32 %v2539_v5, %v5259_v16  ;;  %v2653_v9 = vadd.f32 %v2652_v28, %v5259_v16  ;;  %v2541_v39 = vpop.f32.mrb[183].mxu0  ;;  %v2654_v10 = vpop.f32.mrb[183].mxu1  ;;  %3264 = vmatpush1.bf16.msra.mxu0 %v2857_v54  ;;  %3377 = vmatpush1.bf16.msra.mxu1 %v2859_v56  ;;  %v2761_v8 = vmax.f32 %v2536_v62, 0.0  ;;  %v2763_v45 = vmax.f32 %v2649_v63, 0.0 }
 0x393   : > { %v2542_v13 = vadd.f32 %v2541_v39, %v5259_v16  ;;  %v2655_v26 = vadd.f32 %v2654_v10, %v5259_v16  ;;  %v2762_v19 = vmax.f32 %v2538_v55, 0.0  ;;  %v2764_v36 = vmax.f32 %v2651_v2, 0.0  ;;  %v4160_v39 = vld [vmem:[%s5682_s7 + $0x38] sm:$0xff]  }
 0x394   : > { %v2769_v15 = vmax.f32 %v2540_v12, 0.0  ;;  %v2771_v17 = vmax.f32 %v2653_v9, 0.0 }
 0x395   : > { %v2770_v18 = vmax.f32 %v2542_v13, 0.0  ;;  %v2772_v59 = vmax.f32 %v2655_v26, 0.0  ;;  %3112 = vmatmul.mubr.bf16.gmra.mrb[212].mxu0 %v5387_v50  ;;  %3225 = vmatmul.mubr.bf16.gmra.mrb[212].mxu1 %v5387_v50 }
 0x396   : > { %v2865_v21 = vpack.c.bf16 %v2769_v15, %v2761_v8  ;;  %v2867_v22 = vpack.c.bf16 %v2771_v17, %v2763_v45  ;;  %3121 = vmatprep.mubr.bf16.mxu0 %v4225_v3  ;;  %3234 = vmatprep.mubr.bf16.mxu1 %v4225_v3 }
 0x397   : > { %v2866_v24 = vpack.c.bf16 %v2770_v18, %v2762_v19  ;;  %v2868_v16 = vpack.c.bf16 %v2772_v59, %v2764_v36  ;;  %v2545_v44 = vpop.f32.mrb[184].mxu0  ;;  %v2658_v27 = vpop.f32.mrb[184].mxu1 }
 0x398   : > { %v2546_v38 = vadd.f32 %v2545_v44, %v5273_v35  ;;  %v2659_v34 = vadd.f32 %v2658_v27, %v5273_v35  ;;  %v2547_v32 = vpop.f32.mrb[185].mxu0  ;;  %v2660_v33 = vpop.f32.mrb[185].mxu1 }
 0x399   : > { %v2548_v60 = vadd.f32 %v2547_v32, %v5273_v35  ;;  %v2661_v40 = vadd.f32 %v2660_v33, %v5273_v35  ;;  %v2549_v42 = vpop.f32.mrb[186].mxu0  ;;  %v2662_v43 = vpop.f32.mrb[186].mxu1  ;;  %3265 = vmatprep.subr.bf16.mxu0 %v2866_v24  ;;  %3378 = vmatprep.subr.bf16.mxu1 %v2868_v16 }
 0x39a   : > { %v2550_v49 = vadd.f32 %v2549_v42, %v5271_v4  ;;  %v2663_v41 = vadd.f32 %v2662_v43, %v5271_v4  ;;  %v2551_v46 = vpop.f32.mrb[187].mxu0  ;;  %v2664_v48 = vpop.f32.mrb[187].mxu1  ;;  %3266 = vmatpush1.bf16.msra.mxu0 %v2865_v21  ;;  %3379 = vmatpush1.bf16.msra.mxu1 %v2867_v22  ;;  %v2777_v52 = vmax.f32 %v2546_v38, 0.0  ;;  %v2779_v14 = vmax.f32 %v2659_v34, 0.0 }
 0x39b   : > { %v2552_v0 = vadd.f32 %v2551_v46, %v5271_v4  ;;  %v2665_v35 = vadd.f32 %v2664_v48, %v5271_v4  ;;  %v2778_v30 = vmax.f32 %v2548_v60, 0.0  ;;  %v2780_v54 = vmax.f32 %v2661_v40, 0.0 }
 0x39c   : > { %v2785_v53 = vmax.f32 %v2550_v49, 0.0  ;;  %v2787_v25 = vmax.f32 %v2663_v41, 0.0 }
 0x39d   : > { %v2786_v56 = vmax.f32 %v2552_v0, 0.0  ;;  %v2788_v58 = vmax.f32 %v2665_v35, 0.0  ;;  %3122 = vmatmul.mubr.bf16.gmra.mrb[216].mxu0 %v5404_v29  ;;  %3235 = vmatmul.mubr.bf16.gmra.mrb[216].mxu1 %v5404_v29 }
 0x39e   : > { %v2873_v51 = vpack.c.bf16 %v2785_v53, %v2777_v52  ;;  %v2875_v7 = vpack.c.bf16 %v2787_v25, %v2779_v14  ;;  %3131 = vmatprep.mubr.bf16.mxu0 %v4225_v3  ;;  %3244 = vmatprep.mubr.bf16.mxu1 %v4225_v3 }
 0x39f   : > { %v2874_v61 = vpack.c.bf16 %v2786_v56, %v2778_v30  ;;  %v2876_v4 = vpack.c.bf16 %v2788_v58, %v2780_v54  ;;  %v2555_v62 = vpop.f32.mrb[188].mxu0  ;;  %v2668_v63 = vpop.f32.mrb[188].mxu1 }
 0x3a0   : > { %v2556_v1 = vadd.f32 %v2555_v62, %v5285_v37  ;;  %v2669_v11 = vadd.f32 %v2668_v63, %v5285_v37  ;;  %v2557_v55 = vpop.f32.mrb[189].mxu0  ;;  %v2670_v2 = vpop.f32.mrb[189].mxu1 }
 0x3a1   : > { %v2558_v5 = vadd.f32 %v2557_v55, %v5285_v37  ;;  %v2671_v28 = vadd.f32 %v2670_v2, %v5285_v37  ;;  %v2559_v12 = vpop.f32.mrb[190].mxu0  ;;  %v2672_v9 = vpop.f32.mrb[190].mxu1  ;;  %3267 = vmatprep.subr.bf16.mxu0 %v2874_v61  ;;  %3380 = vmatprep.subr.bf16.mxu1 %v2876_v4 }
 0x3a2   : > { %v2560_v10 = vadd.f32 %v2559_v12, %v5283_v23  ;;  %v2673_v13 = vadd.f32 %v2672_v9, %v5283_v23  ;;  %v2561_v26 = vpop.f32.mrb[191].mxu0  ;;  %v2674_v8 = vpop.f32.mrb[191].mxu1  ;;  %3268 = vmatpush1.bf16.msra.mxu0 %v2873_v51  ;;  %3381 = vmatpush1.bf16.msra.mxu1 %v2875_v7  ;;  %v2793_v15 = vmax.f32 %v2556_v1, 0.0  ;;  %v2795_v17 = vmax.f32 %v2669_v11, 0.0 }
 0x3a3   : > { %v2562_v45 = vadd.f32 %v2561_v26, %v5283_v23  ;;  %v2675_v37 = vadd.f32 %v2674_v8, %v5283_v23  ;;  %v2794_v18 = vmax.f32 %v2558_v5, 0.0  ;;  %v2796_v59 = vmax.f32 %v2671_v28, 0.0  ;;  %v5457_v23 = vpop.permute.xlu1 %2908 }
 0x3a4   : > { %v2801_v19 = vmax.f32 %v2560_v10, 0.0  ;;  %v2803_v36 = vmax.f32 %v2673_v13, 0.0 }
 0x3a5   : > { %v2802_v21 = vmax.f32 %v2562_v45, 0.0  ;;  %v2804_v22 = vmax.f32 %v2675_v37, 0.0  ;;  %3132 = vmatmul.mubr.bf16.gmra.mrb[220].mxu0 %v4160_v39  ;;  %3245 = vmatmul.mubr.bf16.gmra.mrb[220].mxu1 %v4160_v39 }
 0x3a6   : > { %v2881_v24 = vpack.c.bf16 %v2801_v19, %v2793_v15  ;;  %v2883_v16 = vpack.c.bf16 %v2803_v36, %v2795_v17  ;;  %3287 = vmatprep.mubr.bf16.mxu0 %v4225_v3  ;;  %3400 = vmatprep.mubr.bf16.mxu1 %v4225_v3 }
 0x3a7   : > { %v2882_v44 = vpack.c.bf16 %v2802_v21, %v2794_v18  ;;  %v2884_v27 = vpack.c.bf16 %v2804_v22, %v2796_v59  ;;  %v5469_v30 = vpop.permute.xlu1 %2918 }
 0x3a9   : > { %3269 = vmatprep.subr.bf16.mxu0 %v2882_v44  ;;  %3382 = vmatprep.subr.bf16.mxu1 %v2884_v27 }
 0x3aa   : > { %3270 = vmatpush1.bf16.msra.mxu0 %v2881_v24  ;;  %3383 = vmatpush1.bf16.msra.mxu1 %v2883_v16 }
 0x3ab   : > { %v5481_v59 = vpop.permute.xlu1 %2928 }
 0x3ad   : > { %3288 = vmatmul.mubr.bf16.vlgmr.msra.gmra.mrb[224].mxu0 %v5302_v20  ;;  %3401 = vmatmul.mubr.bf16.vlgmr.msra.gmra.mrb[224].mxu1 %v5302_v20  ;;  %v5459_v20 = vpop.permute.xlu0 %2903 }
 0x3ae   : > { %3297 = vmatprep.mubr.bf16.mxu0 %v4225_v3  ;;  %3410 = vmatprep.mubr.bf16.mxu1 %v4225_v3 }
 0x3b1   : > { %v5471_v54 = vpop.permute.xlu0 %2913 }
 0x3b5   : > { %3298 = vmatmul.mubr.bf16.gmra.mrb[228].mxu0 %v5319_v57  ;;  %3411 = vmatmul.mubr.bf16.gmra.mrb[228].mxu1 %v5319_v57  ;;  %v5483_v21 = vpop.permute.xlu0 %2923 }
 0x3b6   : > { %3307 = vmatprep.mubr.bf16.mxu0 %v4225_v3  ;;  %3420 = vmatprep.mubr.bf16.mxu1 %v4225_v3 }
 0x3bd   : > { %3308 = vmatmul.mubr.bf16.gmra.mrb[232].mxu0 %v5336_v31  ;;  %3421 = vmatmul.mubr.bf16.gmra.mrb[232].mxu1 %v5336_v31 }
 0x3be   : > { %3317 = vmatprep.mubr.bf16.mxu0 %v4225_v3  ;;  %3430 = vmatprep.mubr.bf16.mxu1 %v4225_v3 }
 0x3c5   : > { %3318 = vmatmul.mubr.bf16.gmra.mrb[236].mxu0 %v5353_v6  ;;  %3431 = vmatmul.mubr.bf16.gmra.mrb[236].mxu1 %v5353_v6 }
 0x3c6   : > { %3327 = vmatprep.mubr.bf16.mxu0 %v4225_v3  ;;  %3440 = vmatprep.mubr.bf16.mxu1 %v4225_v3 }
 0x3cd   : > { %3328 = vmatmul.mubr.bf16.gmra.mrb[240].mxu0 %v5370_v47  ;;  %3441 = vmatmul.mubr.bf16.gmra.mrb[240].mxu1 %v5370_v47 }
 0x3ce   : > { %3337 = vmatprep.mubr.bf16.mxu0 %v4225_v3  ;;  %3450 = vmatprep.mubr.bf16.mxu1 %v4225_v3 }
 0x3d5   : > { %3338 = vmatmul.mubr.bf16.gmra.mrb[244].mxu0 %v5387_v50  ;;  %3451 = vmatmul.mubr.bf16.gmra.mrb[244].mxu1 %v5387_v50 }
 0x3d6   : > { %3347 = vmatprep.mubr.bf16.mxu0 %v4225_v3  ;;  %3460 = vmatprep.mubr.bf16.mxu1 %v4225_v3 }
 0x3dd   : > { %3348 = vmatmul.mubr.bf16.gmra.mrb[248].mxu0 %v5404_v29  ;;  %3461 = vmatmul.mubr.bf16.gmra.mrb[248].mxu1 %v5404_v29 }
 0x3de   : > { %3357 = vmatprep.mubr.bf16.mxu0 %v4225_v3  ;;  %3470 = vmatprep.mubr.bf16.mxu1 %v4225_v3 }
 0x3e5   : > { %3358 = vmatmul.mubr.bf16.gmra.mrb[252].mxu0 %v4160_v39  ;;  %3471 = vmatmul.mubr.bf16.gmra.mrb[252].mxu1 %v4160_v39 }
 0x3e6   : > { %3716 = vmatprep.mubr.bf16.mxu0 %v4225_v3  ;;  %3757 = vmatprep.mubr.bf16.mxu1 %v4225_v3 }
 0x440   : > { %v3063_v57 = vpop.f32.mrb[192].mxu0  ;;  %v3176_v31 = vpop.f32.mrb[192].mxu1 }
 0x441   : > { %v3064_v6 = vadd.f32 %v3063_v57, %v5459_v20  ;;  %v3177_v47 = vadd.f32 %v3176_v31, %v5459_v20  ;;  %v3065_v50 = vpop.f32.mrb[193].mxu0  ;;  %v3178_v38 = vpop.f32.mrb[193].mxu1 }
 0x442   : > { %v3066_v34 = vadd.f32 %v3065_v50, %v5459_v20  ;;  %v3179_v32 = vadd.f32 %v3178_v38, %v5459_v20  ;;  %v3067_v33 = vpop.f32.mrb[194].mxu0  ;;  %v3180_v60 = vpop.f32.mrb[194].mxu1 }
 0x443   : > { %v3068_v40 = vadd.f32 %v3067_v33, %v5457_v23  ;;  %v3181_v42 = vadd.f32 %v3180_v60, %v5457_v23  ;;  %v3069_v43 = vpop.f32.mrb[195].mxu0  ;;  %v3182_v29 = vpop.f32.mrb[195].mxu1  ;;  %v3481_v46 = vmax.f32 %v3064_v6, 0.0  ;;  %v3483_v48 = vmax.f32 %v3177_v47, 0.0 }
 0x444   : > { %v3070_v49 = vadd.f32 %v3069_v43, %v5457_v23  ;;  %v3183_v41 = vadd.f32 %v3182_v29, %v5457_v23  ;;  %v3482_v52 = vmax.f32 %v3066_v34, 0.0  ;;  %v3484_v14 = vmax.f32 %v3179_v32, 0.0 }
 0x445   : > { %v3489_v0 = vmax.f32 %v3068_v40, 0.0  ;;  %v3491_v35 = vmax.f32 %v3181_v42, 0.0 }
 0x446   : > { %v3490_v53 = vmax.f32 %v3070_v49, 0.0  ;;  %v3492_v25 = vmax.f32 %v3183_v41, 0.0 }
 0x447   : > { %v3610_v56 = vpack.c.bf16 %v3489_v0, %v3481_v46  ;;  %v3612_v58 = vpack.c.bf16 %v3491_v35, %v3483_v48 }
 0x448   : > { %v3611_v51 = vpack.c.bf16 %v3490_v53, %v3482_v52  ;;  %v3613_v7 = vpack.c.bf16 %v3492_v25, %v3484_v14  ;;  %v3073_v61 = vpop.f32.mrb[196].mxu0  ;;  %v3186_v4 = vpop.f32.mrb[196].mxu1 }
 0x449   : > { %v3074_v62 = vadd.f32 %v3073_v61, %v5471_v54  ;;  %v3187_v63 = vadd.f32 %v3186_v4, %v5471_v54  ;;  %v3075_v1 = vpop.f32.mrb[197].mxu0  ;;  %v3188_v11 = vpop.f32.mrb[197].mxu1 }
 0x44a   : > { %v3076_v55 = vadd.f32 %v3075_v1, %v5471_v54  ;;  %v3189_v2 = vadd.f32 %v3188_v11, %v5471_v54  ;;  %v3077_v5 = vpop.f32.mrb[198].mxu0  ;;  %v3190_v28 = vpop.f32.mrb[198].mxu1  ;;  %3684 = vmatprep.subr.bf16.mxu0 %v3611_v51  ;;  %3725 = vmatprep.subr.bf16.mxu1 %v3613_v7 }
 0x44b   : > { %v3078_v12 = vadd.f32 %v3077_v5, %v5469_v30  ;;  %v3191_v9 = vadd.f32 %v3190_v28, %v5469_v30  ;;  %v3079_v39 = vpop.f32.mrb[199].mxu0  ;;  %v3192_v10 = vpop.f32.mrb[199].mxu1  ;;  %3685 = vmatpush1.bf16.msra.mxu0 %v3610_v56  ;;  %3726 = vmatpush1.bf16.msra.mxu1 %v3612_v58  ;;  %v3497_v8 = vmax.f32 %v3074_v62, 0.0  ;;  %v3499_v45 = vmax.f32 %v3187_v63, 0.0 }
 0x44c   : > { %v3080_v13 = vadd.f32 %v3079_v39, %v5469_v30  ;;  %v3193_v26 = vadd.f32 %v3192_v10, %v5469_v30  ;;  %v3498_v17 = vmax.f32 %v3076_v55, 0.0  ;;  %v3500_v19 = vmax.f32 %v3189_v2, 0.0  ;;  %v5493_v25 = vpop.permute.xlu1 %2938  ;;  %v5495_v56 = vpop.permute.xlu0 %2933 }
 0x44d   : > { %v3505_v37 = vmax.f32 %v3078_v12, 0.0  ;;  %v3507_v15 = vmax.f32 %v3191_v9, 0.0 }
 0x44e   : > { %v3506_v36 = vmax.f32 %v3080_v13, 0.0  ;;  %v3508_v18 = vmax.f32 %v3193_v26, 0.0 }
 0x44f   : > { %v3618_v22 = vpack.c.bf16 %v3505_v37, %v3497_v8  ;;  %v3620_v24 = vpack.c.bf16 %v3507_v15, %v3499_v45 }
 0x450   : > { %v3619_v16 = vpack.c.bf16 %v3506_v36, %v3498_v17  ;;  %v3621_v44 = vpack.c.bf16 %v3508_v18, %v3500_v19  ;;  %v3083_v27 = vpop.f32.mrb[200].mxu0  ;;  %v3196_v57 = vpop.f32.mrb[200].mxu1 }
 0x451   : > { %v3084_v31 = vadd.f32 %v3083_v27, %v5483_v21  ;;  %v3197_v6 = vadd.f32 %v3196_v57, %v5483_v21  ;;  %v3085_v47 = vpop.f32.mrb[201].mxu0  ;;  %v3198_v50 = vpop.f32.mrb[201].mxu1 }
 0x452   : > { %v3086_v38 = vadd.f32 %v3085_v47, %v5483_v21  ;;  %v3199_v34 = vadd.f32 %v3198_v50, %v5483_v21  ;;  %v3087_v32 = vpop.f32.mrb[202].mxu0  ;;  %v3200_v33 = vpop.f32.mrb[202].mxu1  ;;  %3686 = vmatprep.subr.bf16.mxu0 %v3619_v16  ;;  %3727 = vmatprep.subr.bf16.mxu1 %v3621_v44 }
 0x453   : > { %v3088_v60 = vadd.f32 %v3087_v32, %v5481_v59  ;;  %v3201_v40 = vadd.f32 %v3200_v33, %v5481_v59  ;;  %v3089_v42 = vpop.f32.mrb[203].mxu0  ;;  %v3202_v43 = vpop.f32.mrb[203].mxu1  ;;  %3687 = vmatpush1.bf16.msra.mxu0 %v3618_v22  ;;  %3728 = vmatpush1.bf16.msra.mxu1 %v3620_v24  ;;  %v3513_v41 = vmax.f32 %v3084_v31, 0.0  ;;  %v3515_v46 = vmax.f32 %v3197_v6, 0.0 }
 0x454   : > { %v3090_v29 = vadd.f32 %v3089_v42, %v5481_v59  ;;  %v3203_v49 = vadd.f32 %v3202_v43, %v5481_v59  ;;  %v3514_v35 = vmax.f32 %v3086_v38, 0.0  ;;  %v3516_v52 = vmax.f32 %v3199_v34, 0.0  ;;  %v5505_v24 = vpop.permute.xlu1 %2948  ;;  %v5507_v16 = vpop.permute.xlu0 %2943 }
 0x455   : > { %v3521_v48 = vmax.f32 %v3088_v60, 0.0  ;;  %v3523_v0 = vmax.f32 %v3201_v40, 0.0 }
 0x456   : > { %v3522_v14 = vmax.f32 %v3090_v29, 0.0  ;;  %v3524_v53 = vmax.f32 %v3203_v49, 0.0 }
 0x457   : > { %v3626_v58 = vpack.c.bf16 %v3521_v48, %v3513_v41  ;;  %v3628_v51 = vpack.c.bf16 %v3523_v0, %v3515_v46 }
 0x458   : > { %v3627_v7 = vpack.c.bf16 %v3522_v14, %v3514_v35  ;;  %v3629_v61 = vpack.c.bf16 %v3524_v53, %v3516_v52  ;;  %v3093_v4 = vpop.f32.mrb[204].mxu0  ;;  %v3206_v62 = vpop.f32.mrb[204].mxu1 }
 0x459   : > { %v3094_v63 = vadd.f32 %v3093_v4, %v5495_v56  ;;  %v3207_v1 = vadd.f32 %v3206_v62, %v5495_v56  ;;  %v3095_v11 = vpop.f32.mrb[205].mxu0  ;;  %v3208_v55 = vpop.f32.mrb[205].mxu1 }
 0x45a   : > { %v3096_v2 = vadd.f32 %v3095_v11, %v5495_v56  ;;  %v3209_v5 = vadd.f32 %v3208_v55, %v5495_v56  ;;  %v3097_v28 = vpop.f32.mrb[206].mxu0  ;;  %v3210_v12 = vpop.f32.mrb[206].mxu1  ;;  %3688 = vmatprep.subr.bf16.mxu0 %v3627_v7  ;;  %3729 = vmatprep.subr.bf16.mxu1 %v3629_v61 }
 0x45b   : > { %v3098_v9 = vadd.f32 %v3097_v28, %v5493_v25  ;;  %v3211_v39 = vadd.f32 %v3210_v12, %v5493_v25  ;;  %v3099_v10 = vpop.f32.mrb[207].mxu0  ;;  %v3212_v13 = vpop.f32.mrb[207].mxu1  ;;  %3689 = vmatpush1.bf16.msra.mxu0 %v3626_v58  ;;  %3730 = vmatpush1.bf16.msra.mxu1 %v3628_v51  ;;  %v3529_v45 = vmax.f32 %v3094_v63, 0.0  ;;  %v3531_v37 = vmax.f32 %v3207_v1, 0.0 }
 0x45c   : > { %v3100_v26 = vadd.f32 %v3099_v10, %v5493_v25  ;;  %v3213_v8 = vadd.f32 %v3212_v13, %v5493_v25  ;;  %v3530_v19 = vmax.f32 %v3096_v2, 0.0  ;;  %v3532_v36 = vmax.f32 %v3209_v5, 0.0  ;;  %v5517_v61 = vpop.permute.xlu1 %2958  ;;  %v5519_v4 = vpop.permute.xlu0 %2953 }
 0x45d   : > { %v3537_v15 = vmax.f32 %v3098_v9, 0.0  ;;  %v3539_v17 = vmax.f32 %v3211_v39, 0.0 }
 0x45e   : > { %v3538_v18 = vmax.f32 %v3100_v26, 0.0  ;;  %v3540_v22 = vmax.f32 %v3213_v8, 0.0 }
 0x45f   : > { %v3634_v44 = vpack.c.bf16 %v3537_v15, %v3529_v45  ;;  %v3636_v27 = vpack.c.bf16 %v3539_v17, %v3531_v37 }
 0x460   : > { %v3635_v57 = vpack.c.bf16 %v3538_v18, %v3530_v19  ;;  %v3637_v31 = vpack.c.bf16 %v3540_v22, %v3532_v36  ;;  %v3103_v6 = vpop.f32.mrb[208].mxu0  ;;  %v3216_v47 = vpop.f32.mrb[208].mxu1 }
 0x461   : > { %v3104_v50 = vadd.f32 %v3103_v6, %v5507_v16  ;;  %v3217_v38 = vadd.f32 %v3216_v47, %v5507_v16  ;;  %v3105_v34 = vpop.f32.mrb[209].mxu0  ;;  %v3218_v32 = vpop.f32.mrb[209].mxu1 }
 0x462   : > { %v3106_v33 = vadd.f32 %v3105_v34, %v5507_v16  ;;  %v3219_v60 = vadd.f32 %v3218_v32, %v5507_v16  ;;  %v3107_v40 = vpop.f32.mrb[210].mxu0  ;;  %v3220_v42 = vpop.f32.mrb[210].mxu1  ;;  %3690 = vmatprep.subr.bf16.mxu0 %v3635_v57  ;;  %3731 = vmatprep.subr.bf16.mxu1 %v3637_v31 }
 0x463   : > { %v3108_v43 = vadd.f32 %v3107_v40, %v5505_v24  ;;  %v3221_v29 = vadd.f32 %v3220_v42, %v5505_v24  ;;  %v3109_v49 = vpop.f32.mrb[211].mxu0  ;;  %v3222_v41 = vpop.f32.mrb[211].mxu1  ;;  %3691 = vmatpush1.bf16.msra.mxu0 %v3634_v44  ;;  %3732 = vmatpush1.bf16.msra.mxu1 %v3636_v27  ;;  %v3545_v0 = vmax.f32 %v3104_v50, 0.0  ;;  %v3547_v35 = vmax.f32 %v3217_v38, 0.0 }
 0x464   : > { %v3110_v46 = vadd.f32 %v3109_v49, %v5505_v24  ;;  %v3223_v48 = vadd.f32 %v3222_v41, %v5505_v24  ;;  %v3546_v53 = vmax.f32 %v3106_v33, 0.0  ;;  %v3548_v58 = vmax.f32 %v3219_v60, 0.0  ;;  %v5529_v47 = vpop.permute.xlu1 %2968  ;;  %v5531_v50 = vpop.permute.xlu0 %2963 }
 0x465   : > { %v3553_v52 = vmax.f32 %v3108_v43, 0.0  ;;  %v3555_v14 = vmax.f32 %v3221_v29, 0.0 }
 0x466   : > { %v3554_v51 = vmax.f32 %v3110_v46, 0.0  ;;  %v3556_v7 = vmax.f32 %v3223_v48, 0.0 }
 0x467   : > { %v3642_v62 = vpack.c.bf16 %v3553_v52, %v3545_v0  ;;  %v3644_v63 = vpack.c.bf16 %v3555_v14, %v3547_v35 }
 0x468   : > { %v3643_v1 = vpack.c.bf16 %v3554_v51, %v3546_v53  ;;  %v3645_v11 = vpack.c.bf16 %v3556_v7, %v3548_v58  ;;  %v3113_v55 = vpop.f32.mrb[212].mxu0  ;;  %v3226_v2 = vpop.f32.mrb[212].mxu1 }
 0x469   : > { %v3114_v5 = vadd.f32 %v3113_v55, %v5519_v4  ;;  %v3227_v28 = vadd.f32 %v3226_v2, %v5519_v4  ;;  %v3115_v12 = vpop.f32.mrb[213].mxu0  ;;  %v3228_v9 = vpop.f32.mrb[213].mxu1 }
 0x46a   : > { %v3116_v39 = vadd.f32 %v3115_v12, %v5519_v4  ;;  %v3229_v10 = vadd.f32 %v3228_v9, %v5519_v4  ;;  %v3117_v13 = vpop.f32.mrb[214].mxu0  ;;  %v3230_v26 = vpop.f32.mrb[214].mxu1  ;;  %3692 = vmatprep.subr.bf16.mxu0 %v3643_v1  ;;  %3733 = vmatprep.subr.bf16.mxu1 %v3645_v11 }
 0x46b   : > { %v3118_v8 = vadd.f32 %v3117_v13, %v5517_v61  ;;  %v3231_v45 = vadd.f32 %v3230_v26, %v5517_v61  ;;  %v3119_v37 = vpop.f32.mrb[215].mxu0  ;;  %v3232_v15 = vpop.f32.mrb[215].mxu1  ;;  %3693 = vmatpush1.bf16.msra.mxu0 %v3642_v62  ;;  %3734 = vmatpush1.bf16.msra.mxu1 %v3644_v63  ;;  %v3561_v36 = vmax.f32 %v3114_v5, 0.0  ;;  %v3563_v18 = vmax.f32 %v3227_v28, 0.0 }
 0x46c   : > { %v3120_v17 = vadd.f32 %v3119_v37, %v5517_v61  ;;  %v3233_v19 = vadd.f32 %v3232_v15, %v5517_v61  ;;  %v3562_v27 = vmax.f32 %v3116_v39, 0.0  ;;  %v3564_v57 = vmax.f32 %v3229_v10, 0.0  ;;  %v5541_v28 = vpop.permute.xlu1 %2978  ;;  %v5543_v12 = vpop.permute.xlu0 %2973 }
 0x46d   : > { %v3569_v22 = vmax.f32 %v3118_v8, 0.0  ;;  %v3571_v44 = vmax.f32 %v3231_v45, 0.0 }
 0x46e   : > { %v3570_v31 = vmax.f32 %v3120_v17, 0.0  ;;  %v3572_v6 = vmax.f32 %v3233_v19, 0.0 }
 0x46f   : > { %v3650_v38 = vpack.c.bf16 %v3569_v22, %v3561_v36  ;;  %v3652_v34 = vpack.c.bf16 %v3571_v44, %v3563_v18 }
 0x470   : > { %v3651_v32 = vpack.c.bf16 %v3570_v31, %v3562_v27  ;;  %v3653_v33 = vpack.c.bf16 %v3572_v6, %v3564_v57  ;;  %v3123_v60 = vpop.f32.mrb[216].mxu0  ;;  %v3236_v40 = vpop.f32.mrb[216].mxu1 }
 0x471   : > { %v3124_v42 = vadd.f32 %v3123_v60, %v5531_v50  ;;  %v3237_v43 = vadd.f32 %v3236_v40, %v5531_v50  ;;  %v3125_v29 = vpop.f32.mrb[217].mxu0  ;;  %v3238_v49 = vpop.f32.mrb[217].mxu1 }
 0x472   : > { %v3126_v41 = vadd.f32 %v3125_v29, %v5531_v50  ;;  %v3239_v46 = vadd.f32 %v3238_v49, %v5531_v50  ;;  %v3127_v48 = vpop.f32.mrb[218].mxu0  ;;  %v3240_v0 = vpop.f32.mrb[218].mxu1  ;;  %3694 = vmatprep.subr.bf16.mxu0 %v3651_v32  ;;  %3735 = vmatprep.subr.bf16.mxu1 %v3653_v33 }
 0x473   : > { %v3128_v35 = vadd.f32 %v3127_v48, %v5529_v47  ;;  %v3241_v52 = vadd.f32 %v3240_v0, %v5529_v47  ;;  %v3129_v14 = vpop.f32.mrb[219].mxu0  ;;  %v3242_v53 = vpop.f32.mrb[219].mxu1  ;;  %3695 = vmatpush1.bf16.msra.mxu0 %v3650_v38  ;;  %3736 = vmatpush1.bf16.msra.mxu1 %v3652_v34  ;;  %v3577_v7 = vmax.f32 %v3124_v42, 0.0  ;;  %v3579_v62 = vmax.f32 %v3237_v43, 0.0 }
 0x474   : > { %v3130_v58 = vadd.f32 %v3129_v14, %v5529_v47  ;;  %v3243_v51 = vadd.f32 %v3242_v53, %v5529_v47  ;;  %v3578_v11 = vmax.f32 %v3126_v41, 0.0  ;;  %v3580_v55 = vmax.f32 %v3239_v46, 0.0 }
 0x475   : > { %v3585_v63 = vmax.f32 %v3128_v35, 0.0  ;;  %v3587_v1 = vmax.f32 %v3241_v52, 0.0 }
 0x476   : > { %v3586_v2 = vmax.f32 %v3130_v58, 0.0  ;;  %v3588_v5 = vmax.f32 %v3243_v51, 0.0 }
 0x477   : > { %v3658_v9 = vpack.c.bf16 %v3585_v63, %v3577_v7  ;;  %v3660_v39 = vpack.c.bf16 %v3587_v1, %v3579_v62 }
 0x478   : > { %v3659_v10 = vpack.c.bf16 %v3586_v2, %v3578_v11  ;;  %v3661_v13 = vpack.c.bf16 %v3588_v5, %v3580_v55  ;;  %v3133_v26 = vpop.f32.mrb[220].mxu0  ;;  %v3246_v8 = vpop.f32.mrb[220].mxu1  ;;  %v5562_v5 = vld [vmem:[%s5684_s9] sm:$0x1] }
 0x479   : > { %v3134_v45 = vadd.f32 %v3133_v26, %v5543_v12  ;;  %v3247_v37 = vadd.f32 %v3246_v8, %v5543_v12  ;;  %v3135_v15 = vpop.f32.mrb[221].mxu0  ;;  %v3248_v17 = vpop.f32.mrb[221].mxu1 }
 0x47a   : > { %v3136_v19 = vadd.f32 %v3135_v15, %v5543_v12  ;;  %v3249_v36 = vadd.f32 %v3248_v17, %v5543_v12  ;;  %v3137_v18 = vpop.f32.mrb[222].mxu0  ;;  %v3250_v22 = vpop.f32.mrb[222].mxu1  ;;  %3696 = vmatprep.subr.bf16.mxu0 %v3659_v10  ;;  %3737 = vmatprep.subr.bf16.mxu1 %v3661_v13 }
 0x47b   : > { %v3138_v44 = vadd.f32 %v3137_v18, %v5541_v28  ;;  %v3251_v27 = vadd.f32 %v3250_v22, %v5541_v28  ;;  %v3139_v57 = vpop.f32.mrb[223].mxu0  ;;  %v3252_v31 = vpop.f32.mrb[223].mxu1  ;;  %3697 = vmatpush1.bf16.msra.mxu0 %v3658_v9  ;;  %3738 = vmatpush1.bf16.msra.mxu1 %v3660_v39  ;;  %v3593_v34 = vmax.f32 %v3134_v45, 0.0  ;;  %v3595_v32 = vmax.f32 %v3247_v37, 0.0 }
 0x47c   : > { %v3140_v6 = vadd.f32 %v3139_v57, %v5541_v28  ;;  %v3253_v38 = vadd.f32 %v3252_v31, %v5541_v28  ;;  %v3594_v40 = vmax.f32 %v3136_v19, 0.0  ;;  %v3596_v42 = vmax.f32 %v3249_v36, 0.0 }
 0x47d   : > { %v3601_v33 = vmax.f32 %v3138_v44, 0.0  ;;  %v3603_v60 = vmax.f32 %v3251_v27, 0.0 }
 0x47e   : > { %v3602_v43 = vmax.f32 %v3140_v6, 0.0  ;;  %v3604_v29 = vmax.f32 %v3253_v38, 0.0 }
 0x47f   : > { %v3666_v49 = vpack.c.bf16 %v3601_v33, %v3593_v34  ;;  %v3668_v41 = vpack.c.bf16 %v3603_v60, %v3595_v32 }
 0x480   : > { %v3667_v46 = vpack.c.bf16 %v3602_v43, %v3594_v40  ;;  %v3669_v48 = vpack.c.bf16 %v3604_v29, %v3596_v42  ;;  %v3289_v0 = vpop.f32.mrb[224].mxu0  ;;  %v3402_v35 = vpop.f32.mrb[224].mxu1 }
 0x481   : > { %v3290_v52 = vadd.f32 %v3289_v0, %v5459_v20  ;;  %v3403_v14 = vadd.f32 %v3402_v35, %v5459_v20  ;;  %v3291_v53 = vpop.f32.mrb[225].mxu0  ;;  %v3404_v58 = vpop.f32.mrb[225].mxu1 }
 0x482   : > { %v3292_v51 = vadd.f32 %v3291_v53, %v5459_v20  ;;  %v3405_v7 = vadd.f32 %v3404_v58, %v5459_v20  ;;  %v3293_v62 = vpop.f32.mrb[226].mxu0  ;;  %v3406_v63 = vpop.f32.mrb[226].mxu1  ;;  %3698 = vmatprep.subr.bf16.mxu0 %v3667_v46  ;;  %3739 = vmatprep.subr.bf16.mxu1 %v3669_v48 }
 0x483   : > { %v3294_v1 = vadd.f32 %v3293_v62, %v5457_v23  ;;  %v3407_v11 = vadd.f32 %v3406_v63, %v5457_v23  ;;  %v3295_v55 = vpop.f32.mrb[227].mxu0  ;;  %v3408_v2 = vpop.f32.mrb[227].mxu1  ;;  %3699 = vmatpush1.bf16.msra.mxu0 %v3666_v49  ;;  %3740 = vmatpush1.bf16.msra.mxu1 %v3668_v41  ;;  %v3485_v39 = vmax.f32 %v3290_v52, 0.0  ;;  %v3487_v10 = vmax.f32 %v3403_v14, 0.0 }
 0x484   : > { %v3296_v9 = vadd.f32 %v3295_v55, %v5457_v23  ;;  %v3409_v20 = vadd.f32 %v3408_v2, %v5457_v23  ;;  %v3486_v8 = vmax.f32 %v3292_v51, 0.0  ;;  %v3488_v45 = vmax.f32 %v3405_v7, 0.0 }
 0x485   : > { %v3493_v13 = vmax.f32 %v3294_v1, 0.0  ;;  %v3495_v26 = vmax.f32 %v3407_v11, 0.0 }
 0x486   : > { %v3494_v37 = vmax.f32 %v3296_v9, 0.0  ;;  %v3496_v15 = vmax.f32 %v3409_v20, 0.0  ;;  %3717 = vmatmul.mubr.bf16.vlgmr.msra.gmra.mrb[0].mxu0 %v5562_v5  ;;  %3758 = vmatmul.mubr.bf16.vlgmr.msra.gmra.mrb[0].mxu1 %v5562_v5 }
 0x487   : > { %v3614_v17 = vpack.c.bf16 %v3493_v13, %v3485_v39  ;;  %v3616_v19 = vpack.c.bf16 %v3495_v26, %v3487_v10  ;;  %3798 = vmatprep.mubr.bf16.mxu0 %v4225_v3  ;;  %3839 = vmatprep.mubr.bf16.mxu1 %v4225_v3 }
 0x488   : > { %v3615_v36 = vpack.c.bf16 %v3494_v37, %v3486_v8  ;;  %v3617_v23 = vpack.c.bf16 %v3496_v15, %v3488_v45  ;;  %v3299_v18 = vpop.f32.mrb[228].mxu0  ;;  %v3412_v22 = vpop.f32.mrb[228].mxu1 }
 0x489   : > { %v3300_v44 = vadd.f32 %v3299_v18, %v5471_v54  ;;  %v3413_v27 = vadd.f32 %v3412_v22, %v5471_v54  ;;  %v3301_v57 = vpop.f32.mrb[229].mxu0  ;;  %v3414_v31 = vpop.f32.mrb[229].mxu1 }
 0x48a   : > { %v3302_v6 = vadd.f32 %v3301_v57, %v5471_v54  ;;  %v3415_v38 = vadd.f32 %v3414_v31, %v5471_v54  ;;  %v3303_v34 = vpop.f32.mrb[230].mxu0  ;;  %v3416_v32 = vpop.f32.mrb[230].mxu1  ;;  %3766 = vmatprep.subr.bf16.mxu0 %v3615_v36  ;;  %3807 = vmatprep.subr.bf16.mxu1 %v3617_v23 }
 0x48b   : > { %v3304_v3 = vadd.f32 %v3303_v34, %v5469_v30  ;;  %v3417_v33 = vadd.f32 %v3416_v32, %v5469_v30  ;;  %v3305_v60 = vpop.f32.mrb[231].mxu0  ;;  %v3418_v40 = vpop.f32.mrb[231].mxu1  ;;  %3767 = vmatpush1.bf16.msra.mxu0 %v3614_v17  ;;  %3808 = vmatpush1.bf16.msra.mxu1 %v3616_v19  ;;  %v3501_v29 = vmax.f32 %v3300_v44, 0.0  ;;  %v3503_v49 = vmax.f32 %v3413_v27, 0.0 }
 0x48c   : > { %v3306_v42 = vadd.f32 %v3305_v60, %v5469_v30  ;;  %v3419_v43 = vadd.f32 %v3418_v40, %v5469_v30  ;;  %v3502_v46 = vmax.f32 %v3302_v6, 0.0  ;;  %v3504_v48 = vmax.f32 %v3415_v38, 0.0 }
 0x48d   : > { %v3509_v41 = vmax.f32 %v3304_v3, 0.0  ;;  %v3511_v54 = vmax.f32 %v3417_v33, 0.0 }
 0x48e   : > { %v3510_v0 = vmax.f32 %v3306_v42, 0.0  ;;  %v3512_v35 = vmax.f32 %v3419_v43, 0.0 }
 0x48f   : > { %v3622_v52 = vpack.c.bf16 %v3509_v41, %v3501_v29  ;;  %v3624_v14 = vpack.c.bf16 %v3511_v54, %v3503_v49 }
 0x490   : > { %v3623_v53 = vpack.c.bf16 %v3510_v0, %v3502_v46  ;;  %v3625_v58 = vpack.c.bf16 %v3512_v35, %v3504_v48  ;;  %v3309_v51 = vpop.f32.mrb[232].mxu0  ;;  %v3422_v7 = vpop.f32.mrb[232].mxu1 }
 0x491   : > { %v3310_v62 = vadd.f32 %v3309_v51, %v5483_v21  ;;  %v3423_v63 = vadd.f32 %v3422_v7, %v5483_v21  ;;  %v3311_v1 = vpop.f32.mrb[233].mxu0  ;;  %v3424_v30 = vpop.f32.mrb[233].mxu1 }
 0x492   : > { %v3312_v11 = vadd.f32 %v3311_v1, %v5483_v21  ;;  %v3425_v55 = vadd.f32 %v3424_v30, %v5483_v21  ;;  %v3313_v2 = vpop.f32.mrb[234].mxu0  ;;  %v3426_v9 = vpop.f32.mrb[234].mxu1  ;;  %3768 = vmatprep.subr.bf16.mxu0 %v3623_v53  ;;  %3809 = vmatprep.subr.bf16.mxu1 %v3625_v58 }
 0x493   : > { %v3314_v20 = vadd.f32 %v3313_v2, %v5481_v59  ;;  %v3427_v39 = vadd.f32 %v3426_v9, %v5481_v59  ;;  %v3315_v10 = vpop.f32.mrb[235].mxu0  ;;  %v3428_v13 = vpop.f32.mrb[235].mxu1  ;;  %3769 = vmatpush1.bf16.msra.mxu0 %v3622_v52  ;;  %3810 = vmatpush1.bf16.msra.mxu1 %v3624_v14  ;;  %v3517_v45 = vmax.f32 %v3310_v62, 0.0  ;;  %v3519_v37 = vmax.f32 %v3423_v63, 0.0 }
 0x494   : > { %v3316_v26 = vadd.f32 %v3315_v10, %v5481_v59  ;;  %v3429_v8 = vadd.f32 %v3428_v13, %v5481_v59  ;;  %v3518_v17 = vmax.f32 %v3312_v11, 0.0  ;;  %v3520_v19 = vmax.f32 %v3425_v55, 0.0 }
 0x495   : > { %v3525_v15 = vmax.f32 %v3314_v20, 0.0  ;;  %v3527_v21 = vmax.f32 %v3427_v39, 0.0 }
 0x496   : > { %v3526_v36 = vmax.f32 %v3316_v26, 0.0  ;;  %v3528_v23 = vmax.f32 %v3429_v8, 0.0 }
 0x497   : > { %v3630_v18 = vpack.c.bf16 %v3525_v15, %v3517_v45  ;;  %v3632_v22 = vpack.c.bf16 %v3527_v21, %v3519_v37 }
 0x498   : > { %v3631_v44 = vpack.c.bf16 %v3526_v36, %v3518_v17  ;;  %v3633_v27 = vpack.c.bf16 %v3528_v23, %v3520_v19  ;;  %v3319_v57 = vpop.f32.mrb[236].mxu0  ;;  %v3432_v31 = vpop.f32.mrb[236].mxu1 }
 0x499   : > { %v3320_v6 = vadd.f32 %v3319_v57, %v5495_v56  ;;  %v3433_v38 = vadd.f32 %v3432_v31, %v5495_v56  ;;  %v3321_v34 = vpop.f32.mrb[237].mxu0  ;;  %v3434_v59 = vpop.f32.mrb[237].mxu1 }
 0x49a   : > { %v3322_v32 = vadd.f32 %v3321_v34, %v5495_v56  ;;  %v3435_v3 = vadd.f32 %v3434_v59, %v5495_v56  ;;  %v3323_v33 = vpop.f32.mrb[238].mxu0  ;;  %v3436_v60 = vpop.f32.mrb[238].mxu1  ;;  %3770 = vmatprep.subr.bf16.mxu0 %v3631_v44  ;;  %3811 = vmatprep.subr.bf16.mxu1 %v3633_v27 }
 0x49b   : > { %v3324_v40 = vadd.f32 %v3323_v33, %v5493_v25  ;;  %v3437_v42 = vadd.f32 %v3436_v60, %v5493_v25  ;;  %v3325_v43 = vpop.f32.mrb[239].mxu0  ;;  %v3438_v29 = vpop.f32.mrb[239].mxu1  ;;  %3771 = vmatpush1.bf16.msra.mxu0 %v3630_v18  ;;  %3812 = vmatpush1.bf16.msra.mxu1 %v3632_v22  ;;  %v3533_v54 = vmax.f32 %v3320_v6, 0.0  ;;  %v3535_v46 = vmax.f32 %v3433_v38, 0.0 }
 0x49c   : > { %v3326_v49 = vadd.f32 %v3325_v43, %v5493_v25  ;;  %v3439_v41 = vadd.f32 %v3438_v29, %v5493_v25  ;;  %v3534_v0 = vmax.f32 %v3322_v32, 0.0  ;;  %v3536_v35 = vmax.f32 %v3435_v3, 0.0 }
 0x49d   : > { %v3541_v48 = vmax.f32 %v3324_v40, 0.0  ;;  %v3543_v56 = vmax.f32 %v3437_v42, 0.0 }
 0x49e   : > { %v3542_v52 = vmax.f32 %v3326_v49, 0.0  ;;  %v3544_v14 = vmax.f32 %v3439_v41, 0.0 }
 0x49f   : > { %v3638_v53 = vpack.c.bf16 %v3541_v48, %v3533_v54  ;;  %v3640_v58 = vpack.c.bf16 %v3543_v56, %v3535_v46 }
 0x4a0   : > { %v3639_v51 = vpack.c.bf16 %v3542_v52, %v3534_v0  ;;  %v3641_v7 = vpack.c.bf16 %v3544_v14, %v3536_v35  ;;  %v3329_v62 = vpop.f32.mrb[240].mxu0  ;;  %v3442_v63 = vpop.f32.mrb[240].mxu1 }
 0x4a1   : > { %v3330_v1 = vadd.f32 %v3329_v62, %v5507_v16  ;;  %v3443_v30 = vadd.f32 %v3442_v63, %v5507_v16  ;;  %v3331_v11 = vpop.f32.mrb[241].mxu0  ;;  %v3444_v25 = vpop.f32.mrb[241].mxu1 }
 0x4a2   : > { %v3332_v55 = vadd.f32 %v3331_v11, %v5507_v16  ;;  %v3445_v2 = vadd.f32 %v3444_v25, %v5507_v16  ;;  %v3333_v9 = vpop.f32.mrb[242].mxu0  ;;  %v3446_v20 = vpop.f32.mrb[242].mxu1  ;;  %3772 = vmatprep.subr.bf16.mxu0 %v3639_v51  ;;  %3813 = vmatprep.subr.bf16.mxu1 %v3641_v7 }
 0x4a3   : > { %v3334_v39 = vadd.f32 %v3333_v9, %v5505_v24  ;;  %v3447_v10 = vadd.f32 %v3446_v20, %v5505_v24  ;;  %v3335_v13 = vpop.f32.mrb[243].mxu0  ;;  %v3448_v26 = vpop.f32.mrb[243].mxu1  ;;  %3773 = vmatpush1.bf16.msra.mxu0 %v3638_v53  ;;  %3814 = vmatpush1.bf16.msra.mxu1 %v3640_v58  ;;  %v3549_v37 = vmax.f32 %v3330_v1, 0.0  ;;  %v3551_v15 = vmax.f32 %v3443_v30, 0.0 }
 0x4a4   : > { %v3336_v8 = vadd.f32 %v3335_v13, %v5505_v24  ;;  %v3449_v45 = vadd.f32 %v3448_v26, %v5505_v24  ;;  %v3550_v17 = vmax.f32 %v3332_v55, 0.0  ;;  %v3552_v19 = vmax.f32 %v3445_v2, 0.0 }
 0x4a5   : > { %v3557_v21 = vmax.f32 %v3334_v39, 0.0  ;;  %v3559_v16 = vmax.f32 %v3447_v10, 0.0 }
 0x4a6   : > { %v3558_v36 = vmax.f32 %v3336_v8, 0.0  ;;  %v3560_v23 = vmax.f32 %v3449_v45, 0.0 }
 0x4a7   : > { %v3646_v18 = vpack.c.bf16 %v3557_v21, %v3549_v37  ;;  %v3648_v22 = vpack.c.bf16 %v3559_v16, %v3551_v15 }
 0x4a8   : > { %v3647_v44 = vpack.c.bf16 %v3558_v36, %v3550_v17  ;;  %v3649_v27 = vpack.c.bf16 %v3560_v23, %v3552_v19  ;;  %v3339_v57 = vpop.f32.mrb[244].mxu0  ;;  %v3452_v31 = vpop.f32.mrb[244].mxu1 }
 0x4a9   : > { %v3340_v6 = vadd.f32 %v3339_v57, %v5519_v4  ;;  %v3453_v38 = vadd.f32 %v3452_v31, %v5519_v4  ;;  %v3341_v34 = vpop.f32.mrb[245].mxu0  ;;  %v3454_v24 = vpop.f32.mrb[245].mxu1 }
 0x4aa   : > { %v3342_v59 = vadd.f32 %v3341_v34, %v5519_v4  ;;  %v3455_v32 = vadd.f32 %v3454_v24, %v5519_v4  ;;  %v3343_v3 = vpop.f32.mrb[246].mxu0  ;;  %v3456_v33 = vpop.f32.mrb[246].mxu1  ;;  %3774 = vmatprep.subr.bf16.mxu0 %v3647_v44  ;;  %3815 = vmatprep.subr.bf16.mxu1 %v3649_v27 }
 0x4ab   : > { %v3344_v60 = vadd.f32 %v3343_v3, %v5517_v61  ;;  %v3457_v40 = vadd.f32 %v3456_v33, %v5517_v61  ;;  %v3345_v42 = vpop.f32.mrb[247].mxu0  ;;  %v3458_v43 = vpop.f32.mrb[247].mxu1  ;;  %3775 = vmatpush1.bf16.msra.mxu0 %v3646_v18  ;;  %3816 = vmatpush1.bf16.msra.mxu1 %v3648_v22  ;;  %v3565_v41 = vmax.f32 %v3340_v6, 0.0  ;;  %v3567_v54 = vmax.f32 %v3453_v38, 0.0 }
 0x4ac   : > { %v3346_v29 = vadd.f32 %v3345_v42, %v5517_v61  ;;  %v3459_v49 = vadd.f32 %v3458_v43, %v5517_v61  ;;  %v3566_v48 = vmax.f32 %v3342_v59, 0.0  ;;  %v3568_v56 = vmax.f32 %v3455_v32, 0.0 }
 0x4ad   : > { %v3573_v46 = vmax.f32 %v3344_v60, 0.0  ;;  %v3575_v4 = vmax.f32 %v3457_v40, 0.0 }
 0x4ae   : > { %v3574_v0 = vmax.f32 %v3346_v29, 0.0  ;;  %v3576_v35 = vmax.f32 %v3459_v49, 0.0 }
 0x4af   : > { %v3654_v52 = vpack.c.bf16 %v3573_v46, %v3565_v41  ;;  %v3656_v14 = vpack.c.bf16 %v3575_v4, %v3567_v54 }
 0x4b0   : > { %v3655_v53 = vpack.c.bf16 %v3574_v0, %v3566_v48  ;;  %v3657_v58 = vpack.c.bf16 %v3576_v35, %v3568_v56  ;;  %v3349_v51 = vpop.f32.mrb[248].mxu0  ;;  %v3462_v7 = vpop.f32.mrb[248].mxu1 }
 0x4b1   : > { %v3350_v62 = vadd.f32 %v3349_v51, %v5531_v50  ;;  %v3463_v63 = vadd.f32 %v3462_v7, %v5531_v50  ;;  %v3351_v1 = vpop.f32.mrb[249].mxu0  ;;  %v3464_v61 = vpop.f32.mrb[249].mxu1 }
 0x4b2   : > { %v3352_v30 = vadd.f32 %v3351_v1, %v5531_v50  ;;  %v3465_v11 = vadd.f32 %v3464_v61, %v5531_v50  ;;  %v3353_v25 = vpop.f32.mrb[250].mxu0  ;;  %v3466_v55 = vpop.f32.mrb[250].mxu1  ;;  %3776 = vmatprep.subr.bf16.mxu0 %v3655_v53  ;;  %3817 = vmatprep.subr.bf16.mxu1 %v3657_v58 }
 0x4b3   : > { %v3354_v2 = vadd.f32 %v3353_v25, %v5529_v47  ;;  %v3467_v9 = vadd.f32 %v3466_v55, %v5529_v47  ;;  %v3355_v20 = vpop.f32.mrb[251].mxu0  ;;  %v3468_v39 = vpop.f32.mrb[251].mxu1  ;;  %3777 = vmatpush1.bf16.msra.mxu0 %v3654_v52  ;;  %3818 = vmatpush1.bf16.msra.mxu1 %v3656_v14  ;;  %v3581_v26 = vmax.f32 %v3350_v62, 0.0  ;;  %v3583_v8 = vmax.f32 %v3463_v63, 0.0 }
 0x4b4   : > { %v3356_v10 = vadd.f32 %v3355_v20, %v5529_v47  ;;  %v3469_v13 = vadd.f32 %v3468_v39, %v5529_v47  ;;  %v3582_v37 = vmax.f32 %v3352_v30, 0.0  ;;  %v3584_v15 = vmax.f32 %v3465_v11, 0.0  ;;  %v3678_v53 = vpop.permute.xlu0 %3677 }
 0x4b5   : > { %v3589_v45 = vmax.f32 %v3354_v2, 0.0  ;;  %v3591_v50 = vmax.f32 %v3467_v9, 0.0  ;;  %v4226_v52 = vmov 1966171168  }
 0x4b6   : > { %v3590_v21 = vmax.f32 %v3356_v10, 0.0  ;;  %v3592_v16 = vmax.f32 %v3469_v13, 0.0  ;;  %v3869_v14 = vunpack.c.l.s4 %v4226_v52 }
 0x4b7   : > { %v3662_v17 = vpack.c.bf16 %v3589_v45, %v3581_v26  ;;  %v3664_v19 = vpack.c.bf16 %v3591_v50, %v3583_v8 }
 0x4b8   : > { %v3663_v36 = vpack.c.bf16 %v3590_v21, %v3582_v37  ;;  %v3665_v23 = vpack.c.bf16 %v3592_v16, %v3584_v15  ;;  %v3359_v18 = vpop.f32.mrb[252].mxu0  ;;  %v3472_v22 = vpop.f32.mrb[252].mxu1  ;;  %v3870_v51 = vunpack.c.0.s8 %v3869_v14 }
 0x4b9   : > { %v3360_v44 = vadd.f32 %v3359_v18, %v5543_v12  ;;  %v3473_v27 = vadd.f32 %v3472_v22, %v5543_v12  ;;  %v3361_v57 = vpop.f32.mrb[253].mxu0  ;;  %v3474_v47 = vpop.f32.mrb[253].mxu1 }
 0x4ba   : > { %v3362_v31 = vadd.f32 %v3361_v57, %v5543_v12  ;;  %v3475_v6 = vadd.f32 %v3474_v47, %v5543_v12  ;;  %v3363_v38 = vpop.f32.mrb[254].mxu0  ;;  %v3476_v34 = vpop.f32.mrb[254].mxu1  ;;  %3778 = vmatprep.subr.bf16.mxu0 %v3663_v36  ;;  %3819 = vmatprep.subr.bf16.mxu1 %v3665_v23 }
 0x4bb   : > { %v3364_v24 = vadd.f32 %v3363_v38, %v5541_v28  ;;  %v3477_v59 = vadd.f32 %v3476_v34, %v5541_v28  ;;  %v3365_v32 = vpop.f32.mrb[255].mxu0  ;;  %v3478_v3 = vpop.f32.mrb[255].mxu1  ;;  %3779 = vmatpush1.bf16.msra.mxu0 %v3662_v17  ;;  %3820 = vmatpush1.bf16.msra.mxu1 %v3664_v19  ;;  %v3597_v40 = vmax.f32 %v3360_v44, 0.0  ;;  %v3599_v42 = vmax.f32 %v3473_v27, 0.0 }
 0x4bc   : > { %v3366_v33 = vadd.f32 %v3365_v32, %v5541_v28  ;;  %v3479_v60 = vadd.f32 %v3478_v3, %v5541_v28  ;;  %v3598_v29 = vmax.f32 %v3362_v31, 0.0  ;;  %v3600_v49 = vmax.f32 %v3475_v6, 0.0 }
 0x4bd   : > { %v3605_v43 = vmax.f32 %v3364_v24, 0.0  ;;  %v3607_v12 = vmax.f32 %v3477_v59, 0.0  ;;  %v3680_v28 = vlaneseq }
 0x4be   : > { %v3606_v41 = vmax.f32 %v3366_v33, 0.0  ;;  %v3608_v54 = vmax.f32 %v3479_v60, 0.0 }
 0x4bf   : > { %v3670_v46 = vpack.c.bf16 %v3605_v43, %v3597_v40  ;;  %v3672_v4 = vpack.c.bf16 %v3607_v12, %v3599_v42  ;;  %v3681_v0 = vshrl.u32 %v3680_v28, 7 }
 0x4c0   : > { %v3671_v48 = vpack.c.bf16 %v3606_v41, %v3598_v29  ;;  %v3673_v56 = vpack.c.bf16 %v3608_v54, %v3600_v49 }
 0x4c1   : > { %v3682_v35 = vsub.s32 0, %v3681_v0  ;;  %v3873_v10 = vsub.s32 %v3870_v51, %v3681_v0 }
 0x4c2   : > { %3780 = vmatprep.subr.bf16.mxu0 %v3671_v48  ;;  %3821 = vmatprep.subr.bf16.mxu1 %v3673_v56 }
 0x4c3   : > { %3781 = vmatpush1.bf16.msra.mxu0 %v3670_v46  ;;  %3822 = vmatpush1.bf16.msra.mxu1 %v3672_v4  ;;  %v3683_v58 = vrot.slane %v3678_v53, %v3682_v35 }
 0x4c6   : > { %3799 = vmatmul.mubr.bf16.vlgmr.msra.gmra.mrb[4].mxu0 %v5562_v5  ;;  %3840 = vmatmul.mubr.bf16.vlgmr.msra.gmra.mrb[4].mxu1 %v5562_v5 }
 0x559   : > { %v3718_v7 = vpop.f32.mrb[0].mxu0  ;;  %v3759_v62 = vpop.f32.mrb[0].mxu1 }
 0x55a   : > { %v3719_v63 = vadd.f32 %v3718_v7, %v3683_v58  ;;  %v3760_v1 = vadd.f32 %v3759_v62, %v3683_v58  ;;  %v3720_v61 = vpop.f32.mrb[1].mxu0  ;;  %v3761_v30 = vpop.f32.mrb[1].mxu1 }
 0x55b   : > { %v3721_v11 = vadd.f32 %v3720_v61, %v3683_v58  ;;  %v3762_v25 = vadd.f32 %v3761_v30, %v3683_v58  ;;  %v3722_v55 = vpop.f32.mrb[2].mxu0  ;;  %v3763_v2 = vpop.f32.mrb[2].mxu1 }
 0x55c   : > { %v3848_v9 = vmax.f32 %v3719_v63, 0.0  ;;  %v3850_v5 = vmax.f32 %v3760_v1, 0.0  ;;  %v3723_v20 = vpop.f32.mrb[3].mxu0  ;;  %v3764_v39 = vpop.f32.mrb[3].mxu1 }
 0x55d   : > { %v3849_v13 = vmax.f32 %v3721_v11, 0.0  ;;  %v3851_v26 = vmax.f32 %v3762_v25, 0.0 }
 0x55f   : > { %v3864_v8 = vcombine.low %v3848_v9, %v3849_v13  ;;  %v3865_v45 = vcombine.low %v3850_v5, %v3851_v26 }
 0x561   : > { %v3874_v50 = vrot.slane %v3864_v8, %v3873_v10  ;;  %v3881_v37 = vrot.slane %v3865_v45, %v3873_v10 }
 0x563   : > { %v3896_v15 = vcombine.low %v3874_v50, %v3881_v37 }
 0x565   : > { %v3904_v60 = vrot.slane %v3896_v15, %v3873_v10 }
 0x599   : > { %v3800_v21 = vpop.f32.mrb[4].mxu0  ;;  %v3841_v16 = vpop.f32.mrb[4].mxu1 }
 0x59a   : > { %v3801_v17 = vadd.f32 %v3800_v21, %v3683_v58  ;;  %v3842_v19 = vadd.f32 %v3841_v16, %v3683_v58  ;;  %v3802_v36 = vpop.f32.mrb[5].mxu0  ;;  %v3843_v23 = vpop.f32.mrb[5].mxu1 }
 0x59b   : > { %v3803_v18 = vadd.f32 %v3802_v36, %v3683_v58  ;;  %v3844_v22 = vadd.f32 %v3843_v23, %v3683_v58  ;;  %v3804_v44 = vpop.f32.mrb[6].mxu0  ;;  %v3845_v27 = vpop.f32.mrb[6].mxu1 }
 0x59c   : > { %v3852_v57 = vmax.f32 %v3801_v17, 0.0  ;;  %v3854_v47 = vmax.f32 %v3842_v19, 0.0  ;;  %v3805_v31 = vpop.f32.mrb[7].mxu0  ;;  %v3846_v6 = vpop.f32.mrb[7].mxu1 }
 0x59d   : > { %v3853_v38 = vmax.f32 %v3803_v18, 0.0  ;;  %v3855_v34 = vmax.f32 %v3844_v22, 0.0 }
 0x59f   : > { %v3866_v24 = vcombine.low %v3852_v57, %v3853_v38  ;;  %v3867_v59 = vcombine.low %v3854_v47, %v3855_v34 }
 0x5a1   : > { %v3888_v32 = vrot.slane %v3866_v24, %v3873_v10  ;;  %v3895_v3 = vrot.slane %v3867_v59, %v3873_v10 }
 0x5a3   : > { %v3897_v33 = vcombine.low %v3888_v32, %v3895_v3 }
 0x5a5   : > { %v3911_v40 = vrot.slane %v3897_v33, %v3873_v10 }
 0x5a7   : > { %v3912_v42 = vcombine.low %v3904_v60, %v3911_v40 }
 0x5a9   : > { %3914 = vst [vmem:[%s382_s16] sm:$0xff] %v3912_v42 }
 0x5aa   : > { %4174 = shalt.err (!%p4171_p3)
}
 0x5ab   : > { %s4175_s12 = scalar_lea.hbm %s5633_s23, 128  ;;  %s4179_s15 = scalar_lea.hbm %s5686_s11, 256 }
 0x5ac   : > { %p4176_p4 = scmp.ne.s32.totalorder %s5633_s23, %s4175_s12  ;;  %p4180_p9 = scmp.lt.u32.totalorder %s5633_s23, %s5686_s11 }
 0x5ad   : > { %p4181_p10 = scmp.lt.u32.totalorder %s4179_s15, %s4175_s12  ;;  %p4183_p12 = scmp.lt.u32.totalorder %s4175_s12, %s5633_s23 }
 0x5ae   : > { %p4177_p7 = pnand %p4176_p4, %p4329_p5 }
 0x5af   : > { %p4182_p11 = por %p4181_p10, %p4180_p9 }
 0x5b0   : > { %p4178_p8 = pneg %p4177_p7 }
 0x5b1   : > { %p4184_p13 = por %p4183_p12, %p4182_p11 }
 0x5b3   : > { %p4185_p0 = pnand %p4184_p13, %p4178_p8 }
 0x5b5   : > { %4188 = shalt.err (!%p4185_p0)
}
 0x5b6   : > { %4078 = dma.vmem_to_hbm [thread:$0]  (%p4329_p5), %s5635_s17, 128, %s5633_s23, %s3916_s25  }
 0x5b7 PF: > { %p4084_p1 = scmp.ge.s32.totalorder %s4223_s22, 2  ;;  %s3942_s26 = sand.u32 1, %s4211_s19  }
 0x5b8   : > { %s3943_s30 = scalar_lea.sflag [#allocation4], %s3942_s26 }
 0x5b9   : > { %p4081_p2 = pnand %p4084_p1, %p4333_p6 }
 0x5bb   : > { %4206 = dma.done.wait (!%p4081_p2), %s3943_s30, 128  }
 0x5bc   : > { %4208 = vsyncadd (!%p4081_p2), %s3943_s30, 4294967168  ;;  %p23_p3 = scmp.ge.s32.totalorder %s4316_s24, 4   ;;  %s5689_s19 = smov %s4215_s20 }
 0x5bd   : > { %s5690_s20 = smov %s4219_s21  ;;  %s5691_s21 = smov %s4327_s27 }
 0x5be   : > { %s5692_s22 = smov %s4316_s24  ;;  %25 = sbr.rel (!%p23_p3) target bundleno = 6 (0x6), region = 99 }
 0x5c5   :  { %3948 = vsyncpa [#allocation4], 1 }
 0x5c6   :  { %3950 = vsyncpa [#allocation4 + $0x1], 1 }

</bundles_post_ra>
